<compile_context>
chip_gen: v7x
topology: tpu7x:2x2x1
jax: 0.10.0
libtpu: 0.0.40
codegen_flags: <defaults>
</compile_context>

<pallas_src>
import jax
import jax.numpy as jnp
from jax.experimental import pallas as pl
from jax.experimental.pallas import tpu as pltpu


def _round_up(a, b):
    return ((a + b - 1) // b) * b


def _make_abmil_kernel(tile_n, d_attn):
    """Kernel closing over static sizes (N-tile, attention dim D)."""

    def kernel(n_ref,                                      # scalar prefetch (SMEM)
               x_ref, wf_ref, bf_ref, wvu_ref, bvu_ref,    # inputs
               wa_ref, wc_ref, bc_ref,
               logits_ref, attn_ref,                       # outputs
               m_ref, l_ref, acc_ref):                     # scratch
        t = pl.program_id(0)

        @pl.when(t == 0)
        def _init():
            m_ref[...] = jnp.full_like(m_ref, -1e30)
            l_ref[...] = jnp.zeros_like(l_ref)
            acc_ref[...] = jnp.zeros_like(acc_ref)

        # ---- validity mask for the (possibly partial) last tile -------------
        n_valid = n_ref[0]
        row_idx = t * tile_n + jax.lax.broadcasted_iota(
            jnp.int32, (tile_n, 1), 0)
        row_valid = row_idx < n_valid                                  # (TN, 1)

        # ---- feature extractor: H = relu(x @ Wf + bf)  (bf16 MXU, f32 acc) --
        # Mask garbage rows (undefined data past the end of x) to 0 BEFORE any
        # use, then cast to bf16 on the VPU (free filler under the MXU).
        x = jnp.where(row_valid, x_ref[...], 0.0).astype(wf_ref.dtype)  # (TN,F)
        H = jnp.dot(x, wf_ref[...], preferred_element_type=jnp.float32)
        H = jnp.maximum(H + bf_ref[...], 0.0)                           # (TN,L) f32

        # ---- fused gated attention branch: one (L, 2D) matmul ---------------
        G = jnp.dot(H.astype(wvu_ref.dtype), wvu_ref[...],
                    preferred_element_type=jnp.float32) + bvu_ref[...]  # (TN,2D)
        g_v = jnp.tanh(G[:, :d_attn])
        g_u = 0.5 * (jnp.tanh(0.5 * G[:, d_attn:]) + 1.0)   # sigmoid, 1 EUP push
        gated = g_v * g_u                                               # (TN, D)

        # ---- per-instance scores: VPU multiply + lane reduce (no 1-col MXU) -
        s_col = jnp.sum(gated * wa_ref[...], axis=-1, keepdims=True)    # (TN, 1)
        s_col = jnp.where(row_valid, s_col, jnp.float32(-1e30))

        # stash raw masked scores lane-dense directly in the output block
        start = pl.multiple_of(t * tile_n, 128)
        attn_ref[:, pl.ds(start, tile_n)] = jnp.transpose(s_col)        # (1, TN)

        # ---- online softmax accumulation (all f32) --------------------------
        m_prev = m_ref[...]                                             # (1, 1)
        m_new = jnp.maximum(m_prev, jnp.max(s_col))
        alpha = jnp.exp(m_prev - m_new)
        e_col = jnp.exp(s_col - m_new)                                  # (TN, 1)
        l_ref[...] = alpha * l_ref[...] + jnp.sum(e_col)
        acc_ref[...] = alpha * acc_ref[...] + jnp.sum(
            e_col * H, axis=0, keepdims=True)                           # (1, L)
        m_ref[...] = m_new

        # ---- finalize: normalize attention row in place + pooled classifier -
        @pl.when(t == pl.num_programs(0) - 1)
        def _finalize():
            inv_l = pl.reciprocal(l_ref[...], approx=False)             # (1, 1)
            attn_ref[...] = jnp.exp(attn_ref[...] - m_ref[...]) * inv_l
            M = acc_ref[...] * inv_l                                    # (1, L)
            logits_ref[...] = (
                jnp.dot(M, wc_ref[...], preferred_element_type=jnp.float32)
                + bc_ref[...])

    return kernel


def attention_mil_forward(x, params, *, tile_n=None, mm_dtype=jnp.bfloat16):
    """Single-bag AttentionMIL forward. x: (N, in_features) f32."""
    (wf, bf, wv, bv, wu, bu, wa, ba, wc, bc) = params
    del ba  # softmax shift-invariance: raw-score bias has no effect on outputs
    N, F = x.shape
    L = wf.shape[1]
    D = wv.shape[1]
    C = wc.shape[1]

    if tile_n is None:
        # single tile whenever the bag fits; multiple of 256 fills the MXU M-dim
        tile_n = min(1024, _round_up(max(N, 1), 256))
    assert tile_n % 128 == 0, "tile_n must be a multiple of 128 (256 on v6e/v7x)"
    num_tiles = -(-N // tile_n)
    n_pad = num_tiles * tile_n

    # host-side prep: cast small weights to bf16, fuse Wv/Wu.  x stays f32
    # and unpadded (masking + cast happen inside the kernel).
    wf_c = wf.astype(mm_dtype)                                      # (F, L)
    w_vu = jnp.concatenate([wv, wu], axis=1).astype(mm_dtype)       # (L, 2D)
    b_vu = jnp.concatenate([bv, bu], axis=1).astype(jnp.float32)    # (1, 2D)
    wa_row = wa.reshape(1, D).astype(jnp.float32)                   # (1, D)
    bf_f = bf.astype(jnp.float32)
    wc_f = wc.astype(jnp.float32)
    bc_f = bc.astype(jnp.float32)
    n_valid = jnp.array([N], dtype=jnp.int32)                       # SMEM scalar

    kernel = _make_abmil_kernel(tile_n, D)

    grid_spec = pltpu.PrefetchScalarGridSpec(
        num_scalar_prefetch=1,
        grid=(num_tiles,),
        in_specs=[
            pl.BlockSpec((tile_n, F), lambda t, n: (t, 0)),         # x tile (f32)
            pl.BlockSpec((F, L), lambda t, n: (0, 0)),              # Wf (resident)
            pl.BlockSpec((1, L), lambda t, n: (0, 0)),              # bf
            pl.BlockSpec((L, 2 * D), lambda t, n: (0, 0)),          # W_vu fused
            pl.BlockSpec((1, 2 * D), lambda t, n: (0, 0)),          # b_vu
            pl.BlockSpec((1, D), lambda t, n: (0, 0)),              # wa row
            pl.BlockSpec((L, C), lambda t, n: (0, 0)),              # Wc
            pl.BlockSpec((1, C), lambda t, n: (0, 0)),              # bc
        ],
        out_specs=[
            pl.BlockSpec((1, C), lambda t, n: (0, 0)),              # logits
            pl.BlockSpec((1, n_pad), lambda t, n: (0, 0)),          # attention
        ],
        scratch_shapes=[
            pltpu.VMEM((1, 1), jnp.float32),        # running max
            pltpu.VMEM((1, 1), jnp.float32),        # running denom
            pltpu.VMEM((1, L), jnp.float32),        # running sum_i e_i * H_i
        ],
    )

    logits, attn_p = pl.pallas_call(
        kernel,
        out_shape=(
            jax.ShapeDtypeStruct((1, C), jnp.float32),
            jax.ShapeDtypeStruct((1, n_pad), jnp.float32),
        ),
        grid_spec=grid_spec,
        compiler_params=pltpu.CompilerParams(
            dimension_semantics=("arbitrary",),        # reduction over N tiles
            vmem_limit_bytes=32 * 1024 * 1024,         # safe on v5e/v6e/v7x
        ),
    )(n_valid, x.astype(jnp.float32), wf_c, bf_f, w_vu, b_vu, wa_row, wc_f, bc_f)

    return logits, attn_p[:, :N]


def init_params(key, in_features, L=512, D=128, num_classes=2):
    ks = jax.random.split(key, 10)

    def lin(kw, kb, fan_in, fan_out):
        bound = 1.0 / jnp.sqrt(jnp.float32(fan_in))
        w = jax.random.uniform(kw, (fan_in, fan_out), jnp.float32, -bound, bound)
        b = jax.random.uniform(kb, (1, fan_out), jnp.float32, -bound, bound)
        return w, b

    wf, bf = lin(ks[0], ks[1], in_features, L)
    wv, bv = lin(ks[2], ks[3], L, D)
    wu, bu = lin(ks[4], ks[5], L, D)
    wa, ba = lin(ks[6], ks[7], D, 1)
    wc, bc = lin(ks[8], ks[9], L, num_classes)
    return (wf, bf, wv, bv, wu, bu, wa, ba, wc, bc)


def reference_forward(x, params, mm_dtype=jnp.bfloat16):
    """Pure-JAX reference mirroring the kernel's bf16-matmul / f32-accum math."""
    (wf, bf, wv, bv, wu, bu, wa, ba, wc, bc) = params
    xb = x.astype(mm_dtype)
    H = jnp.dot(xb, wf.astype(mm_dtype),
                preferred_element_type=jnp.float32) + bf
    H = jnp.maximum(H, 0.0)
    Hb = H.astype(mm_dtype)
    A_V = jnp.tanh(jnp.dot(Hb, wv.astype(mm_dtype),
                           preferred_element_type=jnp.float32) + bv)
    A_U = jax.nn.sigmoid(jnp.dot(Hb, wu.astype(mm_dtype),
                                 preferred_element_type=jnp.float32) + bu)
    s = (A_V * A_U) @ wa + ba           # (N, 1)
    A = jax.nn.softmax(s.T, axis=1)     # (1, N)
    M = A @ H                           # (1, L)
    logits = M @ wc + bc                # (1, C)
    return logits, A


if __name__ == "__main__":
    key = jax.random.PRNGKey(0)
    k_x1, k_x2, k_p = jax.random.split(key, 3)

    in_features, L, D, num_classes = 32, 512, 128, 2
    params = init_params(k_p, in_features, L=L, D=D, num_classes=num_classes)

    # --- small bag (single partial tile, auto tile_n) ---------------------
    N1 = 8
    x1 = jax.random.normal(k_x1, (N1, in_features), jnp.float32)
    logits1, attn1 = attention_mil_forward(x1, params)
    logits1 = jax.block_until_ready(logits1)
    attn1 = jax.block_until_ready(attn1)

    ref_logits1, ref_attn1 = reference_forward(x1, params)
    assert logits1.shape == (1, num_classes) and attn1.shape == (1, N1)
    assert jnp.allclose(jnp.sum(attn1), 1.0, atol=1e-4)
    assert jnp.allclose(logits1, ref_logits1, atol=3e-3, rtol=3e-3)
    assert jnp.allclose(attn1, ref_attn1, atol=1e-3, rtol=1e-3)

    # --- larger bag, auto tile (single 768-row tile) -----------------------
    N2 = 600
    x2 = jax.random.normal(k_x2, (N2, in_features), jnp.float32)
    logits2, attn2 = attention_mil_forward(x2, params)
    logits2 = jax.block_until_ready(logits2)
    attn2 = jax.block_until_ready(attn2)

    ref_logits2, ref_attn2 = reference_forward(x2, params)
    assert logits2.shape == (1, num_classes) and attn2.shape == (1, N2)
    assert jnp.allclose(jnp.sum(attn2), 1.0, atol=1e-4)
    assert jnp.allclose(logits2, ref_logits2, atol=3e-3, rtol=3e-3)
    assert jnp.allclose(attn2, ref_attn2, atol=1e-3, rtol=1e-3)

    # --- same bag with explicit small tiles (exercises online-softmax grid) -
    logits3, attn3 = attention_mil_forward(x2, params, tile_n=256)
    logits3 = jax.block_until_ready(logits3)
    attn3 = jax.block_until_ready(attn3)
    assert jnp.allclose(jnp.sum(attn3), 1.0, atol=1e-4)
    assert jnp.allclose(logits3, ref_logits2, atol=3e-3, rtol=3e-3)
    assert jnp.allclose(attn3, ref_attn2, atol=1e-3, rtol=1e-3)

    print("KERNEL_OK")
</pallas_src>

<mosaic_0001>
module attributes {stable_mosaic.version = 11 : i64} {
  func.func @kernel(%arg0: i32, %arg1: memref<1xi32, #tpu.memory_space<smem>>, %arg2: memref<256x32xf32, #tpu.memory_space<vmem>>, %arg3: memref<32x512xbf16, #tpu.memory_space<vmem>>, %arg4: memref<1x512xf32, #tpu.memory_space<vmem>>, %arg5: memref<512x256xbf16, #tpu.memory_space<vmem>>, %arg6: memref<1x256xf32, #tpu.memory_space<vmem>>, %arg7: memref<1x128xf32, #tpu.memory_space<vmem>>, %arg8: memref<512x2xf32, #tpu.memory_space<vmem>>, %arg9: memref<1x2xf32, #tpu.memory_space<vmem>>, %arg10: memref<1x2xf32, #tpu.memory_space<vmem>>, %arg11: memref<1x256xf32, #tpu.memory_space<vmem>>, %arg12: memref<1x1xf32, #tpu.memory_space<vmem>>, %arg13: memref<1x1xf32, #tpu.memory_space<vmem>>, %arg14: memref<1x512xf32, #tpu.memory_space<vmem>>) attributes {dimension_semantics = [#tpu.dimension_semantics<arbitrary>], iteration_bounds = array<i64: 1>, scalar_prefetch = 1 : i64, scratch_operands = 3 : i64, tpu.core_type = #tpu.core_type<tc>, window_params = [{transform_indices = @transform_0, window_bounds = array<i64: 256, 32>}, {pipeline_mode = #tpu.pipeline_mode<synchronous>, transform_indices = @transform_1, window_bounds = array<i64: 32, 512>}, {pipeline_mode = #tpu.pipeline_mode<synchronous>, transform_indices = @transform_2, window_bounds = array<i64: 1, 512>}, {pipeline_mode = #tpu.pipeline_mode<synchronous>, transform_indices = @transform_3, window_bounds = array<i64: 512, 256>}, {pipeline_mode = #tpu.pipeline_mode<synchronous>, transform_indices = @transform_4, window_bounds = array<i64: 1, 256>}, {pipeline_mode = #tpu.pipeline_mode<synchronous>, transform_indices = @transform_5, window_bounds = array<i64: 1, 128>}, {pipeline_mode = #tpu.pipeline_mode<synchronous>, transform_indices = @transform_6, window_bounds = array<i64: 512, 2>}, {pipeline_mode = #tpu.pipeline_mode<synchronous>, transform_indices = @transform_7, window_bounds = array<i64: 1, 2>}, {pipeline_mode = #tpu.pipeline_mode<synchronous>, transform_indices = @transform_8, window_bounds = array<i64: 1, 2>}, {pipeline_mode = #tpu.pipeline_mode<synchronous>, transform_indices = @transform_9, window_bounds = array<i64: 1, 256>}]} {
    %c0_i32 = arith.constant 0 : i32
    %0 = arith.cmpi eq, %arg0, %c0_i32 : i32
    %1 = arith.extui %0 : i1 to i32
    %c0_i32_0 = arith.constant 0 : i32
    %2 = arith.cmpi ne, %1, %c0_i32_0 : i32
    scf.if %2 {
      %cst_40 = arith.constant -1.000000e+30 : f32
      %86 = vector.broadcast %cst_40 : f32 to vector<1x1xf32>
      %c0_41 = arith.constant 0 : index
      %c0_42 = arith.constant 0 : index
      %87 = vector.load %arg12[%c0_41, %c0_42] : memref<1x1xf32, #tpu.memory_space<vmem>>, vector<1x1xf32>
      tpu.vector_store %arg12[%c0_41, %c0_42], %86 {strides = array<i32>} : memref<1x1xf32, #tpu.memory_space<vmem>>, vector<1x1xf32>,
      %cst_43 = arith.constant 0.000000e+00 : f32
      %88 = vector.broadcast %cst_43 : f32 to vector<1x1xf32>
      %c0_44 = arith.constant 0 : index
      %c0_45 = arith.constant 0 : index
      %89 = vector.load %arg13[%c0_44, %c0_45] : memref<1x1xf32, #tpu.memory_space<vmem>>, vector<1x1xf32>
      tpu.vector_store %arg13[%c0_44, %c0_45], %88 {strides = array<i32>} : memref<1x1xf32, #tpu.memory_space<vmem>>, vector<1x1xf32>,
      %cst_46 = arith.constant 0.000000e+00 : f32
      %90 = vector.broadcast %cst_46 : f32 to vector<1x512xf32>
      %c0_47 = arith.constant 0 : index
      %c0_48 = arith.constant 0 : index
      %91 = vector.load %arg14[%c0_47, %c0_48] : memref<1x512xf32, #tpu.memory_space<vmem>>, vector<1x512xf32>
      tpu.vector_store %arg14[%c0_47, %c0_48], %90 {strides = array<i32>} : memref<1x512xf32, #tpu.memory_space<vmem>>, vector<1x512xf32>,
    } else {
    }
    %c0 = arith.constant 0 : index
    %3 = memref.load %arg1[%c0] : memref<1xi32, #tpu.memory_space<smem>>
    %c256_i32 = arith.constant 256 : i32
    %4 = arith.muli %arg0, %c256_i32 : i32
    %5 = tpu.iota {dimensions = array<i32: 0>} : vector<256x1xi32>
    %6 = vector.broadcast %4 : i32 to vector<256x1xi32>
    %7 = arith.addi %6, %5 : vector<256x1xi32>
    %8 = vector.broadcast %3 : i32 to vector<256x1xi32>
    %9 = arith.cmpi slt, %7, %8 : vector<256x1xi32>
    %c0_1 = arith.constant 0 : index
    %c0_2 = arith.constant 0 : index
    %10 = vector.load %arg2[%c0_1, %c0_2] : memref<256x32xf32, #tpu.memory_space<vmem>>, vector<256x32xf32>
    %cst = arith.constant 0.000000e+00 : f32
    %11 = vector.shape_cast %9 : vector<256x1xi1> to vector<256x1xi1>
    %12 = vector.broadcast %11 : vector<256x1xi1> to vector<256x32xi1>
    %13 = vector.broadcast %cst : f32 to vector<256x32xf32>
    %14 = arith.select %12, %10, %13 : vector<256x32xi1>, vector<256x32xf32>
    %15 = arith.truncf %14 : vector<256x32xf32> to vector<256x32xbf16>
    %c0_3 = arith.constant 0 : index
    %c0_4 = arith.constant 0 : index
    %16 = vector.load %arg3[%c0_3, %c0_4] : memref<32x512xbf16, #tpu.memory_space<vmem>>, vector<32x512xbf16>
    %cst_5 = arith.constant dense<0.000000e+00> : vector<256x512xf32>
    %17 = tpu.matmul %15, %16, %cst_5 {dimension_numbers = #tpu.dot_dimension_numbers<[1], [0], [0], [1], [0, 0, 1, 1], [], []>} : vector<256x32xbf16>, vector<32x512xbf16>, vector<256x512xf32> -> vector<256x512xf32>
    %c0_6 = arith.constant 0 : index
    %c0_7 = arith.constant 0 : index
    %18 = vector.load %arg4[%c0_6, %c0_7] : memref<1x512xf32, #tpu.memory_space<vmem>>, vector<1x512xf32>
    %19 = vector.broadcast %18 : vector<1x512xf32> to vector<256x512xf32>
    %20 = arith.addf %17, %19 : vector<256x512xf32>
    %cst_8 = arith.constant 0.000000e+00 : f32
    %21 = vector.broadcast %cst_8 : f32 to vector<256x512xf32>
    %22 = arith.maximumf %20, %21 : vector<256x512xf32>
    %23 = arith.truncf %22 : vector<256x512xf32> to vector<256x512xbf16>
    %c0_9 = arith.constant 0 : index
    %c0_10 = arith.constant 0 : index
    %24 = vector.load %arg5[%c0_9, %c0_10] : memref<512x256xbf16, #tpu.memory_space<vmem>>, vector<512x256xbf16>
    %cst_11 = arith.constant dense<0.000000e+00> : vector<256x256xf32>
    %25 = tpu.matmul %23, %24, %cst_11 {dimension_numbers = #tpu.dot_dimension_numbers<[1], [0], [0], [1], [0, 0, 1, 1], [], []>} : vector<256x512xbf16>, vector<512x256xbf16>, vector<256x256xf32> -> vector<256x256xf32>
    %c0_12 = arith.constant 0 : index
    %c0_13 = arith.constant 0 : index
    %26 = vector.load %arg6[%c0_12, %c0_13] : memref<1x256xf32, #tpu.memory_space<vmem>>, vector<1x256xf32>
    %27 = vector.broadcast %26 : vector<1x256xf32> to vector<256x256xf32>
    %28 = arith.addf %25, %27 : vector<256x256xf32>
    %29 = vector.extract_strided_slice %28 {offsets = [0, 0], sizes = [256, 128], strides = [1, 1]} : vector<256x256xf32> to vector<256x128xf32>
    %30 = math.tanh %29 : vector<256x128xf32>
    %31 = vector.extract_strided_slice %28 {offsets = [0, 128], sizes = [256, 128], strides = [1, 1]} : vector<256x256xf32> to vector<256x128xf32>
    %cst_14 = arith.constant 5.000000e-01 : f32
    %32 = vector.broadcast %cst_14 : f32 to vector<256x128xf32>
    %33 = arith.mulf %32, %31 : vector<256x128xf32>
    %34 = math.tanh %33 : vector<256x128xf32>
    %cst_15 = arith.constant 1.000000e+00 : f32
    %35 = vector.broadcast %cst_15 : f32 to vector<256x128xf32>
    %36 = arith.addf %34, %35 : vector<256x128xf32>
    %cst_16 = arith.constant 5.000000e-01 : f32
    %37 = vector.broadcast %cst_16 : f32 to vector<256x128xf32>
    %38 = arith.mulf %37, %36 : vector<256x128xf32>
    %39 = arith.mulf %30, %38 : vector<256x128xf32>
    %c0_17 = arith.constant 0 : index
    %c0_18 = arith.constant 0 : index
    %40 = vector.load %arg7[%c0_17, %c0_18] : memref<1x128xf32, #tpu.memory_space<vmem>>, vector<1x128xf32>
    %41 = vector.broadcast %40 : vector<1x128xf32> to vector<256x128xf32>
    %42 = arith.mulf %39, %41 : vector<256x128xf32>
    %cst_19 = arith.constant dense<0.000000e+00> : vector<256xf32>
    %43 = vector.multi_reduction <add>, %42, %cst_19 [1] : vector<256x128xf32> to vector<256xf32>
    %44 = vector.shape_cast %43 : vector<256xf32> to vector<256x1xf32>
    %cst_20 = arith.constant -1.000000e+30 : f32
    %45 = vector.broadcast %cst_20 : f32 to vector<256x1xf32>
    %46 = arith.select %9, %44, %45 : vector<256x1xi1>, vector<256x1xf32>
    %c256_i32_21 = arith.constant 256 : i32
    %47 = arith.muli %arg0, %c256_i32_21 : i32
    %48 = tpu.assume_multiple %47, 128 : i32
    %49 = tpu.transpose %46, [1, 0] : vector<256x1xf32> -> vector<1x256xf32>
    %c0_22 = arith.constant 0 : index
    %50 = arith.index_cast %48 : i32 to index
    %51 = vector.load %arg11[%c0_22, %50] : memref<1x256xf32, #tpu.memory_space<vmem>>, vector<1x256xf32>
    tpu.vector_store %arg11[%c0_22, %50], %49 {strides = array<i32>} : memref<1x256xf32, #tpu.memory_space<vmem>>, vector<1x256xf32>,
    %c0_23 = arith.constant 0 : index
    %c0_24 = arith.constant 0 : index
    %52 = vector.load %arg12[%c0_23, %c0_24] : memref<1x1xf32, #tpu.memory_space<vmem>>, vector<1x1xf32>
    %53 = vector.shape_cast %46 : vector<256x1xf32> to vector<1x256x1xf32>
    %cst_25 = arith.constant dense<0xFF800000> : vector<1xf32>
    %54 = vector.multi_reduction <maximumf>, %53, %cst_25 [1, 2] : vector<1x256x1xf32> to vector<1xf32>
    %55 = vector.shape_cast %54 : vector<1xf32> to vector<1x1x1xf32>
    %56 = vector.extract %55[0, 0, 0] : f32 from vector<1x1x1xf32>
    %57 = vector.broadcast %56 : f32 to vector<1x1xf32>
    %58 = arith.maximumf %52, %57 : vector<1x1xf32>
    %59 = arith.subf %52, %58 : vector<1x1xf32>
    %60 = math.exp %59 : vector<1x1xf32>
    %61 = vector.broadcast %58 : vector<1x1xf32> to vector<256x1xf32>
    %62 = arith.subf %46, %61 : vector<256x1xf32>
    %63 = math.exp %62 : vector<256x1xf32>
    %c0_26 = arith.constant 0 : index
    %c0_27 = arith.constant 0 : index
    %64 = vector.load %arg13[%c0_26, %c0_27] : memref<1x1xf32, #tpu.memory_space<vmem>>, vector<1x1xf32>
    %65 = arith.mulf %60, %64 : vector<1x1xf32>
    %66 = vector.shape_cast %63 : vector<256x1xf32> to vector<1x256x1xf32>
    %cst_28 = arith.constant dense<0.000000e+00> : vector<1xf32>
    %67 = vector.multi_reduction <add>, %66, %cst_28 [1, 2] : vector<1x256x1xf32> to vector<1xf32>
    %68 = vector.shape_cast %67 : vector<1xf32> to vector<1x1x1xf32>
    %69 = vector.extract %68[0, 0, 0] : f32 from vector<1x1x1xf32>
    %70 = vector.broadcast %69 : f32 to vector<1x1xf32>
    %71 = arith.addf %65, %70 : vector<1x1xf32>
    %c0_29 = arith.constant 0 : index
    %c0_30 = arith.constant 0 : index
    %72 = vector.load %arg13[%c0_29, %c0_30] : memref<1x1xf32, #tpu.memory_space<vmem>>, vector<1x1xf32>
    tpu.vector_store %arg13[%c0_29, %c0_30], %71 {strides = array<i32>} : memref<1x1xf32, #tpu.memory_space<vmem>>, vector<1x1xf32>,
    %c0_31 = arith.constant 0 : index
    %c0_32 = arith.constant 0 : index
    %73 = vector.load %arg14[%c0_31, %c0_32] : memref<1x512xf32, #tpu.memory_space<vmem>>, vector<1x512xf32>
    %74 = vector.broadcast %60 : vector<1x1xf32> to vector<1x512xf32>
    %75 = arith.mulf %74, %73 : vector<1x512xf32>
    %76 = vector.broadcast %63 : vector<256x1xf32> to vector<256x512xf32>
    %77 = arith.mulf %76, %22 : vector<256x512xf32>
    %cst_33 = arith.constant dense<0.000000e+00> : vector<512xf32>
    %78 = vector.multi_reduction <add>, %77, %cst_33 [0] : vector<256x512xf32> to vector<512xf32>
    %79 = vector.shape_cast %78 : vector<512xf32> to vector<1x512xf32>
    %80 = arith.addf %75, %79 : vector<1x512xf32>
    %c0_34 = arith.constant 0 : index
    %c0_35 = arith.constant 0 : index
    %81 = vector.load %arg14[%c0_34, %c0_35] : memref<1x512xf32, #tpu.memory_space<vmem>>, vector<1x512xf32>
    tpu.vector_store %arg14[%c0_34, %c0_35], %80 {strides = array<i32>} : memref<1x512xf32, #tpu.memory_space<vmem>>, vector<1x512xf32>,
    %c0_36 = arith.constant 0 : index
    %c0_37 = arith.constant 0 : index
    %82 = vector.load %arg12[%c0_36, %c0_37] : memref<1x1xf32, #tpu.memory_space<vmem>>, vector<1x1xf32>
    tpu.vector_store %arg12[%c0_36, %c0_37], %58 {strides = array<i32>} : memref<1x1xf32, #tpu.memory_space<vmem>>, vector<1x1xf32>,
    %c0_i32_38 = arith.constant 0 : i32
    %83 = arith.cmpi eq, %arg0, %c0_i32_38 : i32
    %84 = arith.extui %83 : i1 to i32
    %c0_i32_39 = arith.constant 0 : i32
    %85 = arith.cmpi ne, %84, %c0_i32_39 : i32
    scf.if %85 {
      %c0_40 = arith.constant 0 : index
      %c0_41 = arith.constant 0 : index
      %86 = vector.load %arg13[%c0_40, %c0_41] : memref<1x1xf32, #tpu.memory_space<vmem>>, vector<1x1xf32>
      %87 = tpu.reciprocal %86 : vector<1x1xf32> -> vector<1x1xf32>
      %c0_42 = arith.constant 0 : index
      %c0_43 = arith.constant 0 : index
      %88 = vector.load %arg11[%c0_42, %c0_43] : memref<1x256xf32, #tpu.memory_space<vmem>>, vector<1x256xf32>
      %c0_44 = arith.constant 0 : index
      %c0_45 = arith.constant 0 : index
      %89 = vector.load %arg12[%c0_44, %c0_45] : memref<1x1xf32, #tpu.memory_space<vmem>>, vector<1x1xf32>
      %90 = vector.broadcast %89 : vector<1x1xf32> to vector<1x256xf32>
      %91 = arith.subf %88, %90 : vector<1x256xf32>
      %92 = math.exp %91 : vector<1x256xf32>
      %93 = vector.broadcast %87 : vector<1x1xf32> to vector<1x256xf32>
      %94 = arith.mulf %92, %93 : vector<1x256xf32>
      %c0_46 = arith.constant 0 : index
      %c0_47 = arith.constant 0 : index
      %95 = vector.load %arg11[%c0_46, %c0_47] : memref<1x256xf32, #tpu.memory_space<vmem>>, vector<1x256xf32>
      tpu.vector_store %arg11[%c0_46, %c0_47], %94 {strides = array<i32>} : memref<1x256xf32, #tpu.memory_space<vmem>>, vector<1x256xf32>,
      %c0_48 = arith.constant 0 : index
      %c0_49 = arith.constant 0 : index
      %96 = vector.load %arg14[%c0_48, %c0_49] : memref<1x512xf32, #tpu.memory_space<vmem>>, vector<1x512xf32>
      %97 = vector.broadcast %87 : vector<1x1xf32> to vector<1x512xf32>
      %98 = arith.mulf %96, %97 : vector<1x512xf32>
      %c0_50 = arith.constant 0 : index
      %c0_51 = arith.constant 0 : index
      %99 = vector.load %arg8[%c0_50, %c0_51] : memref<512x2xf32, #tpu.memory_space<vmem>>, vector<512x2xf32>
      %cst_52 = arith.constant dense<0.000000e+00> : vector<1x2xf32>
      %100 = tpu.matmul %98, %99, %cst_52 {dimension_numbers = #tpu.dot_dimension_numbers<[1], [0], [0], [1], [0, 0, 1, 1], [], []>} : vector<1x512xf32>, vector<512x2xf32>, vector<1x2xf32> -> vector<1x2xf32>
      %c0_53 = arith.constant 0 : index
      %c0_54 = arith.constant 0 : index
      %101 = vector.load %arg9[%c0_53, %c0_54] : memref<1x2xf32, #tpu.memory_space<vmem>>, vector<1x2xf32>
      %102 = arith.addf %100, %101 : vector<1x2xf32>
      %c0_55 = arith.constant 0 : index
      %c0_56 = arith.constant 0 : index
      %103 = vector.load %arg10[%c0_55, %c0_56] : memref<1x2xf32, #tpu.memory_space<vmem>>, vector<1x2xf32>
      tpu.vector_store %arg10[%c0_55, %c0_56], %102 {strides = array<i32>} : memref<1x2xf32, #tpu.memory_space<vmem>>, vector<1x2xf32>,
    } else {
    }
    return
  }
  func.func @transform_0(%arg0: i32, %arg1: memref<1xi32, #tpu.memory_space<smem>>) -> (i32, i32) {
    %c0_i32 = arith.constant 0 : i32
    %c0_i32_0 = arith.constant 0 : i32
    return %arg0, %c0_i32 : i32, i32
  }
  func.func @transform_1(%arg0: i32, %arg1: memref<1xi32, #tpu.memory_space<smem>>) -> (i32, i32) {
    %c0_i32 = arith.constant 0 : i32
    %c0_i32_0 = arith.constant 0 : i32
    %c0_i32_1 = arith.constant 0 : i32
    return %c0_i32, %c0_i32_0 : i32, i32
  }
  func.func @transform_2(%arg0: i32, %arg1: memref<1xi32, #tpu.memory_space<smem>>) -> (i32, i32) {
    %c0_i32 = arith.constant 0 : i32
    %c0_i32_0 = arith.constant 0 : i32
    %c0_i32_1 = arith.constant 0 : i32
    return %c0_i32, %c0_i32_0 : i32, i32
  }
  func.func @transform_3(%arg0: i32, %arg1: memref<1xi32, #tpu.memory_space<smem>>) -> (i32, i32) {
    %c0_i32 = arith.constant 0 : i32
    %c0_i32_0 = arith.constant 0 : i32
    %c0_i32_1 = arith.constant 0 : i32
    return %c0_i32, %c0_i32_0 : i32, i32
  }
  func.func @transform_4(%arg0: i32, %arg1: memref<1xi32, #tpu.memory_space<smem>>) -> (i32, i32) {
    %c0_i32 = arith.constant 0 : i32
    %c0_i32_0 = arith.constant 0 : i32
    %c0_i32_1 = arith.constant 0 : i32
    return %c0_i32, %c0_i32_0 : i32, i32
  }
  func.func @transform_5(%arg0: i32, %arg1: memref<1xi32, #tpu.memory_space<smem>>) -> (i32, i32) {
    %c0_i32 = arith.constant 0 : i32
    %c0_i32_0 = arith.constant 0 : i32
    %c0_i32_1 = arith.constant 0 : i32
    return %c0_i32, %c0_i32_0 : i32, i32
  }
  func.func @transform_6(%arg0: i32, %arg1: memref<1xi32, #tpu.memory_space<smem>>) -> (i32, i32) {
    %c0_i32 = arith.constant 0 : i32
    %c0_i32_0 = arith.constant 0 : i32
    %c0_i32_1 = arith.constant 0 : i32
    return %c0_i32, %c0_i32_0 : i32, i32
  }
  func.func @transform_7(%arg0: i32, %arg1: memref<1xi32, #tpu.memory_space<smem>>) -> (i32, i32) {
    %c0_i32 = arith.constant 0 : i32
    %c0_i32_0 = arith.constant 0 : i32
    %c0_i32_1 = arith.constant 0 : i32
    return %c0_i32, %c0_i32_0 : i32, i32
  }
  func.func @transform_8(%arg0: i32, %arg1: memref<1xi32, #tpu.memory_space<smem>>) -> (i32, i32) {
    %c0_i32 = arith.constant 0 : i32
    %c0_i32_0 = arith.constant 0 : i32
    %c0_i32_1 = arith.constant 0 : i32
    return %c0_i32, %c0_i32_0 : i32, i32
  }
  func.func @transform_9(%arg0: i32, %arg1: memref<1xi32, #tpu.memory_space<smem>>) -> (i32, i32) {
    %c0_i32 = arith.constant 0 : i32
    %c0_i32_0 = arith.constant 0 : i32
    %c0_i32_1 = arith.constant 0 : i32
    return %c0_i32, %c0_i32_0 : i32, i32
  }
}

</mosaic_0001>

<bundles_post_ra>
// kernel: tpu_custom_call.1
= control target key start
LH: loop header
LB: loop body
LE: loop exit
PB: predicated region body
PF: predicated region fallthrough
CT: control target
= control target key end

     0   :  { %17 = vsyncpa [#allocation8], 0  ;;  %s6810_s0 = inlined_call_operand.<no memory space> [shape: s32[1], index: 0, kind: input, shape index: {}]   ;;  %s6811_s1 = inlined_call_operand.vmem [shape: f32[8,32], index: 1, kind: input, shape index: {}]   ;;  %s6812_s2 = inlined_call_operand.hbm [shape: bf16[32,512], index: 2, kind: input, shape index: {}]   ;;  %s6813_s3 = inlined_call_operand.vmem [shape: f32[1,512], index: 3, kind: input, shape index: {}]   ;;  %s6814_s4 = inlined_call_operand.vmem [shape: bf16[512,256], index: 4, kind: input, shape index: {}]   ;;  %s6815_s5 = inlined_call_operand.vmem [shape: f32[1,256], index: 5, kind: input, shape index: {}]   ;;  %s6816_s6 = inlined_call_operand.vmem [shape: f32[1,128], index: 6, kind: input, shape index: {}]   ;;  %s6817_s7 = inlined_call_operand.vmem [shape: f32[512,2], index: 7, kind: input, shape index: {}]   ;;  %s6818_s8 = inlined_call_operand.vmem [shape: f32[1,2], index: 8, kind: input, shape index: {}]   ;;  %s6819_s9 = inlined_call_operand.hbm [shape: f32[1,2], index: 9, kind: output, shape index: {0}]   ;;  %s6820_s10 = inlined_call_operand.hbm [shape: f32[1,256], index: 10, kind: output, shape index: {1}]  }
   0x1   :  { %18 = vsyncpa [#allocation9], 0 }
   0x2   :  { %19 = vsyncpa [#allocation12], 0  ;;  %s3991_s13 = smov [#allocation7]   ;;  %s3919_s17 = scalar_lea.hbm %s6812_s2, 1024 }
   0x3   :  { %s27_s14 = sshll.u32 %s3991_s13, 4  ;;  %p3920_p0 = scmp.ne.s32.totalorder %s6812_s2, %s3919_s17  ;;  %s28_s14 = int_to_ptr.vmem [resolvable:$true] %s27_s14 }
   0x4   :  { %p3923_p1 = scmp.lt.u32.totalorder %s3919_s17, %s6812_s2 }
   0x6   :  { %p3925_p2 = pnand %p3923_p1, %p3920_p0 }
   0x8   :  { %3928 = shalt.err (!%p3925_p2)
}
   0x9   :  { %s3929_s22 = scalar_lea.vmem %s28_s14, 1024  ;;  %p3934_p4 = scmp.lt.s32.totalorder %s28_s14, %s28_s14 }
   0xa   :  { %p3930_p3 = scmp.ne.s32.totalorder %s28_s14, %s3929_s22  ;;  %p3935_p5 = scmp.lt.s32.totalorder %s3929_s22, %s3929_s22 }
   0xc   :  { %p3936_p6 = por %p3935_p5, %p3934_p4 }
   0xe   :  { %p3937_p7 = pnand %p3936_p6, %p3930_p3 }
  0x10   :  { %3940 = shalt.err (!%p3937_p7)
}
  0x11   :  { %s3992_s23 = smov 256   ;;  %s3993_s24 = smov 16  }
  0x12   :  { %33 = dma.hbm_to_vmem [thread:$0]  %s6812_s2, 1024, %s28_s14, [#allocation8], %s3992_s23, %s3992_s23, %s3993_s24  }
  0x13   :  { %3985 = dma.done.wait [#allocation8], 1024  }
  0x14   :  { %3986 = vsyncadd [#allocation8], 4294966272  ;;  %v6836_v0 = vlaneseq  ;;  %v6838_v1 = vmov 0   ;;  %v3613_v4 = vld [vmem:[#allocation7 + $0x4] ss:$16 sps:$4 sm:$0xff]   ;;  %v4080_v5 = vstv %s6810_s0  ;;  %v163_v15 = vld [vmem:[%s6811_s1] sm:$0xff] }
  0x15   :  { %458 = vmatprep.mubr.bf16.mxu0 %v6838_v1  ;;  %651 = vmatprep.mubr.bf16.mxu1 %v6838_v1  ;;  %v3615_v6 = vld [vmem:[#allocation7] ss:$16 sps:$4 sm:$0xff]   ;;  %v3616_v7 = vld [vmem:[#allocation7 + $0xc] ss:$16 sps:$4 sm:$0xff]   ;;  %v3618_v8 = vld [vmem:[#allocation7 + $0x8] ss:$16 sps:$4 sm:$0xff]  }
  0x16   :  { %v4070_v2 = vshrl.u32 %v6836_v0, 7  ;;  %3611 = vset.pattern.permute.xlu1 %v6838_v1  ;;  %3612 = vset.pattern.permute.xlu0 %v6838_v1  ;;  %v3619_v9 = vld [vmem:[#allocation7 + $0x24] ss:$16 sps:$4 sm:$0xff]   ;;  %v3621_v10 = vld [vmem:[#allocation7 + $0x20] ss:$16 sps:$4 sm:$0xff]   ;;  %vm377_vm2 = vcmask 261120  }
  0x17   :  { %426 = vmatprep.subr.bf16.mxu0 %v3613_v4  ;;  %619 = vmatprep.subr.bf16.mxu1 %v3616_v7  ;;  %v3622_v11 = vld [vmem:[#allocation7 + $0x2c] ss:$16 sps:$4 sm:$0xff]   ;;  %v3624_v14 = vld [vmem:[#allocation7 + $0x28] ss:$16 sps:$4 sm:$0xff]  }
  0x18   :  { %7095 = vst [vmem:[#allocation16_spill] sm:$0xff] %v4070_v2  ;;  %v4075_v3 = vadd.s32 8, %v4070_v2  ;;  %427 = vmatpush1.bf16.msra.mxu0 %v3615_v6  ;;  %vm131_vm0 = vcmp.lt.s32.totalorder %v4070_v2, %v4080_v5  ;;  %v4087_v12 = vadd.s32 16, %v4070_v2  ;;  %v4090_v13 = vadd.s32 24, %v4070_v2  ;;  %620 = vmatpush1.bf16.msra.mxu1 %v3618_v8  ;;  %v164_v16 = vld [vmem:[%s6811_s1 + $0x8] sm:$0xff]  ;;  %v165_v20 = vld [vmem:[%s6811_s1 + $0x10] sm:$0xff] }
  0x19   :  { %428 = vmatprep.subr.bf16.mxu0 %v3619_v9  ;;  %621 = vmatprep.subr.bf16.mxu1 %v3622_v11  ;;  %v259_v17 = vsel %vm131_vm0, %v163_v15, 0.0  ;;  %v166_v21 = vld [vmem:[%s6811_s1 + $0x18] sm:$0xff]  ;;  %v4124_v24 = vadd.s32 32, %v4070_v2  ;;  %v4127_v25 = vadd.s32 40, %v4070_v2  ;;  %v3625_v27 = vld [vmem:[%s6814_s4] ss:$8 sps:$4 sm:$0xff]  }
  0x1a   :  { %7096 = vst [vmem:[#allocation17_spill] sm:$0xff] %v4075_v3  ;;  %vm132_vm1 = vcmp.lt.s32.totalorder %v4075_v3, %v4080_v5  ;;  %vm133_vm3 = vcmp.lt.s32.totalorder %v4087_v12, %v4080_v5  ;;  %vm134_vm4 = vcmp.lt.s32.totalorder %v4090_v13, %v4080_v5  ;;  %v3627_v28 = vld [vmem:[%s6814_s4 + $0x4] ss:$8 sps:$4 sm:$0xff]   ;;  %v3630_v31 = vld [vmem:[%s6814_s4 + $0x14] ss:$8 sps:$4 sm:$0xff]   ;;  %v4162_v35 = vadd.s32 48, %v4070_v2 }
  0x1b   :  { %v260_v18 = vsel %vm132_vm1, %v164_v16, 0.0  ;;  %v261_v22 = vsel %vm133_vm3, %v165_v20, 0.0  ;;  %v262_v23 = vsel %vm134_vm4, %v166_v21, 0.0  ;;  %7097 = vst [vmem:[#allocation18_spill] sm:$0xff] %v4124_v24  ;;  %7098 = vst [vmem:[#allocation19_spill] sm:$0xff] %v4127_v25  ;;  %vm135_vm5 = vcmp.lt.s32.totalorder %v4124_v24, %v4080_v5  ;;  %v167_v29 = vld [vmem:[%s6811_s1 + $0x20] sm:$0xff] }
  0x1c   :  { %429 = vmatpush1.bf16.msra.mxu0 %v3621_v10  ;;  %v291_v19 = vpack.c.bf16 %v260_v18, %v259_v17  ;;  %622 = vmatpush1.bf16.msra.mxu1 %v3624_v14  ;;  %v292_v26 = vpack.c.bf16 %v262_v23, %v261_v22  ;;  %vm6826_vm6 = vcmp.lt.s32.totalorder %v4127_v25, %v4080_v5  ;;  %v168_v30 = vld [vmem:[%s6811_s1 + $0x28] sm:$0xff]  ;;  %v263_v32 = vsel %vm135_vm5, %v167_v29, 0.0  ;;  %v3628_v34 = vld [vmem:[%s6814_s4 + $0x10] ss:$8 sps:$4 sm:$0xff]   ;;  %v3636_v42 = vld [vmem:[%s6814_s4 + $0x34] ss:$8 sps:$4 sm:$0xff]  }
  0x1d   :  { %1400 = vmatprep.subr.bf16.mxu0 %v3627_v28  ;;  %v264_v33 = vsel %vm6826_vm6, %v168_v30, 0.0  ;;  %v4165_v36 = vadd.s32 56, %v4070_v2  ;;  %v3633_v37 = vld [vmem:[%s6814_s4 + $0x24] ss:$8 sps:$4 sm:$0xff]   ;;  %v169_v39 = vld [vmem:[%s6811_s1 + $0x30] sm:$0xff]  ;;  %vm137_vm7 = vcmp.lt.s32.totalorder %v4162_v35, %v4080_v5  ;;  %v170_v41 = vld [vmem:[%s6811_s1 + $0x38] sm:$0xff] }
  0x1e   :  { %v293_v38 = vpack.c.bf16 %v264_v33, %v263_v32  ;;  %v3631_v40 = vld [vmem:[%s6814_s4 + $0x20] ss:$8 sps:$4 sm:$0xff]   ;;  %v265_v43 = vsel %vm137_vm7, %v169_v39, 0.0  ;;  %v3634_v45 = vld [vmem:[%s6814_s4 + $0x30] ss:$8 sps:$4 sm:$0xff]   ;;  %v4200_v46 = vadd.s32 64, %v4070_v2 }
  0x1f   :  { %3207 = vmatmul.mubr.msk.bf16.vlgmr.msra.gmra.mrb[0].mxu0 %vm377_vm2, %v291_v19  ;;  %3223 = vmatmul.mubr.msk.bf16.vlgmr.msra.gmra.mrb[0].mxu1 %vm377_vm2, %v291_v19  ;;  %vm138_vm8 = vcmp.lt.s32.totalorder %v4165_v36, %v4080_v5  ;;  %v4203_v47 = vadd.s32 72, %v4070_v2  ;;  %v3639_v48 = vld [vmem:[%s6814_s4 + $0x44] ss:$8 sps:$4 sm:$0xff]   ;;  %v4212_v49 = vld [vmem:[%s6814_s4 + $0x100] ss:$8 sps:$4 sm:$0xff]   ;;  %v4266_v62 = vadd.s32 80, %v4070_v2 }
  0x20   :  { %468 = vmatprep.mubr.bf16.mxu0 %v6838_v1  ;;  %661 = vmatprep.mubr.bf16.mxu1 %v6838_v1  ;;  %v266_v44 = vsel %vm138_vm8, %v170_v41, 0.0  ;;  %7099 = vst [vmem:[#allocation20_spill] sm:$0xff] %v4200_v46  ;;  %v4217_v50 = vld [vmem:[%s6814_s4 + $0x104] ss:$8 sps:$4 sm:$0xff]   ;;  %v3637_v54 = vld [vmem:[%s6814_s4 + $0x40] ss:$8 sps:$4 sm:$0xff]   ;;  %vm139_vm9 = vcmp.lt.s32.totalorder %v4200_v46, %v4080_v5 }
  0x21   :  { %1401 = vmatpush1.bf16.msra.mxu0 %v3625_v27  ;;  %7100 = vst [vmem:[#allocation21_spill] sm:$0xff] %v4203_v47  ;;  %v294_v51 = vpack.c.bf16 %v266_v44, %v265_v43  ;;  %v171_v52 = vld [vmem:[%s6811_s1 + $0x40] sm:$0xff]  ;;  %v172_v53 = vld [vmem:[%s6811_s1 + $0x48] sm:$0xff]  ;;  %v3642_v55 = vld [vmem:[%s6814_s4 + $0x54] ss:$8 sps:$4 sm:$0xff]   ;;  %3438 = vmatprep.subr.bf16.mxu1 %v4217_v50  ;;  %vm6823_vm10 = vcmp.lt.s32.totalorder %v4203_v47, %v4080_v5  ;;  %v4269_v63 = vadd.s32 88, %v4070_v2 }
  0x22   :  { %1402 = vmatprep.subr.bf16.mxu0 %v3630_v31  ;;  %3454 = vmatpush1.bf16.msra.mxu1 %v4212_v49  ;;  %v4240_v56 = vld [vmem:[%s6814_s4 + $0x114] ss:$8 sps:$4 sm:$0xff]   ;;  %v4245_v57 = vld [vmem:[%s6814_s4 + $0x110] ss:$8 sps:$4 sm:$0xff]   ;;  %v4252_v58 = vld [vmem:[%s6814_s4 + $0x124] ss:$8 sps:$4 sm:$0xff]   ;;  %vm141_vm11 = vcmp.lt.s32.totalorder %v4266_v62, %v4080_v5 }
  0x23   :  { %3439 = vmatprep.subr.bf16.mxu1 %v4240_v56  ;;  %v267_v59 = vsel %vm139_vm9, %v171_v52, 0.0  ;;  %v268_v60 = vsel %vm6823_vm10, %v172_v53, 0.0  ;;  %v3640_v61 = vld [vmem:[%s6814_s4 + $0x50] ss:$8 sps:$4 sm:$0xff]   ;;  %7101 = vst [vmem:[#allocation22_spill] sm:$0xff] %v4266_v62  ;;  %7102 = vst [vmem:[#allocation23_spill] sm:$0xff] %v4269_v63  ;;  %vm142_vm12 = vcmp.lt.s32.totalorder %v4269_v63, %v4080_v5 }
  0x24   :  { %v3645_v4 = vld [vmem:[%s6814_s4 + $0x64] ss:$8 sps:$4 sm:$0xff]   ;;  %v4279_v6 = vld [vmem:[%s6814_s4 + $0x120] ss:$8 sps:$4 sm:$0xff]   ;;  %v295_v7 = vpack.c.bf16 %v268_v60, %v267_v59  ;;  %v173_v8 = vld [vmem:[%s6811_s1 + $0x50] sm:$0xff]  ;;  %v4328_v20 = vadd.s32 96, %v4070_v2 }
  0x25   :  { %1403 = vmatpush1.bf16.msra.mxu0 %v3628_v34  ;;  %v174_v9 = vld [vmem:[%s6811_s1 + $0x58] sm:$0xff]  ;;  %v3643_v11 = vld [vmem:[%s6814_s4 + $0x60] ss:$8 sps:$4 sm:$0xff]   ;;  %v4314_v16 = vld [vmem:[%s6814_s4 + $0x144] ss:$8 sps:$4 sm:$0xff]   ;;  %v269_v17 = vsel %vm141_vm11, %v173_v8, 0.0 }
  0x26   :  { %1404 = vmatprep.subr.bf16.mxu0 %v3633_v37  ;;  %3455 = vmatpush1.bf16.msra.mxu1 %v4245_v57  ;;  %v4291_v10 = vld [vmem:[%s6814_s4 + $0x134] ss:$8 sps:$4 sm:$0xff]   ;;  %v4307_v15 = vld [vmem:[%s6814_s4 + $0x130] ss:$8 sps:$4 sm:$0xff]   ;;  %v270_v18 = vsel %vm142_vm12, %v174_v9, 0.0  ;;  %7103 = vst [vmem:[#allocation24_spill] sm:$0xff] %v4328_v20  ;;  %vm6822_vm13 = vcmp.lt.s32.totalorder %v4328_v20, %v4080_v5 }
  0x27   :  { %3208 = vmatmul.mubr.msk.bf16.gmra.mrb[4].mxu0 %vm377_vm2, %v292_v26  ;;  %3224 = vmatmul.mubr.msk.bf16.gmra.mrb[4].mxu1 %vm377_vm2, %v292_v26  ;;  %v3648_v14 = vld [vmem:[%s6814_s4 + $0x74] ss:$8 sps:$4 sm:$0xff]   ;;  %v3646_v19 = vld [vmem:[%s6814_s4 + $0x70] ss:$8 sps:$4 sm:$0xff]   ;;  %v4331_v21 = vadd.s32 104, %v4070_v2  ;;  %v296_v26 = vpack.c.bf16 %v270_v18, %v269_v17  ;;  %v175_v27 = vld [vmem:[%s6811_s1 + $0x60] sm:$0xff] }
  0x28   :  { %478 = vmatprep.mubr.bf16.mxu0 %v6838_v1  ;;  %671 = vmatprep.mubr.bf16.mxu1 %v6838_v1  ;;  %v3654_v22 = vld [vmem:[%s6814_s4 + $0x84] ss:$8 sps:$4 sm:$0xff]   ;;  %v4341_v23 = vld [vmem:[%s6814_s4 + $0x140] ss:$8 sps:$4 sm:$0xff]   ;;  %v4356_v30 = vld [vmem:[%s6814_s4 + $0x154] ss:$8 sps:$4 sm:$0xff]  }
  0x29   :  { %1405 = vmatpush1.bf16.msra.mxu0 %v3631_v40  ;;  %3440 = vmatprep.subr.bf16.mxu1 %v4252_v58  ;;  %7104 = vst [vmem:[#allocation25_spill] sm:$0xff] %v4331_v21  ;;  %v176_v28 = vld [vmem:[%s6811_s1 + $0x68] sm:$0xff]  ;;  %v3660_v31 = vld [vmem:[%s6814_s4 + $0x94] ss:$8 sps:$4 sm:$0xff]   ;;  %vm6821_vm14 = vcmp.lt.s32.totalorder %v4331_v21, %v4080_v5  ;;  %v4368_v32 = vld [vmem:[%s6814_s4 + $0x150] ss:$8 sps:$4 sm:$0xff]  }
  0x2a   :  { %1406 = vmatprep.subr.bf16.mxu0 %v3636_v42  ;;  %3456 = vmatpush1.bf16.msra.mxu1 %v4279_v6  ;;  %v3652_v29 = vld [vmem:[%s6814_s4 + $0x80] ss:$8 sps:$4 sm:$0xff]   ;;  %v4373_v33 = vld [vmem:[%s6814_s4 + $0x164] ss:$8 sps:$4 sm:$0xff]   ;;  %v3658_v34 = vld [vmem:[%s6814_s4 + $0x90] ss:$8 sps:$4 sm:$0xff]  }
  0x2b   :  { %3441 = vmatprep.subr.bf16.mxu1 %v4291_v10  ;;  %v3666_v37 = vld [vmem:[%s6814_s4 + $0xa4] ss:$8 sps:$4 sm:$0xff]   ;;  %v272_v39 = vsel %vm6821_vm14, %v176_v28, 0.0  ;;  %v4394_v40 = vld [vmem:[%s6814_s4 + $0x160] ss:$8 sps:$4 sm:$0xff]   ;;  %v4398_v41 = vadd.s32 112, %v4070_v2 }
  0x2c   :  { %v4401_v42 = vadd.s32 120, %v4070_v2  ;;  %v4409_v44 = vld [vmem:[%s6814_s4 + $0x174] ss:$8 sps:$4 sm:$0xff]   ;;  %v4431_v53 = vld [vmem:[%s6814_s4 + $0x170] ss:$8 sps:$4 sm:$0xff]   ;;  %v4447_v60 = vadd.s32 128, %v4070_v2 }
  0x2d   :  { %1407 = vmatpush1.bf16.msra.mxu0 %v3634_v45  ;;  %7105 = vst [vmem:[#allocation26_spill] sm:$0xff] %v4398_v41  ;;  %v3664_v45 = vld [vmem:[%s6814_s4 + $0xa0] ss:$8 sps:$4 sm:$0xff]   ;;  %vm145_vm15 = vcmp.lt.s32.totalorder %v4398_v41, %v4080_v5  ;;  %v3672_v52 = vld [vmem:[%s6814_s4 + $0xb4] ss:$8 sps:$4 sm:$0xff]   ;;  %v4718_v0 = vadd.s32 248, %v4070_v2 }
  0x2e   :  { %1408 = vmatprep.subr.bf16.mxu0 %v3639_v48  ;;  %3457 = vmatpush1.bf16.msra.mxu1 %v4307_v15  ;;  %7106 = vst [vmem:[#allocation27_spill] sm:$0xff] %v4401_v42  ;;  %vm146_vm14 = vcmp.lt.s32.totalorder %v4401_v42, %v4080_v5  ;;  %v177_v48 = vld [vmem:[%s6811_s1 + $0x70] sm:$0xff]  ;;  %7107 = vst [vmem:[#allocation28_spill] sm:$0xff] %v4447_v60  ;;  %v3676_v8 = vld [vmem:[%s6814_s4 + $0xc0] ss:$8 sps:$4 sm:$0xff]  }
  0x2f   :  { %3209 = vmatmul.mubr.msk.bf16.gmra.mrb[8].mxu0 %vm377_vm2, %v293_v38  ;;  %3225 = vmatmul.mubr.msk.bf16.gmra.mrb[8].mxu1 %vm377_vm2, %v293_v38  ;;  %v271_v38 = vsel %vm6822_vm13, %v175_v27, 0.0  ;;  %v3670_v59 = vld [vmem:[%s6814_s4 + $0xb0] ss:$8 sps:$4 sm:$0xff]   ;;  %vm6825_vm13 = vcmp.lt.s32.totalorder %v4447_v60, %v4080_v5  ;;  %v179_v9 = vld [vmem:[%s6811_s1 + $0x80] sm:$0xff]  ;;  %7122 = vst [vmem:[#allocation43_spill] sm:$0xff] %v4718_v0 }
  0x30   :  { %488 = vmatprep.mubr.bf16.mxu0 %v6838_v1  ;;  %681 = vmatprep.mubr.bf16.mxu1 %v6838_v1  ;;  %v297_v43 = vpack.c.bf16 %v272_v39, %v271_v38  ;;  %v275_v17 = vsel %vm6825_vm13, %v179_v9, 0.0  ;;  %v3690_v27 = vld [vmem:[%s6814_s4 + $0xe4] ss:$8 sps:$4 sm:$0xff]   ;;  %v4518_v39 = vadd.s32 160, %v4070_v2 }
  0x31   :  { %1409 = vmatpush1.bf16.msra.mxu0 %v3637_v54  ;;  %3442 = vmatprep.subr.bf16.mxu1 %v4314_v16  ;;  %v273_v54 = vsel %vm145_vm15, %v177_v48, 0.0  ;;  %v183_v48 = vld [vmem:[%s6811_s1 + $0xa0] sm:$0xff] }
  0x32   :  { %1410 = vmatprep.subr.bf16.mxu0 %v3642_v55  ;;  %3458 = vmatpush1.bf16.msra.mxu1 %v4341_v23  ;;  %7111 = vst [vmem:[#allocation32_spill] sm:$0xff] %v4518_v39  ;;  %vm6829_vm6 = vcmp.lt.s32.totalorder %v4518_v39, %v4080_v5 }
  0x33   :  { %3443 = vmatprep.subr.bf16.mxu1 %v4356_v30 }
  0x35   :  { %1411 = vmatpush1.bf16.msra.mxu0 %v3640_v61  ;;  %v4450_v61 = vadd.s32 136, %v4070_v2 }
  0x36   :  { %1412 = vmatprep.subr.bf16.mxu0 %v3645_v4  ;;  %3459 = vmatpush1.bf16.msra.mxu1 %v4368_v32  ;;  %v3678_v4 = vld [vmem:[%s6814_s4 + $0xc4] ss:$8 sps:$4 sm:$0xff]  }
  0x37   :  { %3210 = vmatmul.mubr.msk.bf16.gmra.mrb[12].mxu0 %vm377_vm2, %v294_v51  ;;  %3226 = vmatmul.mubr.msk.bf16.gmra.mrb[12].mxu1 %vm377_vm2, %v294_v51  ;;  %v178_v51 = vld [vmem:[%s6811_s1 + $0x78] sm:$0xff]  ;;  %7108 = vst [vmem:[#allocation29_spill] sm:$0xff] %v4450_v61  ;;  %vm6824_vm10 = vcmp.lt.s32.totalorder %v4450_v61, %v4080_v5 }
  0x38   :  { %498 = vmatprep.mubr.bf16.mxu0 %v6838_v1  ;;  %691 = vmatprep.mubr.bf16.mxu1 %v6838_v1  ;;  %v274_v55 = vsel %vm146_vm14, %v178_v51, 0.0  ;;  %v184_v51 = vld [vmem:[%s6811_s1 + $0xa8] sm:$0xff] }
  0x39   :  { %1413 = vmatpush1.bf16.msra.mxu0 %v3643_v11  ;;  %3444 = vmatprep.subr.bf16.mxu1 %v4373_v33  ;;  %v180_v11 = vld [vmem:[%s6811_s1 + $0x88] sm:$0xff] }
  0x3a   :  { %1414 = vmatprep.subr.bf16.mxu0 %v3648_v14  ;;  %3460 = vmatpush1.bf16.msra.mxu1 %v4394_v40  ;;  %v3684_v14 = vld [vmem:[%s6814_s4 + $0xd4] ss:$8 sps:$4 sm:$0xff]   ;;  %v276_v18 = vsel %vm6824_vm10, %v180_v11, 0.0 }
  0x3b   :  { %3445 = vmatprep.subr.bf16.mxu1 %v4409_v44  ;;  %v299_v28 = vpack.c.bf16 %v276_v18, %v275_v17  ;;  %v4573_v17 = vadd.s32 200, %v4070_v2 }
  0x3d   :  { %1415 = vmatpush1.bf16.msra.mxu0 %v3646_v19  ;;  %v3682_v19 = vld [vmem:[%s6814_s4 + $0xd0] ss:$8 sps:$4 sm:$0xff]   ;;  %7116 = vst [vmem:[#allocation37_spill] sm:$0xff] %v4573_v17 }
  0x3e   :  { %1416 = vmatprep.subr.bf16.mxu0 %v3654_v22  ;;  %3461 = vmatpush1.bf16.msra.mxu1 %v4431_v53  ;;  %v4486_v22 = vadd.s32 144, %v4070_v2 }
  0x3f   :  { %3211 = vmatmul.mubr.msk.bf16.gmra.mrb[16].mxu0 %vm377_vm2, %v295_v7  ;;  %3227 = vmatmul.mubr.msk.bf16.gmra.mrb[16].mxu1 %vm377_vm2, %v295_v7  ;;  %v298_v7 = vpack.c.bf16 %v274_v55, %v273_v54  ;;  %v4544_v55 = vadd.s32 176, %v4070_v2 }
  0x40   :  { %508 = vmatprep.mubr.bf16.mxu0 %v6838_v1  ;;  %701 = vmatprep.mubr.bf16.mxu1 %v6838_v1  ;;  %7109 = vst [vmem:[#allocation30_spill] sm:$0xff] %v4486_v22  ;;  %vm6827_vm10 = vcmp.lt.s32.totalorder %v4486_v22, %v4080_v5 }
  0x41   :  { %1417 = vmatpush1.bf16.msra.mxu0 %v3652_v29  ;;  %v3688_v29 = vld [vmem:[%s6814_s4 + $0xe0] ss:$8 sps:$4 sm:$0xff]   ;;  %7113 = vst [vmem:[#allocation34_spill] sm:$0xff] %v4544_v55 }
  0x42   :  { %1418 = vmatprep.subr.bf16.mxu0 %v3660_v31  ;;  %v181_v31 = vld [vmem:[%s6811_s1 + $0x90] sm:$0xff] }
  0x45   :  { %1419 = vmatpush1.bf16.msra.mxu0 %v3658_v34  ;;  %v182_v34 = vld [vmem:[%s6811_s1 + $0x98] sm:$0xff] }
  0x46   :  { %1420 = vmatprep.subr.bf16.mxu0 %v3666_v37  ;;  %v277_v37 = vsel %vm6827_vm10, %v181_v31, 0.0  ;;  %v3696_v31 = vld [vmem:[%s6814_s4 + $0xf4] ss:$8 sps:$4 sm:$0xff]  }
  0x47   :  { %3212 = vmatmul.mubr.msk.bf16.gmra.mrb[20].mxu0 %vm377_vm2, %v296_v26  ;;  %3228 = vmatmul.mubr.msk.bf16.gmra.mrb[20].mxu1 %vm377_vm2, %v296_v26  ;;  %v4489_v26 = vadd.s32 152, %v4070_v2 }
  0x48   :  { %518 = vmatprep.mubr.bf16.mxu0 %v6838_v1  ;;  %711 = vmatprep.mubr.bf16.mxu1 %v6838_v1 }
  0x49   :  { %1421 = vmatpush1.bf16.msra.mxu0 %v3664_v45  ;;  %7110 = vst [vmem:[#allocation31_spill] sm:$0xff] %v4489_v26  ;;  %vm6828_vm13 = vcmp.lt.s32.totalorder %v4489_v26, %v4080_v5 }
  0x4a   :  { %1422 = vmatprep.subr.bf16.mxu0 %v3672_v52  ;;  %v278_v38 = vsel %vm6828_vm13, %v182_v34, 0.0  ;;  %v279_v52 = vsel %vm6829_vm6, %v183_v48, 0.0  ;;  %vm6831_vm13 = vcmp.lt.s32.totalorder %v4544_v55, %v4080_v5  ;;  %v4617_v48 = vadd.s32 216, %v4070_v2 }
  0x4b   :  { %v300_v45 = vpack.c.bf16 %v278_v38, %v277_v37  ;;  %v3694_v38 = vld [vmem:[%s6814_s4 + $0xf0] ss:$8 sps:$4 sm:$0xff]  }
  0x4c   :  { %7118 = vst [vmem:[#allocation39_spill] sm:$0xff] %v4617_v48 }
  0x4d   :  { %1423 = vmatpush1.bf16.msra.mxu0 %v3670_v59  ;;  %v4547_v59 = vadd.s32 184, %v4070_v2 }
  0x4e   :  { %1424 = vmatprep.subr.bf16.mxu0 %v3678_v4 }
  0x4f   :  { %3213 = vmatmul.mubr.msk.bf16.gmra.mrb[24].mxu0 %vm377_vm2, %v297_v43  ;;  %3229 = vmatmul.mubr.msk.bf16.gmra.mrb[24].mxu1 %vm377_vm2, %v297_v43  ;;  %v4521_v43 = vadd.s32 168, %v4070_v2  ;;  %7114 = vst [vmem:[#allocation35_spill] sm:$0xff] %v4547_v59  ;;  %vm154_vm6 = vcmp.lt.s32.totalorder %v4547_v59, %v4080_v5 }
  0x50   :  { %528 = vmatprep.mubr.bf16.mxu0 %v6838_v1  ;;  %721 = vmatprep.mubr.bf16.mxu1 %v6838_v1 }
  0x51   :  { %1425 = vmatpush1.bf16.msra.mxu0 %v3676_v8  ;;  %7112 = vst [vmem:[#allocation33_spill] sm:$0xff] %v4521_v43  ;;  %vm6830_vm10 = vcmp.lt.s32.totalorder %v4521_v43, %v4080_v5  ;;  %v186_v8 = vld [vmem:[%s6811_s1 + $0xb8] sm:$0xff] }
  0x52   :  { %1426 = vmatprep.subr.bf16.mxu0 %v3684_v14  ;;  %v280_v54 = vsel %vm6830_vm10, %v184_v51, 0.0  ;;  %v282_v11 = vsel %vm154_vm6, %v186_v8, 0.0  ;;  %v4570_v14 = vadd.s32 192, %v4070_v2  ;;  %v4622_v51 = vld [vmem:[%s6814_s4 + $0x194] ss:$8 sps:$4 sm:$0xff]  }
  0x53   :  { %v301_v4 = vpack.c.bf16 %v280_v54, %v279_v52  ;;  %v4628_v52 = vld [vmem:[%s6814_s4 + $0x190] ss:$8 sps:$4 sm:$0xff]   ;;  %v4651_v8 = vld [vmem:[%s6814_s4 + $0x1a0] ss:$8 sps:$4 sm:$0xff]  }
  0x54   :  { %7115 = vst [vmem:[#allocation36_spill] sm:$0xff] %v4570_v14  ;;  %vm6833_vm10 = vcmp.lt.s32.totalorder %v4570_v14, %v4080_v5 }
  0x55   :  { %1427 = vmatpush1.bf16.msra.mxu0 %v3682_v19  ;;  %v187_v19 = vld [vmem:[%s6811_s1 + $0xc0] sm:$0xff] }
  0x56   :  { %1428 = vmatprep.subr.bf16.mxu0 %v3690_v27  ;;  %v188_v27 = vld [vmem:[%s6811_s1 + $0xc8] sm:$0xff]  ;;  %v283_v34 = vsel %vm6833_vm10, %v187_v19, 0.0  ;;  %vm6834_vm10 = vcmp.lt.s32.totalorder %v4617_v48, %v4080_v5  ;;  %v4668_v19 = vadd.s32 232, %v4070_v2 }
  0x57   :  { %3214 = vmatmul.mubr.msk.bf16.gmra.mrb[28].mxu0 %vm377_vm2, %v298_v7  ;;  %3230 = vmatmul.mubr.msk.bf16.gmra.mrb[28].mxu1 %vm377_vm2, %v298_v7  ;;  %v185_v7 = vld [vmem:[%s6811_s1 + $0xb0] sm:$0xff] }
  0x58   :  { %538 = vmatprep.mubr.bf16.mxu0 %v6838_v1  ;;  %731 = vmatprep.mubr.bf16.mxu1 %v6838_v1  ;;  %v281_v9 = vsel %vm6831_vm13, %v185_v7, 0.0  ;;  %vm6832_vm13 = vcmp.lt.s32.totalorder %v4573_v17, %v4080_v5  ;;  %v190_v7 = vld [vmem:[%s6811_s1 + $0xd8] sm:$0xff]  ;;  %7120 = vst [vmem:[#allocation41_spill] sm:$0xff] %v4668_v19 }
  0x59   :  { %1429 = vmatpush1.bf16.msra.mxu0 %v3688_v29  ;;  %v302_v18 = vpack.c.bf16 %v282_v11, %v281_v9  ;;  %v4594_v29 = vld [vmem:[%s6814_s4 + $0x180] ss:$8 sps:$4 sm:$0xff]   ;;  %v284_v37 = vsel %vm6832_vm13, %v188_v27, 0.0  ;;  %v286_v11 = vsel %vm6834_vm10, %v190_v7, 0.0  ;;  %v4673_v27 = vld [vmem:[%s6814_s4 + $0x1b4] ss:$8 sps:$4 sm:$0xff]  }
  0x5a   :  { %1430 = vmatprep.subr.bf16.mxu0 %v3696_v31  ;;  %v303_v54 = vpack.c.bf16 %v284_v37, %v283_v34  ;;  %v4679_v31 = vld [vmem:[%s6814_s4 + $0x1b0] ss:$8 sps:$4 sm:$0xff]   ;;  %v191_v37 = vld [vmem:[%s6811_s1 + $0xe0] sm:$0xff] }
  0x5d   :  { %1431 = vmatpush1.bf16.msra.mxu0 %v3694_v38  ;;  %v192_v38 = vld [vmem:[%s6811_s1 + $0xe8] sm:$0xff] }
  0x5e   :  { %1593 = vmatprep.subr.bf16.mxu0 %v4217_v50  ;;  %v4646_v50 = vld [vmem:[%s6814_s4 + $0x1a4] ss:$8 sps:$4 sm:$0xff]  }
  0x5f   :  { %3215 = vmatmul.mubr.msk.bf16.gmra.mrb[32].mxu0 %vm377_vm2, %v299_v28  ;;  %3231 = vmatmul.mubr.msk.bf16.gmra.mrb[32].mxu1 %vm377_vm2, %v299_v28  ;;  %v4589_v28 = vld [vmem:[%s6814_s4 + $0x184] ss:$8 sps:$4 sm:$0xff]  }
  0x60   :  { %548 = vmatprep.mubr.bf16.mxu0 %v6838_v1  ;;  %741 = vmatprep.mubr.bf16.mxu1 %v6838_v1 }
  0x61   :  { %3446 = vmatprep.subr.bf16.mxu1 %v4589_v28 }
  0x62   :  { %3462 = vmatpush1.bf16.msra.mxu1 %v4594_v29 }
  0x63   :  { %3447 = vmatprep.subr.bf16.mxu1 %v4622_v51 }
  0x66   :  { %3463 = vmatpush1.bf16.msra.mxu1 %v4628_v52 }
  0x67   :  { %3216 = vmatmul.mubr.msk.bf16.gmra.mrb[36].mxu0 %vm377_vm2, %v300_v45  ;;  %3232 = vmatmul.mubr.msk.bf16.gmra.mrb[36].mxu1 %vm377_vm2, %v300_v45  ;;  %v4614_v45 = vadd.s32 208, %v4070_v2 }
  0x68   :  { %558 = vmatprep.mubr.bf16.mxu0 %v6838_v1  ;;  %751 = vmatprep.mubr.bf16.mxu1 %v6838_v1 }
  0x69   :  { %7117 = vst [vmem:[#allocation38_spill] sm:$0xff] %v4614_v45  ;;  %vm6835_vm13 = vcmp.lt.s32.totalorder %v4614_v45, %v4080_v5  ;;  %3448 = vmatprep.subr.bf16.mxu1 %v4646_v50  ;;  %v4767_v45 = vld [vmem:[%s6814_s4 + $0x1f4] ss:$8 sps:$4 sm:$0xff]  }
  0x6a   :  { %3464 = vmatpush1.bf16.msra.mxu1 %v4651_v8 }
  0x6b   :  { %3449 = vmatprep.subr.bf16.mxu1 %v4673_v27 }
  0x6e   :  { %3465 = vmatpush1.bf16.msra.mxu1 %v4679_v31 }
  0x6f   :  { %3217 = vmatmul.mubr.msk.bf16.gmra.mrb[40].mxu0 %vm377_vm2, %v301_v4  ;;  %3233 = vmatmul.mubr.msk.bf16.gmra.mrb[40].mxu1 %vm377_vm2, %v301_v4  ;;  %v189_v4 = vld [vmem:[%s6811_s1 + $0xd0] sm:$0xff] }
  0x70   :  { %568 = vmatprep.mubr.bf16.mxu0 %v6838_v1  ;;  %761 = vmatprep.mubr.bf16.mxu1 %v6838_v1  ;;  %v285_v9 = vsel %vm6835_vm13, %v189_v4, 0.0  ;;  %vm6841_vm13 = vcmp.lt.s32.totalorder %v4668_v19, %v4080_v5  ;;  %v4701_v4 = vld [vmem:[%s6814_s4 + $0x1c0] ss:$8 sps:$4 sm:$0xff]  }
  0x71   :  { %v304_v34 = vpack.c.bf16 %v286_v11, %v285_v9  ;;  %v288_v9 = vsel %vm6841_vm13, %v192_v38, 0.0  ;;  %v4715_v11 = vadd.s32 240, %v4070_v2  ;;  %v4729_v38 = vld [vmem:[%s6814_s4 + $0x1d0] ss:$8 sps:$4 sm:$0xff]  }
  0x73   :  { %7121 = vst [vmem:[#allocation42_spill] sm:$0xff] %v4715_v11  ;;  %vm161_vm13 = vcmp.lt.s32.totalorder %v4715_v11, %v4080_v5  ;;  %v4773_v11 = vld [vmem:[%s6814_s4 + $0x1f0] ss:$8 sps:$4 sm:$0xff]  }
  0x77   :  { %3218 = vmatmul.mubr.msk.bf16.gmra.mrb[44].mxu0 %vm377_vm2, %v302_v18  ;;  %3234 = vmatmul.mubr.msk.bf16.gmra.mrb[44].mxu1 %vm377_vm2, %v302_v18  ;;  %v4665_v18 = vadd.s32 224, %v4070_v2 }
  0x78   :  { %578 = vmatprep.mubr.bf16.mxu0 %v6838_v1  ;;  %771 = vmatprep.mubr.bf16.mxu1 %v6838_v1 }
  0x79   :  { %7119 = vst [vmem:[#allocation40_spill] sm:$0xff] %v4665_v18  ;;  %vm6842_vm10 = vcmp.lt.s32.totalorder %v4665_v18, %v4080_v5  ;;  %v194_v18 = vld [vmem:[%s6811_s1 + $0xf8] sm:$0xff] }
  0x7a   :  { %v287_v7 = vsel %vm6842_vm10, %v191_v37, 0.0  ;;  %v7123_v37 = vmov 0   ;;  %vm162_vm10 = vcmp.lt.s32.totalorder %v4718_v0, %v4080_v5 }
  0x7b   :  { %v305_v19 = vpack.c.bf16 %v288_v9, %v287_v7  ;;  %v4746_v7 = vld [vmem:[%s6814_s4 + $0x1e4] ss:$8 sps:$4 sm:$0xff]   ;;  %v4751_v9 = vld [vmem:[%s6814_s4 + $0x1e0] ss:$8 sps:$4 sm:$0xff]   ;;  %v290_v48 = vsel %vm162_vm10, %v194_v18, 0.0  ;;  %v4780_v18 = vsub.s32 1, %v4070_v2 }
  0x7d   :  { %7124 = vst [vmem:[#allocation44_spill] sm:$0xff] %v4780_v18 }
  0x7f   :  { %3219 = vmatmul.mubr.msk.bf16.gmra.mrb[48].mxu0 %vm377_vm2, %v303_v54  ;;  %3235 = vmatmul.mubr.msk.bf16.gmra.mrb[48].mxu1 %vm377_vm2, %v303_v54  ;;  %v4696_v54 = vld [vmem:[%s6814_s4 + $0x1c4] ss:$8 sps:$4 sm:$0xff]  }
  0x80   :  { %588 = vmatprep.mubr.bf16.mxu0 %v6838_v1  ;;  %781 = vmatprep.mubr.bf16.mxu1 %v6838_v1 }
  0x81   :  { %3450 = vmatprep.subr.bf16.mxu1 %v4696_v54 }
  0x82   :  { %3466 = vmatpush1.bf16.msra.mxu1 %v4701_v4 }
  0x87   :  { %3220 = vmatmul.mubr.msk.bf16.gmra.mrb[52].mxu0 %vm377_vm2, %v304_v34  ;;  %3236 = vmatmul.mubr.msk.bf16.gmra.mrb[52].mxu1 %vm377_vm2, %v304_v34  ;;  %v193_v34 = vld [vmem:[%s6811_s1 + $0xf0] sm:$0xff] }
  0x88   :  { %598 = vmatprep.mubr.bf16.mxu0 %v6838_v1  ;;  %v4723_v1 = vld [vmem:[%s6814_s4 + $0x1d4] ss:$8 sps:$4 sm:$0xff]   ;;  %791 = vmatprep.mubr.bf16.mxu1 %v7123_v37  ;;  %v289_v17 = vsel %vm161_vm13, %v193_v34, 0.0 }
  0x89   :  { %3451 = vmatprep.subr.bf16.mxu1 %v4723_v1  ;;  %v306_v34 = vpack.c.bf16 %v290_v48, %v289_v17 }
  0x8a   :  { %3467 = vmatpush1.bf16.msra.mxu1 %v4729_v38 }
  0x8b   :  { %3452 = vmatprep.subr.bf16.mxu1 %v4746_v7 }
  0x8e   :  { %3468 = vmatpush1.bf16.msra.mxu1 %v4751_v9 }
  0x8f   :  { %3221 = vmatmul.mubr.msk.bf16.gmra.mrb[56].mxu0 %vm377_vm2, %v305_v19  ;;  %3237 = vmatmul.mubr.msk.bf16.gmra.mrb[56].mxu1 %vm377_vm2, %v305_v19  ;;  %v4785_v19 = vld [vmem:[%s6813_s3] sm:$0xf] }
  0x90   :  { %608 = vmatprep.mubr.bf16.mxu0 %v7123_v37  ;;  %801 = vmatprep.mubr.bf16.mxu1 %v7123_v37  ;;  %v4788_v37 = vsub.s32 0, %v4070_v2  ;;  %v4792_v17 = vrot.slane %v4785_v19, %v4780_v18 }
  0x91   :  { %3453 = vmatprep.subr.bf16.mxu1 %v4767_v45 }
  0x92   :  { %3469 = vmatpush1.bf16.msra.mxu1 %v4773_v11  ;;  %7125 = vst [vmem:[#allocation45_spill] sm:$0xff] %v4788_v37  ;;  %v4796_v48 = vrot.slane %v4785_v19, %v4788_v37 }
  0x97   :  { %3222 = vmatmul.mubr.msk.bf16.gmra.mrb[60].mxu0 %vm377_vm2, %v306_v34  ;;  %3238 = vmatmul.mubr.msk.bf16.gmra.mrb[60].mxu1 %vm377_vm2, %v306_v34  ;;  %vm54_vm2 = vcmask 0  }
  0xf2   :  { %v460_v34 = vpop.f32.mrb[0].mxu0  ;;  %v4801_v59 = vpop.f32.mrb[0].mxu1 }
  0xf3   :  { %v462_v0 = vpop.f32.mrb[1].mxu0  ;;  %v4804_v43 = vadd.f32 %v460_v34, %v4796_v48  ;;  %v4809_v22 = vpop.f32.mrb[1].mxu1 }
  0xf4   :  { %v4799_v14 = vadd.f32 %v462_v0, %v4792_v17  ;;  %v464_v55 = vpop.f32.mrb[2].mxu0  ;;  %v4814_v21 = vpop.f32.mrb[2].mxu1 }
  0xf5   :  { %7127 = vst [vmem:[#allocation47_spill] sm:$0xff] %v4804_v43  ;;  %v4807_v39 = vadd.f32 %v464_v55, %v4796_v48  ;;  %v466_v61 = vpop.f32.mrb[3].mxu0  ;;  %v4817_v26 = vpop.f32.mrb[3].mxu1  ;;  %v6871_v47 = vmax.f32 %v4804_v43, 0.0 }
  0xf6   :  { %7126 = vst [vmem:[#allocation46_spill] sm:$0xff] %v4799_v14  ;;  %v4812_v60 = vadd.f32 %v466_v61, %v4792_v17  ;;  %v6869_v20 = vmax.f32 %v4799_v14, 0.0 }
  0xf7   :  { %7128 = vst [vmem:[#allocation48_spill] sm:$0xff] %v4807_v39  ;;  %v6870_v0 = vmax.f32 %v4807_v39, 0.0 }
  0xf8   :  { %7129 = vst [vmem:[#allocation49_spill] sm:$0xff] %v4812_v60  ;;  %v6868_v34 = vmax.f32 %v4812_v60, 0.0 }
  0xf9   :  { %v940_v61 = vpack.c.bf16 %v6870_v0, %v6871_v47 }
  0xfa   :  { %v941_v55 = vpack.c.bf16 %v6868_v34, %v6869_v20  ;;  %v470_v25 = vpop.f32.mrb[4].mxu0  ;;  %v4833_v24 = vpop.f32.mrb[4].mxu1 }
  0xfb   :  { %v472_v3 = vpop.f32.mrb[5].mxu0  ;;  %v4836_v42 = vadd.f32 %v470_v25, %v4796_v48  ;;  %v4841_v20 = vpop.f32.mrb[5].mxu1 }
  0xfc   :  { %v4831_v41 = vadd.f32 %v472_v3, %v4792_v17  ;;  %v474_v46 = vpop.f32.mrb[6].mxu0  ;;  %1432 = vmatprep.mubr.bf16.mxu0 %v941_v55  ;;  %v4847_v3 = vpop.f32.mrb[6].mxu1 }
  0xfd   :  { %7131 = vst [vmem:[#allocation51_spill] sm:$0xff] %v4836_v42  ;;  %v4839_v60 = vadd.f32 %v474_v46, %v4796_v48  ;;  %v476_v34 = vpop.f32.mrb[7].mxu0  ;;  %1433 = vmatmul.mubr.bf16.vlgmr.msra.gmra.mrb[64].mxu0 %v940_v61  ;;  %v4851_v25 = vpop.f32.mrb[7].mxu1  ;;  %v6880_v61 = vmax.f32 %v4836_v42, 0.0 }
  0xfe   :  { %7130 = vst [vmem:[#allocation50_spill] sm:$0xff] %v4831_v41  ;;  %v4844_v0 = vadd.f32 %v476_v34, %v4792_v17  ;;  %1594 = vmatpush1.bf16.msra.mxu0 %v4212_v49  ;;  %v6877_v46 = vmax.f32 %v4831_v41, 0.0 }
  0xff   :  { %7132 = vst [vmem:[#allocation52_spill] sm:$0xff] %v4839_v60  ;;  %v6879_v55 = vmax.f32 %v4839_v60, 0.0  ;;  %1595 = vmatprep.subr.bf16.mxu0 %v4240_v56  ;;  %v7138_v60 = vsub.s32 3, %v4070_v2 }
 0x100   :  { %7133 = vst [vmem:[#allocation53_spill] sm:$0xff] %v4844_v0  ;;  %v6876_v47 = vmax.f32 %v4844_v0, 0.0 }
 0x101   :  { %v944_v56 = vpack.c.bf16 %v6879_v55, %v6880_v61 }
 0x102   :  { %v945_v34 = vpack.c.bf16 %v6876_v47, %v6877_v46  ;;  %v480_v49 = vpop.f32.mrb[8].mxu0  ;;  %1596 = vmatpush1.bf16.msra.mxu0 %v4245_v57  ;;  %v4869_v41 = vpop.f32.mrb[8].mxu1  ;;  %v6882_v47 = vsub.s32 2, %v4070_v2 }
 0x103   :  { %v482_v39 = vpop.f32.mrb[9].mxu0  ;;  %1597 = vmatprep.subr.bf16.mxu0 %v4252_v58  ;;  %v4873_v46 = vadd.f32 %v480_v49, %v4796_v48  ;;  %v4878_v55 = vpop.f32.mrb[9].mxu1 }
 0x104   :  { %v4867_v14 = vadd.f32 %v482_v39, %v4792_v17  ;;  %v484_v43 = vpop.f32.mrb[10].mxu0  ;;  %1442 = vmatprep.mubr.bf16.mxu0 %v945_v34  ;;  %v4884_v34 = vpop.f32.mrb[10].mxu1  ;;  %v4896_v58 = vrot.slane %v4785_v19, %v6882_v47 }
 0x105   :  { %7135 = vst [vmem:[#allocation55_spill] sm:$0xff] %v4873_v46  ;;  %v4876_v57 = vadd.f32 %v484_v43, %v4796_v48  ;;  %v486_v0 = vpop.f32.mrb[11].mxu0  ;;  %1443 = vmatmul.mubr.bf16.gmra.mrb[68].mxu0 %v944_v56  ;;  %v4888_v49 = vpop.f32.mrb[11].mxu1 }
 0x106   :  { %7134 = vst [vmem:[#allocation54_spill] sm:$0xff] %v4867_v14  ;;  %v4882_v39 = vadd.f32 %v486_v0, %v4792_v17  ;;  %1598 = vmatpush1.bf16.msra.mxu0 %v4279_v6  ;;  %v6889_v43 = vmax.f32 %v4867_v14, 0.0  ;;  %v6890_v0 = vmax.f32 %v4873_v46, 0.0  ;;  %v4902_v6 = vrot.slane %v4785_v19, %v7138_v60 }
 0x107   :  { %7136 = vst [vmem:[#allocation56_spill] sm:$0xff] %v4876_v57  ;;  %1599 = vmatprep.subr.bf16.mxu0 %v4291_v10  ;;  %v7139_v47 = vmax.f32 %v4876_v57, 0.0 }
 0x108   :  { %7137 = vst [vmem:[#allocation57_spill] sm:$0xff] %v4882_v39  ;;  %v6888_v56 = vmax.f32 %v4882_v39, 0.0 }
 0x109   :  { %v948_v42 = vpack.c.bf16 %v7139_v47, %v6890_v0 }
 0x10a   :  { %v949_v10 = vpack.c.bf16 %v6888_v56, %v6889_v43  ;;  %v490_v61 = vpop.f32.mrb[12].mxu0  ;;  %1600 = vmatpush1.bf16.msra.mxu0 %v4307_v15  ;;  %v683_v19 = vpop.f32.mrb[12].mxu1 }
 0x10b   :  { %v492_v63 = vpop.f32.mrb[13].mxu0  ;;  %1601 = vmatprep.subr.bf16.mxu0 %v4314_v16  ;;  %v4918_v39 = vadd.f32 %v490_v61, %v4796_v48  ;;  %v4924_v15 = vadd.f32 %v683_v19, %v4896_v58  ;;  %v685_v47 = vpop.f32.mrb[13].mxu1 }
 0x10c   :  { %v4915_v2 = vadd.f32 %v492_v63, %v4792_v17  ;;  %v494_v60 = vpop.f32.mrb[14].mxu0  ;;  %1452 = vmatprep.mubr.bf16.mxu0 %v949_v10  ;;  %v4930_v63 = vadd.f32 %v685_v47, %v4902_v6  ;;  %v687_v0 = vpop.f32.mrb[14].mxu1 }
 0x10d   :  { %7141 = vst [vmem:[#allocation59_spill] sm:$0xff] %v4918_v39  ;;  %v4921_v56 = vadd.f32 %v494_v60, %v4796_v48  ;;  %7143 = vst [vmem:[#allocation61_spill] sm:$0xff] %v4924_v15  ;;  %v496_v43 = vpop.f32.mrb[15].mxu0  ;;  %1453 = vmatmul.mubr.bf16.gmra.mrb[72].mxu0 %v948_v42  ;;  %v4936_v60 = vadd.f32 %v687_v0, %v4896_v58  ;;  %v689_v19 = vpop.f32.mrb[15].mxu1  ;;  %v7149_v14 = vmax.f32 %v4924_v15, 0.0 }
 0x10e   :  { %7140 = vst [vmem:[#allocation58_spill] sm:$0xff] %v4915_v2  ;;  %v4927_v16 = vadd.f32 %v496_v43, %v4792_v17  ;;  %7145 = vst [vmem:[#allocation63_spill] sm:$0xff] %v4930_v63  ;;  %1602 = vmatpush1.bf16.msra.mxu0 %v4341_v23  ;;  %v6896_v42 = vmax.f32 %v4915_v2, 0.0  ;;  %v4943_v57 = vadd.f32 %v689_v19, %v4902_v6  ;;  %v6899_v23 = vmax.f32 %v4918_v39, 0.0 }
 0x10f   :  { %7142 = vst [vmem:[#allocation60_spill] sm:$0xff] %v4921_v56  ;;  %7146 = vst [vmem:[#allocation64_spill] sm:$0xff] %v4936_v60  ;;  %1603 = vmatprep.subr.bf16.mxu0 %v4356_v30  ;;  %v6900_v61 = vmax.f32 %v4936_v60, 0.0  ;;  %v7148_v47 = vmax.f32 %v4921_v56, 0.0 }
 0x110   :  { %7144 = vst [vmem:[#allocation62_spill] sm:$0xff] %v4927_v16  ;;  %v6895_v43 = vmax.f32 %v4927_v16, 0.0  ;;  %7147 = vst [vmem:[#allocation65_spill] sm:$0xff] %v4943_v57  ;;  %v6901_v30 = vmax.f32 %v4943_v57, 0.0 }
 0x111   :  { %v952_v19 = vpack.c.bf16 %v7148_v47, %v6899_v23  ;;  %v954_v46 = vpack.c.bf16 %v6900_v61, %v7149_v14 }
 0x112   :  { %v953_v0 = vpack.c.bf16 %v6895_v43, %v6896_v42  ;;  %v500_v10 = vpop.f32.mrb[16].mxu0  ;;  %1604 = vmatpush1.bf16.msra.mxu0 %v4368_v32  ;;  %v7150_v43 = vmax.f32 %v4930_v63, 0.0  ;;  %v693_v2 = vpop.f32.mrb[16].mxu1 }
 0x113   :  { %v502_v62 = vpop.f32.mrb[17].mxu0  ;;  %1605 = vmatprep.subr.bf16.mxu0 %v4373_v33  ;;  %v4970_v47 = vadd.f32 %v500_v10, %v4796_v48  ;;  %v4976_v14 = vadd.f32 %v693_v2, %v4896_v58  ;;  %v695_v61 = vpop.f32.mrb[17].mxu1 }
 0x114   :  { %v955_v42 = vpack.c.bf16 %v6901_v30, %v7150_v43  ;;  %v4967_v32 = vadd.f32 %v502_v62, %v4792_v17  ;;  %v504_v16 = vpop.f32.mrb[18].mxu0  ;;  %1462 = vmatprep.mubr.bf16.mxu0 %v953_v0  ;;  %v4982_v62 = vadd.f32 %v695_v61, %v4902_v6  ;;  %v697_v30 = vpop.f32.mrb[18].mxu1 }
 0x115   :  { %7152 = vst [vmem:[#allocation67_spill] sm:$0xff] %v4970_v47  ;;  %v4973_v23 = vadd.f32 %v504_v16, %v4796_v48  ;;  %7154 = vst [vmem:[#allocation69_spill] sm:$0xff] %v4976_v14  ;;  %v506_v33 = vpop.f32.mrb[19].mxu0  ;;  %1463 = vmatmul.mubr.bf16.gmra.mrb[76].mxu0 %v952_v19  ;;  %v4988_v2 = vadd.f32 %v697_v30, %v4896_v58  ;;  %v699_v0 = vpop.f32.mrb[19].mxu1 }
 0x116   :  { %7151 = vst [vmem:[#allocation66_spill] sm:$0xff] %v4967_v32  ;;  %v4979_v43 = vadd.f32 %v506_v33, %v4792_v17  ;;  %7156 = vst [vmem:[#allocation71_spill] sm:$0xff] %v4982_v62  ;;  %1655 = vmatprep.mubr.bf16.mxu1 %v955_v42  ;;  %1606 = vmatpush1.bf16.msra.mxu0 %v4394_v40  ;;  %v6905_v19 = vmax.f32 %v4967_v32, 0.0  ;;  %v4995_v42 = vadd.f32 %v699_v0, %v4902_v6 }
 0x117   :  { %7153 = vst [vmem:[#allocation68_spill] sm:$0xff] %v4973_v23  ;;  %v6908_v10 = vmax.f32 %v4973_v23, 0.0  ;;  %7157 = vst [vmem:[#allocation72_spill] sm:$0xff] %v4988_v2  ;;  %1656 = vmatmul.mubr.bf16.vlgmr.msra.gmra.mrb[64].mxu1 %v954_v46  ;;  %1607 = vmatprep.subr.bf16.mxu0 %v4409_v44  ;;  %v6909_v40 = vmax.f32 %v4970_v47, 0.0  ;;  %v6910_v16 = vmax.f32 %v4988_v2, 0.0  ;;  %v7159_v33 = vmax.f32 %v4976_v14, 0.0 }
 0x118   :  { %7155 = vst [vmem:[#allocation70_spill] sm:$0xff] %v4979_v43  ;;  %v6904_v61 = vmax.f32 %v4979_v43, 0.0  ;;  %7158 = vst [vmem:[#allocation73_spill] sm:$0xff] %v4995_v42  ;;  %v6911_v44 = vmax.f32 %v4995_v42, 0.0  ;;  %v7334_v14 = vld [vmem:[#allocation40_spill] sm:$0xff] }
 0x119   :  { %v956_v0 = vpack.c.bf16 %v6908_v10, %v6909_v40  ;;  %v958_v57 = vpack.c.bf16 %v6910_v16, %v7159_v33 }
 0x11a   :  { %v957_v46 = vpack.c.bf16 %v6904_v61, %v6905_v19  ;;  %v510_v30 = vpop.f32.mrb[20].mxu0  ;;  %1608 = vmatpush1.bf16.msra.mxu0 %v4431_v53  ;;  %v7160_v61 = vmax.f32 %v4982_v62, 0.0  ;;  %v703_v32 = vpop.f32.mrb[20].mxu1 }
 0x11b   :  { %v512_v60 = vpop.f32.mrb[21].mxu0  ;;  %1609 = vmatprep.subr.bf16.mxu0 %v4589_v28  ;;  %v5022_v10 = vadd.f32 %v510_v30, %v4796_v48  ;;  %v5028_v33 = vadd.f32 %v703_v32, %v4896_v58  ;;  %v705_v16 = vpop.f32.mrb[21].mxu1 }
 0x11c   :  { %v959_v19 = vpack.c.bf16 %v6911_v44, %v7160_v61  ;;  %v5019_v53 = vadd.f32 %v512_v60, %v4792_v17  ;;  %v514_v43 = vpop.f32.mrb[22].mxu0  ;;  %1472 = vmatprep.mubr.bf16.mxu0 %v957_v46  ;;  %v5034_v60 = vadd.f32 %v705_v16, %v4902_v6  ;;  %v707_v44 = vpop.f32.mrb[22].mxu1 }
 0x11d   :  { %7162 = vst [vmem:[#allocation75_spill] sm:$0xff] %v5022_v10  ;;  %v5025_v40 = vadd.f32 %v514_v43, %v4796_v48  ;;  %7164 = vst [vmem:[#allocation77_spill] sm:$0xff] %v5028_v33  ;;  %v516_v28 = vpop.f32.mrb[23].mxu0  ;;  %1473 = vmatmul.mubr.bf16.gmra.mrb[80].mxu0 %v956_v0  ;;  %v5040_v32 = vadd.f32 %v707_v44, %v4896_v58  ;;  %v709_v30 = vpop.f32.mrb[23].mxu1 }
 0x11e   :  { %7161 = vst [vmem:[#allocation74_spill] sm:$0xff] %v5019_v53  ;;  %v5031_v61 = vadd.f32 %v516_v28, %v4792_v17  ;;  %7166 = vst [vmem:[#allocation79_spill] sm:$0xff] %v5034_v60  ;;  %1665 = vmatprep.mubr.bf16.mxu1 %v959_v19  ;;  %1610 = vmatpush1.bf16.msra.mxu0 %v4594_v29  ;;  %v6914_v0 = vmax.f32 %v5019_v53, 0.0  ;;  %v5047_v19 = vadd.f32 %v709_v30, %v4902_v6 }
 0x11f   :  { %7163 = vst [vmem:[#allocation76_spill] sm:$0xff] %v5025_v40  ;;  %v6919_v46 = vmax.f32 %v5025_v40, 0.0  ;;  %7167 = vst [vmem:[#allocation80_spill] sm:$0xff] %v5040_v32  ;;  %1666 = vmatmul.mubr.bf16.gmra.mrb[68].mxu1 %v958_v57  ;;  %1611 = vmatprep.subr.bf16.mxu0 %v4622_v51  ;;  %v6918_v29 = vmax.f32 %v5022_v10, 0.0  ;;  %v6920_v43 = vmax.f32 %v5040_v32, 0.0  ;;  %v7169_v28 = vmax.f32 %v5028_v33, 0.0 }
 0x120   :  { %7165 = vst [vmem:[#allocation78_spill] sm:$0xff] %v5031_v61  ;;  %v6915_v16 = vmax.f32 %v5031_v61, 0.0  ;;  %7168 = vst [vmem:[#allocation81_spill] sm:$0xff] %v5047_v19  ;;  %v6921_v51 = vmax.f32 %v5047_v19, 0.0  ;;  %v7301_v19 = vld [vmem:[#allocation31_spill] sm:$0xff] }
 0x121   :  { %v960_v30 = vpack.c.bf16 %v6919_v46, %v6918_v29  ;;  %v962_v42 = vpack.c.bf16 %v6920_v43, %v7169_v28 }
 0x122   :  { %v961_v57 = vpack.c.bf16 %v6915_v16, %v6914_v0  ;;  %v520_v44 = vpop.f32.mrb[24].mxu0  ;;  %1612 = vmatpush1.bf16.msra.mxu0 %v4628_v52  ;;  %v7170_v0 = vmax.f32 %v5034_v60, 0.0  ;;  %v713_v10 = vpop.f32.mrb[24].mxu1 }
 0x123   :  { %v522_v2 = vpop.f32.mrb[25].mxu0  ;;  %1613 = vmatprep.subr.bf16.mxu0 %v4646_v50  ;;  %v5074_v29 = vadd.f32 %v520_v44, %v4796_v48  ;;  %v5080_v28 = vadd.f32 %v713_v10, %v4896_v58  ;;  %v715_v43 = vpop.f32.mrb[25].mxu1 }
 0x124   :  { %v963_v16 = vpack.c.bf16 %v6921_v51, %v7170_v0  ;;  %v5071_v52 = vadd.f32 %v522_v2, %v4792_v17  ;;  %v524_v53 = vpop.f32.mrb[26].mxu0  ;;  %1482 = vmatprep.mubr.bf16.mxu0 %v961_v57  ;;  %v5086_v2 = vadd.f32 %v715_v43, %v4902_v6  ;;  %v717_v51 = vpop.f32.mrb[26].mxu1 }
 0x125   :  { %7172 = vst [vmem:[#allocation83_spill] sm:$0xff] %v5074_v29  ;;  %v5077_v46 = vadd.f32 %v524_v53, %v4796_v48  ;;  %7174 = vst [vmem:[#allocation85_spill] sm:$0xff] %v5080_v28  ;;  %v526_v50 = vpop.f32.mrb[27].mxu0  ;;  %1483 = vmatmul.mubr.bf16.gmra.mrb[84].mxu0 %v960_v30  ;;  %v5092_v10 = vadd.f32 %v717_v51, %v4896_v58  ;;  %v719_v44 = vpop.f32.mrb[27].mxu1 }
 0x126   :  { %7171 = vst [vmem:[#allocation82_spill] sm:$0xff] %v5071_v52  ;;  %v5083_v0 = vadd.f32 %v526_v50, %v4792_v17  ;;  %7176 = vst [vmem:[#allocation87_spill] sm:$0xff] %v5086_v2  ;;  %1675 = vmatprep.mubr.bf16.mxu1 %v963_v16  ;;  %1614 = vmatpush1.bf16.msra.mxu0 %v4651_v8  ;;  %v6924_v30 = vmax.f32 %v5071_v52, 0.0  ;;  %v5099_v16 = vadd.f32 %v719_v44, %v4902_v6 }
 0x127   :  { %7173 = vst [vmem:[#allocation84_spill] sm:$0xff] %v5077_v46  ;;  %v6929_v57 = vmax.f32 %v5077_v46, 0.0  ;;  %7177 = vst [vmem:[#allocation88_spill] sm:$0xff] %v5092_v10  ;;  %1676 = vmatmul.mubr.bf16.gmra.mrb[72].mxu1 %v962_v42  ;;  %1615 = vmatprep.subr.bf16.mxu0 %v4673_v27  ;;  %v6928_v8 = vmax.f32 %v5074_v29, 0.0  ;;  %v6930_v53 = vmax.f32 %v5092_v10, 0.0  ;;  %v7179_v50 = vmax.f32 %v5080_v28, 0.0 }
 0x128   :  { %7175 = vst [vmem:[#allocation86_spill] sm:$0xff] %v5083_v0  ;;  %v6925_v43 = vmax.f32 %v5083_v0, 0.0  ;;  %7178 = vst [vmem:[#allocation89_spill] sm:$0xff] %v5099_v16  ;;  %v6931_v27 = vmax.f32 %v5099_v16, 0.0  ;;  %v7297_v10 = vld [vmem:[#allocation21_spill] sm:$0xff] }
 0x129   :  { %v964_v44 = vpack.c.bf16 %v6929_v57, %v6928_v8  ;;  %v966_v60 = vpack.c.bf16 %v6930_v53, %v7179_v50 }
 0x12a   :  { %v965_v42 = vpack.c.bf16 %v6925_v43, %v6924_v30  ;;  %v530_v51 = vpop.f32.mrb[28].mxu0  ;;  %1616 = vmatpush1.bf16.msra.mxu0 %v4679_v31  ;;  %v7180_v30 = vmax.f32 %v5086_v2, 0.0  ;;  %v723_v29 = vpop.f32.mrb[28].mxu1 }
 0x12b   :  { %v532_v33 = vpop.f32.mrb[29].mxu0  ;;  %1617 = vmatprep.subr.bf16.mxu0 %v4696_v54  ;;  %v5126_v8 = vadd.f32 %v530_v51, %v4796_v48  ;;  %v5132_v50 = vadd.f32 %v723_v29, %v4896_v58  ;;  %v725_v53 = vpop.f32.mrb[29].mxu1 }
 0x12c   :  { %v967_v43 = vpack.c.bf16 %v6931_v27, %v7180_v30  ;;  %v5123_v31 = vadd.f32 %v532_v33, %v4792_v17  ;;  %v534_v52 = vpop.f32.mrb[30].mxu0  ;;  %1492 = vmatprep.mubr.bf16.mxu0 %v965_v42  ;;  %v5138_v33 = vadd.f32 %v725_v53, %v4902_v6  ;;  %v727_v27 = vpop.f32.mrb[30].mxu1 }
 0x12d   :  { %7182 = vst [vmem:[#allocation91_spill] sm:$0xff] %v5126_v8  ;;  %v5129_v57 = vadd.f32 %v534_v52, %v4796_v48  ;;  %7184 = vst [vmem:[#allocation93_spill] sm:$0xff] %v5132_v50  ;;  %v536_v54 = vpop.f32.mrb[31].mxu0  ;;  %1493 = vmatmul.mubr.bf16.gmra.mrb[88].mxu0 %v964_v44  ;;  %v5144_v29 = vadd.f32 %v727_v27, %v4896_v58  ;;  %v729_v51 = vpop.f32.mrb[31].mxu1 }
 0x12e   :  { %7181 = vst [vmem:[#allocation90_spill] sm:$0xff] %v5123_v31  ;;  %v5135_v30 = vadd.f32 %v536_v54, %v4792_v17  ;;  %7186 = vst [vmem:[#allocation95_spill] sm:$0xff] %v5138_v33  ;;  %1685 = vmatprep.mubr.bf16.mxu1 %v967_v43  ;;  %1618 = vmatpush1.bf16.msra.mxu0 %v4701_v4  ;;  %v6934_v44 = vmax.f32 %v5123_v31, 0.0  ;;  %v5151_v43 = vadd.f32 %v729_v51, %v4902_v6 }
 0x12f   :  { %7183 = vst [vmem:[#allocation92_spill] sm:$0xff] %v5129_v57  ;;  %v6939_v42 = vmax.f32 %v5129_v57, 0.0  ;;  %7187 = vst [vmem:[#allocation96_spill] sm:$0xff] %v5144_v29  ;;  %1686 = vmatmul.mubr.bf16.gmra.mrb[76].mxu1 %v966_v60  ;;  %1619 = vmatprep.subr.bf16.mxu0 %v4723_v1  ;;  %v6938_v4 = vmax.f32 %v5126_v8, 0.0  ;;  %v6940_v52 = vmax.f32 %v5144_v29, 0.0  ;;  %v7189_v54 = vmax.f32 %v5132_v50, 0.0 }
 0x130   :  { %7185 = vst [vmem:[#allocation94_spill] sm:$0xff] %v5135_v30  ;;  %v6935_v53 = vmax.f32 %v5135_v30, 0.0  ;;  %7188 = vst [vmem:[#allocation97_spill] sm:$0xff] %v5151_v43  ;;  %v6941_v1 = vmax.f32 %v5151_v43, 0.0 }
 0x131   :  { %v968_v51 = vpack.c.bf16 %v6939_v42, %v6938_v4  ;;  %v970_v2 = vpack.c.bf16 %v6940_v52, %v7189_v54 }
 0x132   :  { %v969_v60 = vpack.c.bf16 %v6935_v53, %v6934_v44  ;;  %v540_v27 = vpop.f32.mrb[32].mxu0  ;;  %1620 = vmatpush1.bf16.msra.mxu0 %v4729_v38  ;;  %v7190_v44 = vmax.f32 %v5138_v33, 0.0  ;;  %v733_v8 = vpop.f32.mrb[32].mxu1 }
 0x133   :  { %v542_v28 = vpop.f32.mrb[33].mxu0  ;;  %1621 = vmatprep.subr.bf16.mxu0 %v4746_v7  ;;  %v5178_v4 = vadd.f32 %v540_v27, %v4796_v48  ;;  %v5184_v54 = vadd.f32 %v733_v8, %v4896_v58  ;;  %v735_v52 = vpop.f32.mrb[33].mxu1 }
 0x134   :  { %v971_v53 = vpack.c.bf16 %v6941_v1, %v7190_v44  ;;  %v5175_v38 = vadd.f32 %v542_v28, %v4792_v17  ;;  %v544_v31 = vpop.f32.mrb[34].mxu0  ;;  %1502 = vmatprep.mubr.bf16.mxu0 %v969_v60  ;;  %v5190_v28 = vadd.f32 %v735_v52, %v4902_v6  ;;  %v737_v1 = vpop.f32.mrb[34].mxu1 }
 0x135   :  { %7192 = vst [vmem:[#allocation99_spill] sm:$0xff] %v5178_v4  ;;  %v5181_v42 = vadd.f32 %v544_v31, %v4796_v48  ;;  %7194 = vst [vmem:[#allocation101_spill] sm:$0xff] %v5184_v54  ;;  %v546_v7 = vpop.f32.mrb[35].mxu0  ;;  %1503 = vmatmul.mubr.bf16.gmra.mrb[92].mxu0 %v968_v51  ;;  %v5196_v8 = vadd.f32 %v737_v1, %v4896_v58  ;;  %v739_v27 = vpop.f32.mrb[35].mxu1 }
 0x136   :  { %7191 = vst [vmem:[#allocation98_spill] sm:$0xff] %v5175_v38  ;;  %v5187_v44 = vadd.f32 %v546_v7, %v4792_v17  ;;  %7196 = vst [vmem:[#allocation103_spill] sm:$0xff] %v5190_v28  ;;  %1695 = vmatprep.mubr.bf16.mxu1 %v971_v53  ;;  %1622 = vmatpush1.bf16.msra.mxu0 %v4751_v9  ;;  %v6945_v51 = vmax.f32 %v5175_v38, 0.0  ;;  %v5203_v53 = vadd.f32 %v739_v27, %v4902_v6 }
 0x137   :  { %7193 = vst [vmem:[#allocation100_spill] sm:$0xff] %v5181_v42  ;;  %v6951_v60 = vmax.f32 %v5181_v42, 0.0  ;;  %7197 = vst [vmem:[#allocation104_spill] sm:$0xff] %v5196_v8  ;;  %1696 = vmatmul.mubr.bf16.gmra.mrb[80].mxu1 %v970_v2  ;;  %1623 = vmatprep.subr.bf16.mxu0 %v4767_v45  ;;  %v6949_v9 = vmax.f32 %v5178_v4, 0.0  ;;  %v6950_v31 = vmax.f32 %v5196_v8, 0.0  ;;  %v7199_v7 = vmax.f32 %v5184_v54, 0.0 }
 0x138   :  { %7195 = vst [vmem:[#allocation102_spill] sm:$0xff] %v5187_v44  ;;  %v6946_v52 = vmax.f32 %v5187_v44, 0.0  ;;  %7198 = vst [vmem:[#allocation105_spill] sm:$0xff] %v5203_v53  ;;  %v6952_v45 = vmax.f32 %v5203_v53, 0.0  ;;  %v7200_v38 = vmax.f32 %v5190_v28, 0.0 }
 0x139   :  { %v972_v27 = vpack.c.bf16 %v6951_v60, %v6949_v9  ;;  %v974_v33 = vpack.c.bf16 %v6950_v31, %v7199_v7 }
 0x13a   :  { %v973_v2 = vpack.c.bf16 %v6946_v52, %v6945_v51  ;;  %v550_v1 = vpop.f32.mrb[36].mxu0  ;;  %1624 = vmatpush1.bf16.msra.mxu0 %v4773_v11  ;;  %v975_v51 = vpack.c.bf16 %v6952_v45, %v7200_v38  ;;  %v743_v44 = vpop.f32.mrb[36].mxu1 }
 0x13b   :  { %v552_v50 = vpop.f32.mrb[37].mxu0  ;;  %v5229_v4 = vadd.f32 %v550_v1, %v4796_v48  ;;  %v5235_v7 = vadd.f32 %v743_v44, %v4896_v58  ;;  %v745_v60 = vpop.f32.mrb[37].mxu1 }
 0x13c   :  { %v5226_v52 = vadd.f32 %v552_v50, %v4792_v17  ;;  %v554_v11 = vpop.f32.mrb[38].mxu0  ;;  %1512 = vmatprep.mubr.bf16.mxu0 %v973_v2  ;;  %v5241_v50 = vadd.f32 %v745_v60, %v4902_v6  ;;  %v747_v45 = vpop.f32.mrb[38].mxu1  ;;  %1705 = vmatprep.mubr.bf16.mxu1 %v975_v51 }
 0x13d   :  { %7202 = vst [vmem:[#allocation107_spill] sm:$0xff] %v5229_v4  ;;  %v5232_v9 = vadd.f32 %v554_v11, %v4796_v48  ;;  %7204 = vst [vmem:[#allocation109_spill] sm:$0xff] %v5235_v7  ;;  %v556_v31 = vpop.f32.mrb[39].mxu0  ;;  %1513 = vmatmul.mubr.bf16.gmra.mrb[96].mxu0 %v972_v27  ;;  %v5246_v11 = vadd.f32 %v747_v45, %v4896_v58  ;;  %v749_v44 = vpop.f32.mrb[39].mxu1  ;;  %v6963_v51 = vmax.f32 %v5229_v4, 0.0 }
 0x13e   :  { %7201 = vst [vmem:[#allocation106_spill] sm:$0xff] %v5226_v52  ;;  %v5238_v38 = vadd.f32 %v556_v31, %v4792_v17  ;;  %7206 = vst [vmem:[#allocation111_spill] sm:$0xff] %v5241_v50  ;;  %v6959_v28 = vmax.f32 %v5226_v52, 0.0  ;;  %v5252_v60 = vadd.f32 %v749_v44, %v4902_v6  ;;  %v7210_v44 = vmax.f32 %v5235_v7, 0.0 }
 0x13f   :  { %7203 = vst [vmem:[#allocation108_spill] sm:$0xff] %v5232_v9  ;;  %7207 = vst [vmem:[#allocation112_spill] sm:$0xff] %v5246_v11  ;;  %1706 = vmatmul.mubr.bf16.gmra.mrb[84].mxu1 %v974_v33  ;;  %v6964_v2 = vmax.f32 %v5246_v11, 0.0  ;;  %v7209_v54 = vmax.f32 %v5232_v9, 0.0  ;;  %v7211_v42 = vmax.f32 %v5241_v50, 0.0 }
 0x140   :  { %7205 = vst [vmem:[#allocation110_spill] sm:$0xff] %v5238_v38  ;;  %v6960_v27 = vmax.f32 %v5238_v38, 0.0  ;;  %7208 = vst [vmem:[#allocation113_spill] sm:$0xff] %v5252_v60  ;;  %v6965_v33 = vmax.f32 %v5252_v60, 0.0 }
 0x141   :  { %v976_v31 = vpack.c.bf16 %v7209_v54, %v6963_v51  ;;  %v978_v53 = vpack.c.bf16 %v6964_v2, %v7210_v44 }
 0x142   :  { %v977_v45 = vpack.c.bf16 %v6960_v27, %v6959_v28  ;;  %v560_v1 = vpop.f32.mrb[40].mxu0  ;;  %v979_v52 = vpack.c.bf16 %v6965_v33, %v7211_v42  ;;  %v753_v38 = vpop.f32.mrb[40].mxu1 }
 0x143   :  { %v562_v8 = vpop.f32.mrb[41].mxu0  ;;  %v5277_v4 = vadd.f32 %v560_v1, %v4796_v48  ;;  %v5283_v44 = vadd.f32 %v753_v38, %v4896_v58  ;;  %v755_v2 = vpop.f32.mrb[41].mxu1 }
 0x144   :  { %v5274_v28 = vadd.f32 %v562_v8, %v4792_v17  ;;  %v564_v27 = vpop.f32.mrb[42].mxu0  ;;  %1522 = vmatprep.mubr.bf16.mxu0 %v977_v45  ;;  %v5289_v8 = vadd.f32 %v755_v2, %v4902_v6  ;;  %v757_v33 = vpop.f32.mrb[42].mxu1  ;;  %1715 = vmatprep.mubr.bf16.mxu1 %v979_v52 }
 0x145   :  { %7213 = vst [vmem:[#allocation115_spill] sm:$0xff] %v5277_v4  ;;  %v5280_v54 = vadd.f32 %v564_v27, %v4796_v48  ;;  %7215 = vst [vmem:[#allocation117_spill] sm:$0xff] %v5283_v44  ;;  %v566_v51 = vpop.f32.mrb[43].mxu0  ;;  %1523 = vmatmul.mubr.bf16.gmra.mrb[100].mxu0 %v976_v31  ;;  %v5294_v27 = vadd.f32 %v757_v33, %v4896_v58  ;;  %v759_v38 = vpop.f32.mrb[43].mxu1  ;;  %v6976_v52 = vmax.f32 %v5277_v4, 0.0 }
 0x146   :  { %7212 = vst [vmem:[#allocation114_spill] sm:$0xff] %v5274_v28  ;;  %v5286_v42 = vadd.f32 %v566_v51, %v4792_v17  ;;  %7217 = vst [vmem:[#allocation119_spill] sm:$0xff] %v5289_v8  ;;  %v6972_v50 = vmax.f32 %v5274_v28, 0.0  ;;  %v5300_v2 = vadd.f32 %v759_v38, %v4902_v6  ;;  %v7221_v38 = vmax.f32 %v5283_v44, 0.0 }
 0x147   :  { %7214 = vst [vmem:[#allocation116_spill] sm:$0xff] %v5280_v54  ;;  %7218 = vst [vmem:[#allocation120_spill] sm:$0xff] %v5294_v27  ;;  %1716 = vmatmul.mubr.bf16.gmra.mrb[88].mxu1 %v978_v53  ;;  %v6977_v1 = vmax.f32 %v5294_v27, 0.0  ;;  %v7220_v7 = vmax.f32 %v5280_v54, 0.0  ;;  %v7222_v9 = vmax.f32 %v5289_v8, 0.0 }
 0x148   :  { %7216 = vst [vmem:[#allocation118_spill] sm:$0xff] %v5286_v42  ;;  %v6973_v31 = vmax.f32 %v5286_v42, 0.0  ;;  %7219 = vst [vmem:[#allocation121_spill] sm:$0xff] %v5300_v2  ;;  %v6978_v53 = vmax.f32 %v5300_v2, 0.0 }
 0x149   :  { %v980_v51 = vpack.c.bf16 %v7220_v7, %v6976_v52  ;;  %v982_v60 = vpack.c.bf16 %v6977_v1, %v7221_v38 }
 0x14a   :  { %v981_v33 = vpack.c.bf16 %v6973_v31, %v6972_v50  ;;  %v570_v45 = vpop.f32.mrb[44].mxu0  ;;  %v983_v28 = vpack.c.bf16 %v6978_v53, %v7222_v9  ;;  %v763_v42 = vpop.f32.mrb[44].mxu1 }
 0x14b   :  { %v572_v11 = vpop.f32.mrb[45].mxu0  ;;  %v5325_v4 = vadd.f32 %v570_v45, %v4796_v48  ;;  %v5331_v38 = vadd.f32 %v763_v42, %v4896_v58  ;;  %v765_v1 = vpop.f32.mrb[45].mxu1 }
 0x14c   :  { %v5322_v50 = vadd.f32 %v572_v11, %v4792_v17  ;;  %v574_v31 = vpop.f32.mrb[46].mxu0  ;;  %1532 = vmatprep.mubr.bf16.mxu0 %v981_v33  ;;  %v5337_v11 = vadd.f32 %v765_v1, %v4902_v6  ;;  %v767_v53 = vpop.f32.mrb[46].mxu1  ;;  %1725 = vmatprep.mubr.bf16.mxu1 %v983_v28 }
 0x14d   :  { %7224 = vst [vmem:[#allocation123_spill] sm:$0xff] %v5325_v4  ;;  %v5328_v7 = vadd.f32 %v574_v31, %v4796_v48  ;;  %7226 = vst [vmem:[#allocation125_spill] sm:$0xff] %v5331_v38  ;;  %v576_v52 = vpop.f32.mrb[47].mxu0  ;;  %1533 = vmatmul.mubr.bf16.gmra.mrb[104].mxu0 %v980_v51  ;;  %v5342_v31 = vadd.f32 %v767_v53, %v4896_v58  ;;  %v769_v42 = vpop.f32.mrb[47].mxu1  ;;  %v6989_v28 = vmax.f32 %v5325_v4, 0.0 }
 0x14e   :  { %7223 = vst [vmem:[#allocation122_spill] sm:$0xff] %v5322_v50  ;;  %v5334_v9 = vadd.f32 %v576_v52, %v4792_v17  ;;  %7228 = vst [vmem:[#allocation127_spill] sm:$0xff] %v5337_v11  ;;  %v6985_v8 = vmax.f32 %v5322_v50, 0.0  ;;  %v5348_v1 = vadd.f32 %v769_v42, %v4902_v6  ;;  %v7232_v42 = vmax.f32 %v5331_v38, 0.0 }
 0x14f   :  { %7225 = vst [vmem:[#allocation124_spill] sm:$0xff] %v5328_v7  ;;  %7229 = vst [vmem:[#allocation128_spill] sm:$0xff] %v5342_v31  ;;  %1726 = vmatmul.mubr.bf16.gmra.mrb[92].mxu1 %v982_v60  ;;  %v6990_v45 = vmax.f32 %v5342_v31, 0.0  ;;  %v7231_v44 = vmax.f32 %v5328_v7, 0.0  ;;  %v7233_v54 = vmax.f32 %v5337_v11, 0.0 }
 0x150   :  { %7227 = vst [vmem:[#allocation126_spill] sm:$0xff] %v5334_v9  ;;  %v6986_v51 = vmax.f32 %v5334_v9, 0.0  ;;  %7230 = vst [vmem:[#allocation129_spill] sm:$0xff] %v5348_v1  ;;  %v6991_v60 = vmax.f32 %v5348_v1, 0.0 }
 0x151   :  { %v984_v52 = vpack.c.bf16 %v7231_v44, %v6989_v28  ;;  %v986_v2 = vpack.c.bf16 %v6990_v45, %v7232_v42 }
 0x152   :  { %v985_v53 = vpack.c.bf16 %v6986_v51, %v6985_v8  ;;  %v580_v33 = vpop.f32.mrb[48].mxu0  ;;  %v987_v50 = vpack.c.bf16 %v6991_v60, %v7233_v54  ;;  %v773_v9 = vpop.f32.mrb[48].mxu1 }
 0x153   :  { %v582_v27 = vpop.f32.mrb[49].mxu0  ;;  %v5373_v4 = vadd.f32 %v580_v33, %v4796_v48  ;;  %v5379_v42 = vadd.f32 %v773_v9, %v4896_v58  ;;  %v775_v45 = vpop.f32.mrb[49].mxu1 }
 0x154   :  { %v5370_v8 = vadd.f32 %v582_v27, %v4792_v17  ;;  %v584_v51 = vpop.f32.mrb[50].mxu0  ;;  %1542 = vmatprep.mubr.bf16.mxu0 %v985_v53  ;;  %v5385_v27 = vadd.f32 %v775_v45, %v4902_v6  ;;  %v777_v60 = vpop.f32.mrb[50].mxu1  ;;  %1735 = vmatprep.mubr.bf16.mxu1 %v987_v50 }
 0x155   :  { %7235 = vst [vmem:[#allocation131_spill] sm:$0xff] %v5373_v4  ;;  %v5376_v44 = vadd.f32 %v584_v51, %v4796_v48  ;;  %7237 = vst [vmem:[#allocation133_spill] sm:$0xff] %v5379_v42  ;;  %v586_v28 = vpop.f32.mrb[51].mxu0  ;;  %1543 = vmatmul.mubr.bf16.gmra.mrb[108].mxu0 %v984_v52  ;;  %v5390_v51 = vadd.f32 %v777_v60, %v4896_v58  ;;  %v779_v9 = vpop.f32.mrb[51].mxu1  ;;  %v7002_v50 = vmax.f32 %v5373_v4, 0.0 }
 0x156   :  { %7234 = vst [vmem:[#allocation130_spill] sm:$0xff] %v5370_v8  ;;  %v5382_v54 = vadd.f32 %v586_v28, %v4792_v17  ;;  %7239 = vst [vmem:[#allocation135_spill] sm:$0xff] %v5385_v27  ;;  %v6998_v11 = vmax.f32 %v5370_v8, 0.0  ;;  %v5396_v45 = vadd.f32 %v779_v9, %v4902_v6  ;;  %v7243_v9 = vmax.f32 %v5379_v42, 0.0 }
 0x157   :  { %7236 = vst [vmem:[#allocation132_spill] sm:$0xff] %v5376_v44  ;;  %7240 = vst [vmem:[#allocation136_spill] sm:$0xff] %v5390_v51  ;;  %1736 = vmatmul.mubr.bf16.gmra.mrb[96].mxu1 %v986_v2  ;;  %v7003_v33 = vmax.f32 %v5390_v51, 0.0  ;;  %v7242_v38 = vmax.f32 %v5376_v44, 0.0  ;;  %v7244_v7 = vmax.f32 %v5385_v27, 0.0 }
 0x158   :  { %7238 = vst [vmem:[#allocation134_spill] sm:$0xff] %v5382_v54  ;;  %v6999_v52 = vmax.f32 %v5382_v54, 0.0  ;;  %7241 = vst [vmem:[#allocation137_spill] sm:$0xff] %v5396_v45  ;;  %v7004_v2 = vmax.f32 %v5396_v45, 0.0 }
 0x159   :  { %v988_v28 = vpack.c.bf16 %v7242_v38, %v7002_v50  ;;  %v990_v1 = vpack.c.bf16 %v7003_v33, %v7243_v9 }
 0x15a   :  { %v989_v60 = vpack.c.bf16 %v6999_v52, %v6998_v11  ;;  %v590_v53 = vpop.f32.mrb[52].mxu0  ;;  %v991_v8 = vpack.c.bf16 %v7004_v2, %v7244_v7  ;;  %v783_v54 = vpop.f32.mrb[52].mxu1 }
 0x15b   :  { %v592_v31 = vpop.f32.mrb[53].mxu0  ;;  %v5421_v4 = vadd.f32 %v590_v53, %v4796_v48  ;;  %v5427_v9 = vadd.f32 %v783_v54, %v4896_v58  ;;  %v785_v33 = vpop.f32.mrb[53].mxu1 }
 0x15c   :  { %v5418_v11 = vadd.f32 %v592_v31, %v4792_v17  ;;  %v594_v52 = vpop.f32.mrb[54].mxu0  ;;  %1552 = vmatprep.mubr.bf16.mxu0 %v989_v60  ;;  %v5433_v31 = vadd.f32 %v785_v33, %v4902_v6  ;;  %v787_v2 = vpop.f32.mrb[54].mxu1  ;;  %1745 = vmatprep.mubr.bf16.mxu1 %v991_v8 }
 0x15d   :  { %7246 = vst [vmem:[#allocation139_spill] sm:$0xff] %v5421_v4  ;;  %v5424_v38 = vadd.f32 %v594_v52, %v4796_v48  ;;  %7248 = vst [vmem:[#allocation141_spill] sm:$0xff] %v5427_v9  ;;  %v596_v50 = vpop.f32.mrb[55].mxu0  ;;  %1553 = vmatmul.mubr.bf16.gmra.mrb[112].mxu0 %v988_v28  ;;  %v5438_v52 = vadd.f32 %v787_v2, %v4896_v58  ;;  %v789_v54 = vpop.f32.mrb[55].mxu1  ;;  %v7015_v8 = vmax.f32 %v5421_v4, 0.0 }
 0x15e   :  { %7245 = vst [vmem:[#allocation138_spill] sm:$0xff] %v5418_v11  ;;  %v5430_v7 = vadd.f32 %v596_v50, %v4792_v17  ;;  %7250 = vst [vmem:[#allocation143_spill] sm:$0xff] %v5433_v31  ;;  %v7011_v27 = vmax.f32 %v5418_v11, 0.0  ;;  %v5444_v33 = vadd.f32 %v789_v54, %v4902_v6  ;;  %v7254_v54 = vmax.f32 %v5427_v9, 0.0 }
 0x15f   :  { %7247 = vst [vmem:[#allocation140_spill] sm:$0xff] %v5424_v38  ;;  %7251 = vst [vmem:[#allocation144_spill] sm:$0xff] %v5438_v52  ;;  %1746 = vmatmul.mubr.bf16.gmra.mrb[100].mxu1 %v990_v1  ;;  %v7016_v53 = vmax.f32 %v5438_v52, 0.0  ;;  %v7253_v42 = vmax.f32 %v5424_v38, 0.0  ;;  %v7255_v44 = vmax.f32 %v5433_v31, 0.0 }
 0x160   :  { %7249 = vst [vmem:[#allocation142_spill] sm:$0xff] %v5430_v7  ;;  %v7012_v28 = vmax.f32 %v5430_v7, 0.0  ;;  %7252 = vst [vmem:[#allocation145_spill] sm:$0xff] %v5444_v33  ;;  %v7017_v1 = vmax.f32 %v5444_v33, 0.0 }
 0x161   :  { %v992_v50 = vpack.c.bf16 %v7253_v42, %v7015_v8  ;;  %v994_v45 = vpack.c.bf16 %v7016_v53, %v7254_v54 }
 0x162   :  { %v993_v2 = vpack.c.bf16 %v7012_v28, %v7011_v27  ;;  %v600_v60 = vpop.f32.mrb[56].mxu0  ;;  %v995_v11 = vpack.c.bf16 %v7017_v1, %v7255_v44  ;;  %v793_v7 = vpop.f32.mrb[56].mxu1 }
 0x163   :  { %v602_v51 = vpop.f32.mrb[57].mxu0  ;;  %v5469_v4 = vadd.f32 %v600_v60, %v4796_v48  ;;  %v5475_v54 = vadd.f32 %v793_v7, %v4896_v58  ;;  %v795_v53 = vpop.f32.mrb[57].mxu1 }
 0x164   :  { %v5466_v27 = vadd.f32 %v602_v51, %v4792_v17  ;;  %v604_v28 = vpop.f32.mrb[58].mxu0  ;;  %1562 = vmatprep.mubr.bf16.mxu0 %v993_v2  ;;  %v5481_v51 = vadd.f32 %v795_v53, %v4902_v6  ;;  %v797_v1 = vpop.f32.mrb[58].mxu1  ;;  %1755 = vmatprep.mubr.bf16.mxu1 %v995_v11  ;;  %v5498_v2 = vadd.f32 %v4809_v22, %v4902_v6 }
 0x165   :  { %7257 = vst [vmem:[#allocation147_spill] sm:$0xff] %v5469_v4  ;;  %v5472_v42 = vadd.f32 %v604_v28, %v4796_v48  ;;  %7259 = vst [vmem:[#allocation149_spill] sm:$0xff] %v5475_v54  ;;  %v606_v8 = vpop.f32.mrb[59].mxu0  ;;  %1563 = vmatmul.mubr.bf16.gmra.mrb[116].mxu0 %v992_v50  ;;  %v5486_v28 = vadd.f32 %v797_v1, %v4896_v58  ;;  %v799_v7 = vpop.f32.mrb[59].mxu1  ;;  %v7028_v11 = vmax.f32 %v5469_v4, 0.0  ;;  %v7266_v22 = vmax.f32 %v5475_v54, 0.0 }
 0x166   :  { %7256 = vst [vmem:[#allocation146_spill] sm:$0xff] %v5466_v27  ;;  %v5478_v44 = vadd.f32 %v606_v8, %v4792_v17  ;;  %7261 = vst [vmem:[#allocation151_spill] sm:$0xff] %v5481_v51  ;;  %v7023_v31 = vmax.f32 %v5466_v27, 0.0  ;;  %v5492_v53 = vadd.f32 %v799_v7, %v4902_v6  ;;  %v5507_v7 = vadd.f32 %v4817_v26, %v4902_v6 }
 0x167   :  { %7258 = vst [vmem:[#allocation148_spill] sm:$0xff] %v5472_v42  ;;  %7262 = vst [vmem:[#allocation152_spill] sm:$0xff] %v5486_v28  ;;  %1756 = vmatmul.mubr.bf16.gmra.mrb[104].mxu1 %v994_v45  ;;  %v7265_v8 = vmax.f32 %v5472_v42, 0.0  ;;  %v7267_v33 = vmax.f32 %v5486_v28, 0.0 }
 0x168   :  { %7260 = vst [vmem:[#allocation150_spill] sm:$0xff] %v5478_v44  ;;  %v7024_v50 = vmax.f32 %v5478_v44, 0.0  ;;  %7263 = vst [vmem:[#allocation153_spill] sm:$0xff] %v5492_v53  ;;  %v7029_v1 = vmax.f32 %v5492_v53, 0.0 }
 0x169   :  { %7264 = vst [vmem:[#allocation154_spill] sm:$0xff] %v5507_v7  ;;  %v996_v60 = vpack.c.bf16 %v7265_v8, %v7028_v11  ;;  %v998_v27 = vpack.c.bf16 %v7267_v33, %v7266_v22 }
 0x16a   :  { %v997_v45 = vpack.c.bf16 %v7024_v50, %v7023_v31  ;;  %v610_v9 = vpop.f32.mrb[60].mxu0  ;;  %v7268_v31 = vmax.f32 %v5481_v51, 0.0  ;;  %v803_v38 = vpop.f32.mrb[60].mxu1 }
 0x16b   :  { %v612_v52 = vpop.f32.mrb[61].mxu0  ;;  %v5525_v4 = vadd.f32 %v610_v9, %v4796_v48  ;;  %v5531_v33 = vadd.f32 %v803_v38, %v4896_v58  ;;  %v805_v11 = vpop.f32.mrb[61].mxu1  ;;  %v5561_v38 = vadd.f32 %v4801_v59, %v4896_v58 }
 0x16c   :  { %v999_v50 = vpack.c.bf16 %v7029_v1, %v7268_v31  ;;  %v5522_v44 = vadd.f32 %v612_v52, %v4792_v17  ;;  %v614_v26 = vpop.f32.mrb[62].mxu0  ;;  %1572 = vmatprep.mubr.bf16.mxu0 %v997_v45  ;;  %v5538_v1 = vadd.f32 %v805_v11, %v4902_v6  ;;  %v807_v45 = vpop.f32.mrb[62].mxu1  ;;  %v5565_v11 = vadd.f32 %v4814_v21, %v4896_v58 }
 0x16d   :  { %7270 = vst [vmem:[#allocation156_spill] sm:$0xff] %v5525_v4  ;;  %v5528_v8 = vadd.f32 %v614_v26, %v4796_v48  ;;  %7272 = vst [vmem:[#allocation158_spill] sm:$0xff] %v5531_v33  ;;  %v616_v22 = vpop.f32.mrb[63].mxu0  ;;  %1573 = vmatmul.mubr.bf16.gmra.mrb[120].mxu0 %v996_v60  ;;  %v5544_v26 = vadd.f32 %v807_v45, %v4896_v58  ;;  %v809_v60 = vpop.f32.mrb[63].mxu1  ;;  %v7278_v9 = vmax.f32 %v5531_v33, 0.0 }
 0x16e   :  { %7269 = vst [vmem:[#allocation155_spill] sm:$0xff] %v5522_v44  ;;  %v5535_v52 = vadd.f32 %v616_v22, %v4792_v17  ;;  %7274 = vst [vmem:[#allocation160_spill] sm:$0xff] %v5538_v1  ;;  %1765 = vmatprep.mubr.bf16.mxu1 %v999_v50  ;;  %v7032_v31 = vmax.f32 %v5522_v44, 0.0  ;;  %v5550_v22 = vadd.f32 %v809_v60, %v4902_v6  ;;  %v7034_v50 = vmax.f32 %v5525_v4, 0.0 }
 0x16f   :  { %7271 = vst [vmem:[#allocation157_spill] sm:$0xff] %v5528_v8  ;;  %v7035_v48 = vmax.f32 %v5528_v8, 0.0  ;;  %7275 = vst [vmem:[#allocation161_spill] sm:$0xff] %v5544_v26  ;;  %1766 = vmatmul.mubr.bf16.gmra.mrb[108].mxu1 %v998_v27  ;;  %v7281_v27 = vmax.f32 %v5507_v7, 0.0  ;;  %v5581_v44 = vadd.f32 %v4841_v20, %v4902_v6  ;;  %v5585_v21 = vadd.f32 %v4851_v25, %v4902_v6 }
 0x170   :  { %7273 = vst [vmem:[#allocation159_spill] sm:$0xff] %v5535_v52  ;;  %v7031_v17 = vmax.f32 %v5535_v52, 0.0  ;;  %7276 = vst [vmem:[#allocation162_spill] sm:$0xff] %v5550_v22  ;;  %v7279_v52 = vmax.f32 %v5544_v26, 0.0 }
 0x171   :  { %7277 = vst [vmem:[#allocation163_spill] sm:$0xff] %v5565_v11  ;;  %v1000_v60 = vpack.c.bf16 %v7035_v48, %v7034_v50  ;;  %v7282_v50 = vmax.f32 %v5538_v1, 0.0  ;;  %v7283_v48 = vmax.f32 %v5550_v22, 0.0  ;;  %v7044_v20 = vmax.f32 %v5581_v44, 0.0 }
 0x172   :  { %v1001_v45 = vpack.c.bf16 %v7031_v17, %v7032_v31  ;;  %v1002_v17 = vpack.c.bf16 %v7279_v52, %v7278_v9  ;;  %v7280_v31 = vmax.f32 %v5498_v2, 0.0  ;;  %v7046_v52 = vmax.f32 %v5561_v38, 0.0 }
 0x173   :  { %v1003_v33 = vpack.c.bf16 %v7283_v48, %v7282_v50  ;;  %v7040_v9 = vmax.f32 %v5585_v21, 0.0  ;;  %v5601_v48 = vadd.f32 %v4833_v24, %v4896_v58  ;;  %v5613_v50 = vadd.f32 %v4878_v55, %v4902_v6 }
 0x174   :  { %v943_v59 = vpack.c.bf16 %v7281_v27, %v7280_v31  ;;  %1582 = vmatprep.mubr.bf16.mxu0 %v1001_v45  ;;  %v7037_v31 = vmax.f32 %v5565_v11, 0.0  ;;  %v5617_v45 = vadd.f32 %v4888_v49, %v4902_v6  ;;  %v5633_v49 = vadd.f32 %v4884_v34, %v4896_v58 }
 0x175   :  { %1583 = vmatmul.mubr.bf16.gmra.mrb[124].mxu0 %v1000_v60  ;;  %1775 = vmatprep.mubr.bf16.mxu1 %v1003_v33  ;;  %v5605_v33 = vadd.f32 %v4847_v3, %v4896_v58  ;;  %v7045_v24 = vmax.f32 %v5601_v48, 0.0  ;;  %v7039_v27 = vmax.f32 %v5613_v50, 0.0 }
 0x176   :  { %1625 = vmatprep.mubr.bf16.mxu0 %v943_v59  ;;  %v942_v25 = vpack.c.bf16 %v7037_v31, %v7046_v52  ;;  %7284 = vst [vmem:[#allocation164_spill] sm:$0xff] %v5617_v45  ;;  %v7038_v60 = vmax.f32 %v5617_v45, 0.0  ;;  %v5629_v59 = vadd.f32 %v4869_v41, %v4896_v58  ;;  %7285 = vst [vmem:[#allocation165_spill] sm:$0xff] %v5633_v49  ;;  %v1068_v58 = vld [vmem:[%s6815_s5] sm:$0x3] }
 0x177   :  { %1776 = vmatmul.mubr.bf16.gmra.mrb[112].mxu1 %v1002_v17  ;;  %v947_v17 = vpack.c.bf16 %v7040_v9, %v7044_v20  ;;  %v7041_v3 = vmax.f32 %v5605_v33, 0.0  ;;  %v5649_v34 = vrot.slane %v1068_v58, %v4788_v37 }
 0x178   :  { %v951_v6 = vpack.c.bf16 %v7038_v60, %v7039_v27 }
 0x179   :  { %v946_v55 = vpack.c.bf16 %v7041_v3, %v7045_v24 }
 0x17d   :  { %1626 = vmatmul.mubr.bf16.vlgmr.msra.gmra.mrb[64].mxu0 %v942_v25  ;;  %v7043_v25 = vmax.f32 %v5629_v59, 0.0 }
 0x17e   :  { %1635 = vmatprep.mubr.bf16.mxu0 %v947_v17  ;;  %v7042_v17 = vmax.f32 %v5633_v49, 0.0 }
 0x180   :  { %v950_v41 = vpack.c.bf16 %v7042_v17, %v7043_v25 }
 0x185   :  { %1636 = vmatmul.mubr.bf16.gmra.mrb[68].mxu0 %v946_v55  ;;  %v5652_v55 = vrot.slane %v1068_v58, %v4780_v18 }
 0x186   :  { %1645 = vmatprep.mubr.bf16.mxu0 %v951_v6 }
 0x18d   :  { %1646 = vmatmul.mubr.bf16.gmra.mrb[72].mxu0 %v950_v41 }
 0x1e8   :  { %v1464_v6 = vpop.f32.mrb[76].mxu0 }
 0x1e9   :  { %v1465_v31 = vadd.f32 %v1464_v6, %v5649_v34  ;;  %v1466_v60 = vpop.f32.mrb[77].mxu0 }
 0x1ea   :  { %v1467_v27 = vadd.f32 %v1466_v60, %v5652_v55  ;;  %v1468_v9 = vpop.f32.mrb[78].mxu0  ;;  %v1657_v3 = vpop.f32.mrb[64].mxu1 }
 0x1eb   :  { %v1469_v41 = vadd.f32 %v1468_v9, %v5649_v34  ;;  %v1658_v17 = vadd.f32 %v1657_v3, %v1465_v31  ;;  %v1470_v25 = vpop.f32.mrb[79].mxu0  ;;  %v1659_v20 = vpop.f32.mrb[65].mxu1 }
 0x1ec   :  { %v1471_v24 = vadd.f32 %v1470_v25, %v5652_v55  ;;  %v1660_v52 = vadd.f32 %v1659_v20, %v1467_v27  ;;  %v1661_v22 = vpop.f32.mrb[66].mxu1 }
 0x1ed   :  { %v1662_v26 = vadd.f32 %v1661_v22, %v1469_v41  ;;  %v1663_v58 = vpop.f32.mrb[67].mxu1 }
 0x1ee   :  { %v1824_v18 = vmul.f32 0.5, %v1660_v52  ;;  %v1664_v1 = vadd.f32 %v1663_v58, %v1471_v24 }
 0x1f0   :  { %3721 = vtanh.f32 %v1824_v18  ;;  %v1825_v6 = vmul.f32 0.5, %v1664_v1  ;;  %v1474_v4 = vpop.f32.mrb[80].mxu0 }
 0x1f1   :  { %v1475_v60 = vadd.f32 %v1474_v4, %v5649_v34  ;;  %v1476_v51 = vpop.f32.mrb[81].mxu0 }
 0x1f2   :  { %3723 = vtanh.f32 %v1825_v6  ;;  %v1477_v9 = vadd.f32 %v1476_v51, %v5652_v55  ;;  %v1478_v31 = vpop.f32.mrb[82].mxu0  ;;  %v1667_v3 = vpop.f32.mrb[68].mxu1 }
 0x1f3   :  { %v1479_v54 = vadd.f32 %v1478_v31, %v5649_v34  ;;  %v1668_v25 = vadd.f32 %v1667_v3, %v1475_v60  ;;  %v1480_v20 = vpop.f32.mrb[83].mxu0  ;;  %v1669_v27 = vpop.f32.mrb[69].mxu1  ;;  %3725 = vtanh.f32 %v1658_v17 }
 0x1f4   :  { %v1481_v22 = vadd.f32 %v1480_v20, %v5652_v55  ;;  %v1670_v52 = vadd.f32 %v1669_v27, %v1477_v9  ;;  %v1671_v18 = vpop.f32.mrb[70].mxu1  ;;  %3727 = vtanh.f32 %v1662_v26 }
 0x1f5   :  { %v1672_v1 = vadd.f32 %v1671_v18, %v1479_v54  ;;  %v1673_v24 = vpop.f32.mrb[71].mxu1 }
 0x1f6   :  { %v1826_v4 = vmul.f32 0.5, %v1670_v52  ;;  %v1674_v41 = vadd.f32 %v1673_v24, %v1481_v22 }
 0x1f8   :  { %3729 = vtanh.f32 %v1826_v4  ;;  %v1827_v58 = vmul.f32 0.5, %v1674_v41  ;;  %v1484_v51 = vpop.f32.mrb[84].mxu0 }
 0x1f9   :  { %v1485_v6 = vadd.f32 %v1484_v51, %v5649_v34  ;;  %v1486_v8 = vpop.f32.mrb[85].mxu0 }
 0x1fa   :  { %v3722_v31 = vpop.eup %3721  ;;  %3731 = vtanh.f32 %v1827_v58  ;;  %v1487_v60 = vadd.f32 %v1486_v8, %v5652_v55  ;;  %v1488_v17 = vpop.f32.mrb[86].mxu0 }
 0x1fb   :  { %v1677_v3 = vpop.f32.mrb[72].mxu1  ;;  %v1888_v20 = vadd.f32 1.0, %v3722_v31  ;;  %v1489_v9 = vadd.f32 %v1488_v17, %v5649_v34  ;;  %v1490_v27 = vpop.f32.mrb[87].mxu0  ;;  %3733 = vtanh.f32 %v1668_v25 }
 0x1fc   :  { %v1678_v54 = vadd.f32 %v1677_v3, %v1485_v6  ;;  %v1679_v26 = vpop.f32.mrb[73].mxu1  ;;  %v3724_v52 = vpop.eup %3723  ;;  %v1491_v22 = vadd.f32 %v1490_v27, %v5652_v55  ;;  %3735 = vtanh.f32 %v1672_v1  ;;  %v5669_v6 = vld [vmem:[%s6816_s6] ss:$0 sm:$0xff] }
 0x1fd   :  { %v1680_v18 = vadd.f32 %v1679_v26, %v1487_v60  ;;  %v1681_v24 = vpop.f32.mrb[74].mxu1  ;;  %v1889_v4 = vadd.f32 1.0, %v3724_v52  ;;  %v1920_v58 = vmul.f32 0.5, %v1888_v20  ;;  %v3726_v53 = vpop.eup %3725 }
 0x1fe   :  { %v1682_v41 = vadd.f32 %v1681_v24, %v1489_v9  ;;  %v1683_v51 = vpop.f32.mrb[75].mxu1  ;;  %v3728_v25 = vpop.eup %3727 }
 0x1ff   :  { %v1828_v8 = vmul.f32 0.5, %v1680_v18  ;;  %v1684_v28 = vadd.f32 %v1683_v51, %v1491_v22  ;;  %v1952_v31 = vmul.f32 %v3726_v53, %v1920_v58  ;;  %v1921_v17 = vmul.f32 0.5, %v1889_v4 }
 0x200   :  { %v1494_v60 = vpop.f32.mrb[88].mxu0 }
 0x201   :  { %3737 = vtanh.f32 %v1828_v8  ;;  %v1829_v3 = vmul.f32 0.5, %v1684_v28  ;;  %v1495_v27 = vadd.f32 %v1494_v60, %v5649_v34  ;;  %v1496_v9 = vpop.f32.mrb[89].mxu0  ;;  %v1991_v20 = vmul.f32 %v5669_v6, %v1952_v31 }
 0x202   :  { %v1953_v26 = vmul.f32 %v3728_v25, %v1921_v17  ;;  %v3730_v1 = vpop.eup %3729  ;;  %v1497_v52 = vadd.f32 %v1496_v9, %v5652_v55  ;;  %v1498_v22 = vpop.f32.mrb[90].mxu0 }
 0x203   :  { %3739 = vtanh.f32 %v1829_v3  ;;  %v1687_v18 = vpop.f32.mrb[76].mxu1  ;;  %v1890_v24 = vadd.f32 1.0, %v3730_v1  ;;  %v1499_v53 = vadd.f32 %v1498_v22, %v5649_v34  ;;  %v1500_v51 = vpop.f32.mrb[91].mxu0  ;;  %2029 = vadd.xlane.f32.xlu0 %v1991_v20 }
 0x204   :  { %v1688_v4 = vadd.f32 %v1687_v18, %v1495_v27  ;;  %v1689_v58 = vpop.f32.mrb[77].mxu1  ;;  %v1992_v28 = vmul.f32 %v5669_v6, %v1953_v26  ;;  %v3732_v8 = vpop.eup %3731  ;;  %3741 = vtanh.f32 %v1678_v54  ;;  %v1501_v31 = vadd.f32 %v1500_v51, %v5652_v55 }
 0x205   :  { %v1690_v17 = vadd.f32 %v1689_v58, %v1497_v52  ;;  %v1691_v25 = vpop.f32.mrb[78].mxu1  ;;  %v1922_v3 = vmul.f32 0.5, %v1890_v24  ;;  %v1891_v60 = vadd.f32 1.0, %v3732_v8  ;;  %v3734_v1 = vpop.eup %3733  ;;  %3743 = vtanh.f32 %v1682_v41 }
 0x206   :  { %v1692_v9 = vadd.f32 %v1691_v25, %v1499_v53  ;;  %v1693_v42 = vpop.f32.mrb[79].mxu1  ;;  %2031 = vadd.xlane.f32.xlu1 %v1992_v28  ;;  %v3736_v20 = vpop.eup %3735 }
 0x207   :  { %v1830_v22 = vmul.f32 0.5, %v1690_v17  ;;  %v1694_v27 = vadd.f32 %v1693_v42, %v1501_v31  ;;  %v1923_v18 = vmul.f32 0.5, %v1891_v60  ;;  %v1954_v43 = vmul.f32 %v3734_v1, %v1922_v3 }
 0x208   :  { %v1504_v29 = vpop.f32.mrb[92].mxu0 }
 0x209   :  { %3745 = vtanh.f32 %v1830_v22  ;;  %v1831_v26 = vmul.f32 0.5, %v1694_v27  ;;  %v1505_v54 = vadd.f32 %v1504_v29, %v5649_v34  ;;  %v1506_v51 = vpop.f32.mrb[93].mxu0  ;;  %v1993_v52 = vmul.f32 %v5669_v6, %v1954_v43 }
 0x20a   :  { %v1955_v24 = vmul.f32 %v3736_v20, %v1923_v18  ;;  %v1507_v53 = vadd.f32 %v1506_v51, %v5652_v55  ;;  %v1508_v28 = vpop.f32.mrb[94].mxu0  ;;  %v1697_v41 = vpop.f32.mrb[80].mxu1 }
 0x20b   :  { %v3738_v58 = vpop.eup %3737  ;;  %3747 = vtanh.f32 %v1831_v26  ;;  %v1509_v42 = vadd.f32 %v1508_v28, %v5649_v34  ;;  %v1698_v31 = vadd.f32 %v1697_v41, %v1505_v54  ;;  %v1510_v17 = vpop.f32.mrb[95].mxu0  ;;  %2033 = vadd.xlane.f32.xlu0 %v1993_v52 }
 0x20c   :  { %v1892_v8 = vadd.f32 1.0, %v3738_v58  ;;  %v1699_v25 = vpop.f32.mrb[81].mxu1  ;;  %v1994_v3 = vmul.f32 %v5669_v6, %v1955_v24  ;;  %3749 = vtanh.f32 %v1688_v4  ;;  %v1511_v43 = vadd.f32 %v1510_v17, %v5652_v55 }
 0x20d   :  { %v3740_v29 = vpop.eup %3739  ;;  %v1700_v60 = vadd.f32 %v1699_v25, %v1507_v53  ;;  %v1701_v1 = vpop.f32.mrb[82].mxu1  ;;  %3751 = vtanh.f32 %v1692_v9 }
 0x20e   :  { %v1924_v22 = vmul.f32 0.5, %v1892_v8  ;;  %v1893_v27 = vadd.f32 1.0, %v3740_v29  ;;  %v1702_v18 = vadd.f32 %v1701_v1, %v1509_v42  ;;  %v1703_v20 = vpop.f32.mrb[83].mxu1  ;;  %2035 = vadd.xlane.f32.xlu1 %v1994_v3  ;;  %v3742_v26 = vpop.eup %3741 }
 0x20f   :  { %v1832_v51 = vmul.f32 0.5, %v1700_v60  ;;  %v1704_v54 = vadd.f32 %v1703_v20, %v1511_v43  ;;  %v3744_v52 = vpop.eup %3743 }
 0x210   :  { %v1925_v58 = vmul.f32 0.5, %v1893_v27  ;;  %v1956_v28 = vmul.f32 %v3742_v26, %v1924_v22  ;;  %v1514_v41 = vpop.f32.mrb[96].mxu0 }
 0x211   :  { %3753 = vtanh.f32 %v1832_v51  ;;  %v1833_v24 = vmul.f32 0.5, %v1704_v54  ;;  %v1515_v4 = vadd.f32 %v1514_v41, %v5649_v34  ;;  %v1516_v17 = vpop.f32.mrb[97].mxu0 }
 0x212   :  { %v1995_v53 = vmul.f32 %v5669_v6, %v1956_v28  ;;  %v1957_v8 = vmul.f32 %v3744_v52, %v1925_v58  ;;  %v1517_v42 = vadd.f32 %v1516_v17, %v5652_v55  ;;  %v1518_v3 = vpop.f32.mrb[98].mxu0  ;;  %v1707_v9 = vpop.f32.mrb[84].mxu1 }
 0x213   :  { %v3746_v25 = vpop.eup %3745  ;;  %3755 = vtanh.f32 %v1833_v24  ;;  %v1519_v43 = vadd.f32 %v1518_v3, %v5649_v34  ;;  %v1708_v60 = vadd.f32 %v1707_v9, %v1515_v4  ;;  %v1520_v1 = vpop.f32.mrb[99].mxu0 }
 0x214   :  { %v1894_v29 = vadd.f32 1.0, %v3746_v25  ;;  %v1709_v22 = vpop.f32.mrb[85].mxu1  ;;  %2037 = vadd.xlane.f32.xlu0 %v1995_v53  ;;  %v1996_v27 = vmul.f32 %v5669_v6, %v1957_v8  ;;  %3757 = vtanh.f32 %v1698_v31  ;;  %v1521_v26 = vadd.f32 %v1520_v1, %v5652_v55 }
 0x215   :  { %v3748_v20 = vpop.eup %3747  ;;  %v1710_v51 = vadd.f32 %v1709_v22, %v1517_v42  ;;  %v1711_v54 = vpop.f32.mrb[86].mxu1  ;;  %3759 = vtanh.f32 %v1702_v18 }
 0x216   :  { %v1926_v58 = vmul.f32 0.5, %v1894_v29  ;;  %v1895_v28 = vadd.f32 1.0, %v3748_v20  ;;  %v1712_v52 = vadd.f32 %v1711_v54, %v1519_v43  ;;  %v1713_v24 = vpop.f32.mrb[87].mxu1  ;;  %2039 = vadd.xlane.f32.xlu1 %v1996_v27  ;;  %v3750_v41 = vpop.eup %3749 }
 0x217   :  { %v1834_v17 = vmul.f32 0.5, %v1710_v51  ;;  %v1714_v4 = vadd.f32 %v1713_v24, %v1521_v26  ;;  %v3752_v53 = vpop.eup %3751 }
 0x218   :  { %v1927_v25 = vmul.f32 0.5, %v1895_v28  ;;  %v1958_v3 = vmul.f32 %v3750_v41, %v1926_v58  ;;  %v1524_v9 = vpop.f32.mrb[100].mxu0 }
 0x219   :  { %3761 = vtanh.f32 %v1834_v17  ;;  %v1835_v8 = vmul.f32 0.5, %v1714_v4  ;;  %v1525_v31 = vadd.f32 %v1524_v9, %v5649_v34  ;;  %v1526_v1 = vpop.f32.mrb[101].mxu0 }
 0x21a   :  { %v1997_v42 = vmul.f32 %v5669_v6, %v1958_v3  ;;  %v1959_v29 = vmul.f32 %v3752_v53, %v1927_v25  ;;  %v1527_v43 = vadd.f32 %v1526_v1, %v5652_v55  ;;  %v1528_v27 = vpop.f32.mrb[102].mxu0  ;;  %v1717_v18 = vpop.f32.mrb[88].mxu1 }
 0x21b   :  { %v3754_v22 = vpop.eup %3753  ;;  %3763 = vtanh.f32 %v1835_v8  ;;  %v1529_v26 = vadd.f32 %v1528_v27, %v5649_v34  ;;  %v1718_v51 = vadd.f32 %v1717_v18, %v1525_v31  ;;  %v1530_v54 = vpop.f32.mrb[103].mxu0 }
 0x21c   :  { %v1896_v20 = vadd.f32 1.0, %v3754_v22  ;;  %v1719_v58 = vpop.f32.mrb[89].mxu1  ;;  %2041 = vadd.xlane.f32.xlu0 %v1997_v42  ;;  %v1998_v28 = vmul.f32 %v5669_v6, %v1959_v29  ;;  %3765 = vtanh.f32 %v1708_v60  ;;  %v1531_v41 = vadd.f32 %v1530_v54, %v5652_v55 }
 0x21d   :  { %v3756_v24 = vpop.eup %3755  ;;  %v1720_v17 = vadd.f32 %v1719_v58, %v1527_v43  ;;  %v1721_v4 = vpop.f32.mrb[90].mxu1  ;;  %3767 = vtanh.f32 %v1712_v52 }
 0x21e   :  { %v1928_v25 = vmul.f32 0.5, %v1896_v20  ;;  %v1897_v3 = vadd.f32 1.0, %v3756_v24  ;;  %v1722_v53 = vadd.f32 %v1721_v4, %v1529_v26  ;;  %v1723_v8 = vpop.f32.mrb[91].mxu1  ;;  %2043 = vadd.xlane.f32.xlu1 %v1998_v28  ;;  %v3758_v9 = vpop.eup %3757 }
 0x21f   :  { %v1836_v1 = vmul.f32 0.5, %v1720_v17  ;;  %v1724_v31 = vadd.f32 %v1723_v8, %v1531_v41  ;;  %v3760_v42 = vpop.eup %3759 }
 0x220   :  { %v1929_v22 = vmul.f32 0.5, %v1897_v3  ;;  %v1960_v27 = vmul.f32 %v3758_v9, %v1928_v25  ;;  %v1534_v18 = vpop.f32.mrb[104].mxu0 }
 0x221   :  { %3769 = vtanh.f32 %v1836_v1  ;;  %v1837_v29 = vmul.f32 0.5, %v1724_v31  ;;  %v1535_v60 = vadd.f32 %v1534_v18, %v5649_v34  ;;  %v1536_v54 = vpop.f32.mrb[105].mxu0 }
 0x222   :  { %v1999_v43 = vmul.f32 %v5669_v6, %v1960_v27  ;;  %v1961_v20 = vmul.f32 %v3760_v42, %v1929_v22  ;;  %v1537_v26 = vadd.f32 %v1536_v54, %v5652_v55  ;;  %v1538_v28 = vpop.f32.mrb[106].mxu0  ;;  %v1727_v52 = vpop.f32.mrb[92].mxu1 }
 0x223   :  { %v3762_v58 = vpop.eup %3761  ;;  %3771 = vtanh.f32 %v1837_v29  ;;  %v1539_v41 = vadd.f32 %v1538_v28, %v5649_v34  ;;  %v1728_v17 = vadd.f32 %v1727_v52, %v1535_v60  ;;  %v1540_v4 = vpop.f32.mrb[107].mxu0 }
 0x224   :  { %v1898_v24 = vadd.f32 1.0, %v3762_v58  ;;  %v1729_v25 = vpop.f32.mrb[93].mxu1  ;;  %2045 = vadd.xlane.f32.xlu0 %v1999_v43  ;;  %v2000_v3 = vmul.f32 %v5669_v6, %v1961_v20  ;;  %3773 = vtanh.f32 %v1718_v51  ;;  %v1541_v9 = vadd.f32 %v1540_v4, %v5652_v55 }
 0x225   :  { %v3764_v8 = vpop.eup %3763  ;;  %v1730_v1 = vadd.f32 %v1729_v25, %v1537_v26  ;;  %v1731_v31 = vpop.f32.mrb[94].mxu1  ;;  %3775 = vtanh.f32 %v1722_v53 }
 0x226   :  { %v1930_v22 = vmul.f32 0.5, %v1898_v24  ;;  %v1899_v27 = vadd.f32 1.0, %v3764_v8  ;;  %v1732_v42 = vadd.f32 %v1731_v31, %v1539_v41  ;;  %v1733_v29 = vpop.f32.mrb[95].mxu1  ;;  %2047 = vadd.xlane.f32.xlu1 %v2000_v3  ;;  %v3766_v18 = vpop.eup %3765 }
 0x227   :  { %v1838_v54 = vmul.f32 0.5, %v1730_v1  ;;  %v1734_v60 = vadd.f32 %v1733_v29, %v1541_v9  ;;  %v3768_v43 = vpop.eup %3767 }
 0x228   :  { %v1931_v58 = vmul.f32 0.5, %v1899_v27  ;;  %v1962_v28 = vmul.f32 %v3766_v18, %v1930_v22  ;;  %v1544_v52 = vpop.f32.mrb[108].mxu0 }
 0x229   :  { %3777 = vtanh.f32 %v1838_v54  ;;  %v1839_v20 = vmul.f32 0.5, %v1734_v60  ;;  %v1545_v51 = vadd.f32 %v1544_v52, %v5649_v34  ;;  %v1546_v4 = vpop.f32.mrb[109].mxu0 }
 0x22a   :  { %v2001_v26 = vmul.f32 %v5669_v6, %v1962_v28  ;;  %v1963_v24 = vmul.f32 %v3768_v43, %v1931_v58  ;;  %v1547_v41 = vadd.f32 %v1546_v4, %v5652_v55  ;;  %v1548_v3 = vpop.f32.mrb[110].mxu0  ;;  %v1737_v53 = vpop.f32.mrb[96].mxu1 }
 0x22b   :  { %v3770_v25 = vpop.eup %3769  ;;  %3779 = vtanh.f32 %v1839_v20  ;;  %v1549_v9 = vadd.f32 %v1548_v3, %v5649_v34  ;;  %v1738_v1 = vadd.f32 %v1737_v53, %v1545_v51  ;;  %v1550_v31 = vpop.f32.mrb[111].mxu0 }
 0x22c   :  { %v1900_v8 = vadd.f32 1.0, %v3770_v25  ;;  %v1739_v22 = vpop.f32.mrb[97].mxu1  ;;  %2049 = vadd.xlane.f32.xlu0 %v2001_v26  ;;  %v2002_v27 = vmul.f32 %v5669_v6, %v1963_v24  ;;  %3781 = vtanh.f32 %v1728_v17  ;;  %v1551_v18 = vadd.f32 %v1550_v31, %v5652_v55 }
 0x22d   :  { %v3772_v29 = vpop.eup %3771  ;;  %v1740_v54 = vadd.f32 %v1739_v22, %v1547_v41  ;;  %v1741_v60 = vpop.f32.mrb[98].mxu1  ;;  %3783 = vtanh.f32 %v1732_v42 }
 0x22e   :  { %v1932_v58 = vmul.f32 0.5, %v1900_v8  ;;  %v1901_v28 = vadd.f32 1.0, %v3772_v29  ;;  %v1742_v43 = vadd.f32 %v1741_v60, %v1549_v9  ;;  %v1743_v20 = vpop.f32.mrb[99].mxu1  ;;  %2051 = vadd.xlane.f32.xlu1 %v2002_v27  ;;  %v3774_v52 = vpop.eup %3773 }
 0x22f   :  { %v1840_v4 = vmul.f32 0.5, %v1740_v54  ;;  %v1744_v51 = vadd.f32 %v1743_v20, %v1551_v18  ;;  %v3776_v26 = vpop.eup %3775 }
 0x230   :  { %v1933_v25 = vmul.f32 0.5, %v1901_v28  ;;  %v1964_v3 = vmul.f32 %v3774_v52, %v1932_v58  ;;  %v1554_v53 = vpop.f32.mrb[112].mxu0 }
 0x231   :  { %3785 = vtanh.f32 %v1840_v4  ;;  %v1841_v24 = vmul.f32 0.5, %v1744_v51  ;;  %v1555_v17 = vadd.f32 %v1554_v53, %v5649_v34  ;;  %v1556_v31 = vpop.f32.mrb[113].mxu0 }
 0x232   :  { %v2003_v41 = vmul.f32 %v5669_v6, %v1964_v3  ;;  %v1965_v8 = vmul.f32 %v3776_v26, %v1933_v25  ;;  %v1557_v9 = vadd.f32 %v1556_v31, %v5652_v55  ;;  %v1558_v27 = vpop.f32.mrb[114].mxu0  ;;  %v1747_v42 = vpop.f32.mrb[100].mxu1 }
 0x233   :  { %v3778_v22 = vpop.eup %3777  ;;  %3787 = vtanh.f32 %v1841_v24  ;;  %v1559_v18 = vadd.f32 %v1558_v27, %v5649_v34  ;;  %v1748_v54 = vadd.f32 %v1747_v42, %v1555_v17  ;;  %v1560_v60 = vpop.f32.mrb[115].mxu0 }
 0x234   :  { %v1902_v29 = vadd.f32 1.0, %v3778_v22  ;;  %v1749_v58 = vpop.f32.mrb[101].mxu1  ;;  %2053 = vadd.xlane.f32.xlu0 %v2003_v41  ;;  %v2004_v28 = vmul.f32 %v5669_v6, %v1965_v8  ;;  %3789 = vtanh.f32 %v1738_v1  ;;  %v1561_v52 = vadd.f32 %v1560_v60, %v5652_v55 }
 0x235   :  { %v3780_v20 = vpop.eup %3779  ;;  %v1750_v4 = vadd.f32 %v1749_v58, %v1557_v9  ;;  %v1751_v51 = vpop.f32.mrb[102].mxu1  ;;  %3791 = vtanh.f32 %v1742_v43 }
 0x236   :  { %v1934_v25 = vmul.f32 0.5, %v1902_v29  ;;  %v1903_v3 = vadd.f32 1.0, %v3780_v20  ;;  %v1752_v26 = vadd.f32 %v1751_v51, %v1559_v18  ;;  %v1753_v24 = vpop.f32.mrb[103].mxu1  ;;  %2055 = vadd.xlane.f32.xlu1 %v2004_v28  ;;  %v3782_v53 = vpop.eup %3781 }
 0x237   :  { %v1842_v31 = vmul.f32 0.5, %v1750_v4  ;;  %v1754_v17 = vadd.f32 %v1753_v24, %v1561_v52  ;;  %v3784_v41 = vpop.eup %3783 }
 0x238   :  { %v1935_v22 = vmul.f32 0.5, %v1903_v3  ;;  %v1966_v27 = vmul.f32 %v3782_v53, %v1934_v25  ;;  %v1564_v42 = vpop.f32.mrb[116].mxu0 }
 0x239   :  { %3793 = vtanh.f32 %v1842_v31  ;;  %v1843_v8 = vmul.f32 0.5, %v1754_v17  ;;  %v1565_v1 = vadd.f32 %v1564_v42, %v5649_v34  ;;  %v1566_v60 = vpop.f32.mrb[117].mxu0 }
 0x23a   :  { %v2005_v9 = vmul.f32 %v5669_v6, %v1966_v27  ;;  %v1967_v29 = vmul.f32 %v3784_v41, %v1935_v22  ;;  %v1567_v18 = vadd.f32 %v1566_v60, %v5652_v55  ;;  %v1568_v28 = vpop.f32.mrb[118].mxu0  ;;  %v1757_v43 = vpop.f32.mrb[104].mxu1 }
 0x23b   :  { %v3786_v58 = vpop.eup %3785  ;;  %3795 = vtanh.f32 %v1843_v8  ;;  %v1569_v52 = vadd.f32 %v1568_v28, %v5649_v34  ;;  %v1758_v4 = vadd.f32 %v1757_v43, %v1565_v1  ;;  %v1570_v51 = vpop.f32.mrb[119].mxu0 }
 0x23c   :  { %v1904_v20 = vadd.f32 1.0, %v3786_v58  ;;  %v1759_v25 = vpop.f32.mrb[105].mxu1  ;;  %2057 = vadd.xlane.f32.xlu0 %v2005_v9  ;;  %v2006_v3 = vmul.f32 %v5669_v6, %v1967_v29  ;;  %3797 = vtanh.f32 %v1748_v54  ;;  %v1571_v53 = vadd.f32 %v1570_v51, %v5652_v55 }
 0x23d   :  { %v3788_v24 = vpop.eup %3787  ;;  %v1760_v31 = vadd.f32 %v1759_v25, %v1567_v18  ;;  %v1761_v17 = vpop.f32.mrb[106].mxu1  ;;  %3799 = vtanh.f32 %v1752_v26 }
 0x23e   :  { %v1936_v22 = vmul.f32 0.5, %v1904_v20  ;;  %v1905_v27 = vadd.f32 1.0, %v3788_v24  ;;  %v1762_v41 = vadd.f32 %v1761_v17, %v1569_v52  ;;  %v1763_v8 = vpop.f32.mrb[107].mxu1  ;;  %2059 = vadd.xlane.f32.xlu1 %v2006_v3  ;;  %v3790_v42 = vpop.eup %3789 }
 0x23f   :  { %v1844_v60 = vmul.f32 0.5, %v1760_v31  ;;  %v1764_v1 = vadd.f32 %v1763_v8, %v1571_v53  ;;  %v3792_v9 = vpop.eup %3791 }
 0x240   :  { %v1937_v58 = vmul.f32 0.5, %v1905_v27  ;;  %v1968_v28 = vmul.f32 %v3790_v42, %v1936_v22  ;;  %v1574_v43 = vpop.f32.mrb[120].mxu0 }
 0x241   :  { %3801 = vtanh.f32 %v1844_v60  ;;  %v1845_v29 = vmul.f32 0.5, %v1764_v1  ;;  %v1575_v54 = vadd.f32 %v1574_v43, %v5649_v34  ;;  %v1576_v51 = vpop.f32.mrb[121].mxu0 }
 0x242   :  { %v2007_v18 = vmul.f32 %v5669_v6, %v1968_v28  ;;  %v1969_v20 = vmul.f32 %v3792_v9, %v1937_v58  ;;  %v1577_v52 = vadd.f32 %v1576_v51, %v5652_v55  ;;  %v1578_v3 = vpop.f32.mrb[122].mxu0  ;;  %v1767_v26 = vpop.f32.mrb[108].mxu1 }
 0x243   :  { %v3794_v25 = vpop.eup %3793  ;;  %3803 = vtanh.f32 %v1845_v29  ;;  %v1579_v53 = vadd.f32 %v1578_v3, %v5649_v34  ;;  %v1768_v31 = vadd.f32 %v1767_v26, %v1575_v54  ;;  %v1580_v17 = vpop.f32.mrb[123].mxu0 }
 0x244   :  { %v1906_v24 = vadd.f32 1.0, %v3794_v25  ;;  %v1769_v22 = vpop.f32.mrb[109].mxu1  ;;  %2061 = vadd.xlane.f32.xlu0 %v2007_v18  ;;  %v2008_v27 = vmul.f32 %v5669_v6, %v1969_v20  ;;  %3805 = vtanh.f32 %v1758_v4  ;;  %v1581_v42 = vadd.f32 %v1580_v17, %v5652_v55 }
 0x245   :  { %v3796_v8 = vpop.eup %3795  ;;  %v1770_v60 = vadd.f32 %v1769_v22, %v1577_v52  ;;  %v1771_v1 = vpop.f32.mrb[110].mxu1  ;;  %3807 = vtanh.f32 %v1762_v41 }
 0x246   :  { %v1938_v58 = vmul.f32 0.5, %v1906_v24  ;;  %v1907_v28 = vadd.f32 1.0, %v3796_v8  ;;  %v1772_v9 = vadd.f32 %v1771_v1, %v1579_v53  ;;  %v1773_v29 = vpop.f32.mrb[111].mxu1  ;;  %2063 = vadd.xlane.f32.xlu1 %v2008_v27  ;;  %v3798_v43 = vpop.eup %3797 }
 0x247   :  { %v1846_v51 = vmul.f32 0.5, %v1770_v60  ;;  %v1774_v54 = vadd.f32 %v1773_v29, %v1581_v42  ;;  %v3800_v18 = vpop.eup %3799 }
 0x248   :  { %v1939_v25 = vmul.f32 0.5, %v1907_v28  ;;  %v1970_v3 = vmul.f32 %v3798_v43, %v1938_v58  ;;  %v1584_v26 = vpop.f32.mrb[124].mxu0 }
 0x249   :  { %3809 = vtanh.f32 %v1846_v51  ;;  %v1847_v20 = vmul.f32 0.5, %v1774_v54  ;;  %v1585_v4 = vadd.f32 %v1584_v26, %v5649_v34  ;;  %v1586_v17 = vpop.f32.mrb[125].mxu0 }
 0x24a   :  { %v2009_v52 = vmul.f32 %v5669_v6, %v1970_v3  ;;  %v1971_v24 = vmul.f32 %v3800_v18, %v1939_v25  ;;  %v1587_v53 = vadd.f32 %v1586_v17, %v5652_v55  ;;  %v1588_v27 = vpop.f32.mrb[126].mxu0  ;;  %v1777_v41 = vpop.f32.mrb[112].mxu1 }
 0x24b   :  { %v3802_v22 = vpop.eup %3801  ;;  %3811 = vtanh.f32 %v1847_v20  ;;  %v1589_v42 = vadd.f32 %v1588_v27, %v5649_v34  ;;  %v1778_v60 = vadd.f32 %v1777_v41, %v1585_v4  ;;  %v1590_v1 = vpop.f32.mrb[127].mxu0 }
 0x24c   :  { %v1908_v8 = vadd.f32 1.0, %v3802_v22  ;;  %v1779_v58 = vpop.f32.mrb[113].mxu1  ;;  %2065 = vadd.xlane.f32.xlu0 %v2009_v52  ;;  %v2010_v28 = vmul.f32 %v5669_v6, %v1971_v24  ;;  %3813 = vtanh.f32 %v1768_v31  ;;  %v1591_v43 = vadd.f32 %v1590_v1, %v5652_v55 }
 0x24d   :  { %v3804_v29 = vpop.eup %3803  ;;  %v1780_v51 = vadd.f32 %v1779_v58, %v1587_v53  ;;  %v1781_v54 = vpop.f32.mrb[114].mxu1  ;;  %3815 = vtanh.f32 %v1772_v9 }
 0x24e   :  { %v1940_v25 = vmul.f32 0.5, %v1908_v8  ;;  %v1909_v3 = vadd.f32 1.0, %v3804_v29  ;;  %v1782_v18 = vadd.f32 %v1781_v54, %v1589_v42  ;;  %v1783_v20 = vpop.f32.mrb[115].mxu1  ;;  %2067 = vadd.xlane.f32.xlu1 %v2010_v28  ;;  %v3806_v26 = vpop.eup %3805 }
 0x24f   :  { %v1848_v17 = vmul.f32 0.5, %v1780_v51  ;;  %v1784_v4 = vadd.f32 %v1783_v20, %v1591_v43  ;;  %v3808_v52 = vpop.eup %3807 }
 0x250   :  { %v1941_v22 = vmul.f32 0.5, %v1909_v3  ;;  %v5731_v27 = vmul.f32 %v3806_v26, %v1940_v25  ;;  %v1627_v31 = vpop.f32.mrb[64].mxu0 }
 0x251   :  { %3817 = vtanh.f32 %v1848_v17  ;;  %v1849_v24 = vmul.f32 0.5, %v1784_v4  ;;  %v1629_v41 = vpop.f32.mrb[65].mxu0  ;;  %v3470_v3 = vadd.f32 %v1627_v31, %v5649_v34 }
 0x252   :  { %v5733_v1 = vmul.f32 %v3808_v52, %v1941_v22  ;;  %v3471_v8 = vadd.f32 %v1629_v41, %v5652_v55  ;;  %v1631_v42 = vpop.f32.mrb[66].mxu0 }
 0x253   :  { %v3810_v53 = vpop.eup %3809  ;;  %3819 = vtanh.f32 %v1849_v24  ;;  %v1633_v28 = vpop.f32.mrb[67].mxu0  ;;  %v3472_v22 = vadd.f32 %v1631_v42, %v5649_v34 }
 0x254   :  { %v1910_v58 = vadd.f32 1.0, %v3810_v53  ;;  %3821 = vtanh.f32 %v1778_v60  ;;  %v1818_v29 = vmul.f32 0.5, %v3471_v8  ;;  %v3473_v43 = vadd.f32 %v1633_v28, %v5652_v55 }
 0x255   :  { %v3812_v9 = vpop.eup %3811  ;;  %3823 = vtanh.f32 %v1782_v18 }
 0x256   :  { %v1942_v51 = vmul.f32 0.5, %v1910_v58  ;;  %v1911_v54 = vadd.f32 1.0, %v3812_v9  ;;  %v3814_v25 = vpop.eup %3813  ;;  %3825 = vtanh.f32 %v1818_v29  ;;  %v1819_v20 = vmul.f32 0.5, %v3473_v43 }
 0x257   :  { %v3816_v4 = vpop.eup %3815 }
 0x258   :  { %v1943_v26 = vmul.f32 0.5, %v1911_v54  ;;  %v5738_v17 = vmul.f32 %v3814_v25, %v1942_v51  ;;  %3827 = vtanh.f32 %v1819_v20  ;;  %v1637_v52 = vpop.f32.mrb[68].mxu0 }
 0x259   :  { %v1639_v60 = vpop.f32.mrb[69].mxu0  ;;  %3829 = vtanh.f32 %v3470_v3  ;;  %v3474_v51 = vadd.f32 %v1637_v52, %v5649_v34 }
 0x25a   :  { %v5741_v24 = vmul.f32 %v3816_v4, %v1943_v26  ;;  %v3475_v18 = vadd.f32 %v1639_v60, %v5652_v55  ;;  %v1641_v53 = vpop.f32.mrb[70].mxu0  ;;  %3831 = vtanh.f32 %v3472_v22 }
 0x25b   :  { %v3818_v41 = vpop.eup %3817  ;;  %v1643_v31 = vpop.f32.mrb[71].mxu0  ;;  %v3476_v4 = vadd.f32 %v1641_v53, %v5649_v34 }
 0x25c   :  { %v1912_v8 = vadd.f32 1.0, %v3818_v41  ;;  %v1820_v28 = vmul.f32 0.5, %v3475_v18  ;;  %v3477_v9 = vadd.f32 %v1643_v31, %v5652_v55 }
 0x25d   :  { %v3820_v58 = vpop.eup %3819 }
 0x25e   :  { %v1944_v29 = vmul.f32 0.5, %v1912_v8  ;;  %v1913_v43 = vadd.f32 1.0, %v3820_v58  ;;  %v3822_v42 = vpop.eup %3821  ;;  %3833 = vtanh.f32 %v1820_v28  ;;  %v1821_v54 = vmul.f32 0.5, %v3477_v9 }
 0x25f   :  { %v3824_v25 = vpop.eup %3823 }
 0x260   :  { %v1945_v20 = vmul.f32 0.5, %v1913_v43  ;;  %v5746_v3 = vmul.f32 %v3822_v42, %v1944_v29  ;;  %v3826_v26 = vpop.eup %3825  ;;  %3835 = vtanh.f32 %v1821_v54  ;;  %v1647_v60 = vpop.f32.mrb[72].mxu0 }
 0x261   :  { %v1882_v22 = vadd.f32 1.0, %v3826_v26  ;;  %v1649_v41 = vpop.f32.mrb[73].mxu0  ;;  %3837 = vtanh.f32 %v3474_v51  ;;  %v3478_v26 = vadd.f32 %v1647_v60, %v5649_v34 }
 0x262   :  { %v5749_v18 = vmul.f32 %v3824_v25, %v1945_v20  ;;  %v3828_v8 = vpop.eup %3827  ;;  %v3479_v31 = vadd.f32 %v1649_v41, %v5652_v55  ;;  %v1651_v52 = vpop.f32.mrb[74].mxu0  ;;  %3839 = vtanh.f32 %v3476_v4 }
 0x263   :  { %v1914_v58 = vmul.f32 0.5, %v1882_v22  ;;  %v1883_v28 = vadd.f32 1.0, %v3828_v8  ;;  %v1653_v9 = vpop.f32.mrb[75].mxu0  ;;  %v3830_v43 = vpop.eup %3829  ;;  %v3480_v22 = vadd.f32 %v1651_v52, %v5649_v34 }
 0x264   :  { %v1822_v29 = vmul.f32 0.5, %v3479_v31  ;;  %v3481_v42 = vadd.f32 %v1653_v9, %v5652_v55  ;;  %v3832_v30 = vpop.eup %3831 }
 0x265   :  { %v1915_v53 = vmul.f32 0.5, %v1883_v28  ;;  %v1946_v54 = vmul.f32 %v3830_v43, %v1914_v58 }
 0x266   :  { %3841 = vtanh.f32 %v1822_v29  ;;  %v1823_v25 = vmul.f32 0.5, %v3481_v42 }
 0x267   :  { %v1985_v51 = vmul.f32 %v5669_v6, %v1946_v54  ;;  %v1947_v20 = vmul.f32 %v3832_v30, %v1915_v53 }
 0x268   :  { %v3834_v41 = vpop.eup %3833  ;;  %3843 = vtanh.f32 %v1823_v25 }
 0x269   :  { %v1884_v8 = vadd.f32 1.0, %v3834_v41  ;;  %2017 = vadd.xlane.f32.xlu0 %v1985_v51  ;;  %3845 = vtanh.f32 %v3478_v26  ;;  %v1986_v58 = vmul.f32 %v5669_v6, %v1947_v20 }
 0x26a   :  { %v3836_v4 = vpop.eup %3835  ;;  %3847 = vtanh.f32 %v3480_v22 }
 0x26b   :  { %v1916_v31 = vmul.f32 0.5, %v1884_v8  ;;  %v1885_v55 = vadd.f32 1.0, %v3836_v4  ;;  %v3838_v28 = vpop.eup %3837 }
 0x26c   :  { %v3840_v43 = vpop.eup %3839 }
 0x26d   :  { %v1917_v60 = vmul.f32 0.5, %v1885_v55  ;;  %2019 = vadd.xlane.f32.xlu0 %v1986_v58  ;;  %v1948_v9 = vmul.f32 %v3838_v28, %v1916_v31  ;;  %v2011_v31 = vmul.f32 %v5669_v6, %v5731_v27  ;;  %v2012_v55 = vmul.f32 %v5669_v6, %v5733_v1 }
 0x26e   :  { %v2013_v58 = vmul.f32 %v5669_v6, %v5738_v17  ;;  %v2014_v28 = vmul.f32 %v5669_v6, %v5741_v24  ;;  %v2016_v27 = vmul.f32 %v5669_v6, %v5749_v18 }
 0x26f   :  { %v1987_v30 = vmul.f32 %v5669_v6, %v1948_v9  ;;  %v1949_v29 = vmul.f32 %v3840_v43, %v1917_v60  ;;  %v2015_v60 = vmul.f32 %v5669_v6, %v5746_v3  ;;  %v3995_v9 = vmov -1e+30  }
 0x270   :  { %v3842_v42 = vpop.eup %3841  ;;  %55 = vst.msk [vmem:[#allocation2] sm:$0x1] %vm54_vm2, %v3995_v9  ;;  %v7295_v9 = vld [vmem:[#allocation19_spill] sm:$0xff] }
 0x271   :  { %v1886_v34 = vadd.f32 1.0, %v3842_v42  ;;  %2021 = vadd.xlane.f32.xlu1 %v1987_v30  ;;  %v1988_v26 = vmul.f32 %v5669_v6, %v1949_v29 }
 0x272   :  { %v3844_v52 = vpop.eup %3843 }
 0x273   :  { %v1918_v53 = vmul.f32 0.5, %v1886_v34  ;;  %v1887_v54 = vadd.f32 1.0, %v3844_v52  ;;  %v3846_v25 = vpop.eup %3845 }
 0x274   :  { %v3848_v41 = vpop.eup %3847 }
 0x275   :  { %v1919_v51 = vmul.f32 0.5, %v1887_v54  ;;  %2023 = vadd.xlane.f32.xlu1 %v1988_v26  ;;  %v1950_v20 = vmul.f32 %v3846_v25, %v1918_v53 }
 0x277   :  { %v1989_v22 = vmul.f32 %v5669_v6, %v1950_v20  ;;  %v1951_v8 = vmul.f32 %v3848_v41, %v1919_v51 }
 0x279   :  { %2025 = vadd.xlane.f32.xlu0 %v1989_v22  ;;  %v1990_v4 = vmul.f32 %v5669_v6, %v1951_v8 }
 0x27b   :  { %2027 = vadd.xlane.f32.xlu1 %v1990_v4 }
 0x27d   :  { %2069 = vadd.xlane.f32.xlu0 %v2011_v31 }
 0x27f   :  { %2071 = vadd.xlane.f32.xlu1 %v2012_v55 }
 0x281   :  { %2073 = vadd.xlane.f32.xlu0 %v2013_v58 }
 0x283   :  { %2075 = vadd.xlane.f32.xlu1 %v2014_v28 }
 0x285   :  { %2077 = vadd.xlane.f32.xlu0 %v2015_v60 }
 0x287   :  { %2079 = vadd.xlane.f32.xlu1 %v2016_v27 }
 0x290   :  { %v2030_v1 = vpop.xlane.xlu0 %2029 }
 0x291   :  { %v5782_v55 = vsel %vm137_vm7, %v2030_v1, -1e+30 }
 0x293   :  { %v2032_v43 = vpop.xlane.xlu1 %2031 }
 0x294   :  { %v5789_v27 = vsel %vm138_vm8, %v2032_v43, -1e+30 }
 0x298   :  { %v2034_v17 = vpop.xlane.xlu0 %2033 }
 0x29b   :  { %v2036_v30 = vpop.xlane.xlu1 %2035 }
 0x2a1   :  { %v2038_v29 = vpop.xlane.xlu0 %2037 }
 0x2a2   :  { %v5801_v1 = vsel %vm141_vm11, %v2038_v29, -1e+30 }
 0x2a3   :  { %v2040_v42 = vpop.xlane.xlu1 %2039 }
 0x2a4   :  { %v5806_v57 = vsel %vm142_vm12, %v2040_v42, -1e+30 }
 0x2a9   :  { %v2042_v24 = vpop.xlane.xlu0 %2041 }
 0x2ab   :  { %v2044_v34 = vpop.xlane.xlu1 %2043 }
 0x2b1   :  { %v2046_v52 = vpop.xlane.xlu0 %2045 }
 0x2b3   :  { %v2048_v53 = vpop.xlane.xlu1 %2047 }
 0x2b4   :  { %v5813_v16 = vsel %vm146_vm14, %v2048_v53, -1e+30 }
 0x2b5   :  { %7289 = vst [vmem:[#allocation22_spill] sm:$0xff] %v5813_v16 }
 0x2b9   :  { %v2050_v3 = vpop.xlane.xlu0 %2049 }
 0x2bb   :  { %v2052_v54 = vpop.xlane.xlu1 %2051 }
 0x2c1   :  { %v2054_v26 = vpop.xlane.xlu0 %2053 }
 0x2c3   :  { %v2056_v25 = vpop.xlane.xlu1 %2055 }
 0x2c9   :  { %v2058_v6 = vpop.xlane.xlu0 %2057 }
 0x2cb   :  { %v2060_v18 = vpop.xlane.xlu1 %2059 }
 0x2d1   :  { %v2062_v51 = vpop.xlane.xlu0 %2061 }
 0x2d3   :  { %v2064_v20 = vpop.xlane.xlu1 %2063 }
 0x2d9   :  { %v2066_v41 = vpop.xlane.xlu0 %2065 }
 0x2db   :  { %v2068_v22 = vpop.xlane.xlu1 %2067 }
 0x2f6   :  { %v2018_v8 = vpop.xlane.xlu0 %2017 }
 0x2f7   :  { %v5818_v29 = vsel %vm131_vm0, %v2018_v8, -1e+30  ;;  %v5836_v8 = vsel %vm145_vm15, %v2046_v52, -1e+30  ;;  %vm7296_vm0 = vcmp.lt.s32.totalorder %v7295_v9, %v4080_v5  ;;  %v7299_v9 = vld [vmem:[#allocation24_spill] sm:$0xff] }
 0x2fa   :  { %v2020_v58 = vpop.xlane.xlu0 %2019 }
 0x2fe   :  { %v2022_v4 = vpop.xlane.xlu1 %2021 }
 0x2ff   :  { %v5777_v31 = vsel %vm133_vm3, %v2022_v4, -1e+30  ;;  %vm7300_vm3 = vcmp.lt.s32.totalorder %v7299_v9, %v4080_v5  ;;  %v7306_v9 = vld [vmem:[#allocation28_spill] sm:$0xff] }
 0x300   :  { %v2206_v28 = vmax.f32 %v5777_v31, %v5782_v55  ;;  %vm7307_vm7 = vcmp.lt.s32.totalorder %v7306_v9, %v4080_v5  ;;  %v7312_v9 = vld [vmem:[#allocation32_spill] sm:$0xff] }
 0x301   :  { %vm7313_vm11 = vcmp.lt.s32.totalorder %v7312_v9, %v4080_v5 }
 0x302   :  { %v2024_v60 = vpop.xlane.xlu1 %2023  ;;  %v2210_v36 = vmax.f32 %v2206_v28, %v5801_v1  ;;  %v5828_v28 = vsel %vm139_vm9, %v2034_v17, -1e+30 }
 0x303   :  { %v5794_v12 = vsel %vm134_vm4, %v2024_v60, -1e+30  ;;  %vm7302_vm4 = vcmp.lt.s32.totalorder %v7301_v19, %v4080_v5  ;;  %v7308_v19 = vld [vmem:[#allocation30_spill] sm:$0xff] }
 0x304   :  { %v2207_v35 = vmax.f32 %v5794_v12, %v5789_v27  ;;  %v2214_v4 = vmax.f32 %v2210_v36, %v5836_v8  ;;  %v5867_v36 = vsel %vm7302_vm4, %v2056_v25, -1e+30  ;;  %vm7309_vm8 = vcmp.lt.s32.totalorder %v7308_v19, %v4080_v5  ;;  %v7315_v19 = vld [vmem:[#allocation33_spill] sm:$0xff] }
 0x305   :  { %v5885_v25 = vsel %vm7309_vm8, %v2054_v26, -1e+30  ;;  %vm7316_vm12 = vcmp.lt.s32.totalorder %v7315_v19, %v4080_v5  ;;  %v7321_v19 = vld [vmem:[#allocation36_spill] sm:$0xff] }
 0x306   :  { %v2211_v43 = vmax.f32 %v2207_v35, %v5806_v57  ;;  %v2026_v13 = vpop.xlane.xlu0 %2025  ;;  %v5903_v26 = vsel %vm7316_vm12, %v2060_v18, -1e+30  ;;  %vm7322_vm15 = vcmp.lt.s32.totalorder %v7321_v19, %v4080_v5  ;;  %v7330_v19 = vld [vmem:[#allocation37_spill] sm:$0xff] }
 0x307   :  { %v5823_v42 = vsel %vm135_vm5, %v2026_v13, -1e+30  ;;  %v5841_v13 = vsel %vm132_vm1, %v2020_v58, -1e+30  ;;  %vm7298_vm1 = vcmp.lt.s32.totalorder %v7297_v10, %v4080_v5  ;;  %v7303_v10 = vld [vmem:[#allocation25_spill] sm:$0xff] }
 0x308   :  { %v2215_v35 = vmax.f32 %v2211_v43, %v5813_v16  ;;  %v2204_v53 = vmax.f32 %v5818_v29, %v5823_v42  ;;  %v2028_v60 = vpop.xlane.xlu1 %2027  ;;  %v7067_v43 = vmov 0.0   ;;  %v5857_v58 = vsel %vm7298_vm1, %v2036_v30, -1e+30 }
 0x309   :  { %v5846_v17 = vsel %vm7296_vm0, %v2028_v60, -1e+30  ;;  %56 = vst.msk [vmem:[#allocation3] sm:$0x1] %vm54_vm2, %v7067_v43  ;;  %v5862_v60 = vsel %vm7300_vm3, %v2042_v24, -1e+30  ;;  %vm7304_vm5 = vcmp.lt.s32.totalorder %v7303_v10, %v4080_v5  ;;  %vm7331_vm1 = vcmp.lt.s32.totalorder %v7330_v19, %v4080_v5 }
 0x30a   :  { %v2208_v0 = vmax.f32 %v2204_v53, %v5828_v28  ;;  %v2205_v52 = vmax.f32 %v5841_v13, %v5846_v17  ;;  %v2070_v46 = vpop.xlane.xlu0 %2069  ;;  %v2219_v32 = vmax.f32 %v2215_v35, %v5867_v36  ;;  %v5875_v30 = vsel %vm7304_vm5, %v2044_v34, -1e+30  ;;  %v7337_v19 = vld [vmem:[#allocation41_spill] sm:$0xff] }
 0x30b   :  { %7305 = vst [vmem:[#allocation23_spill] sm:$0xff] %v5875_v30  ;;  %v5880_v24 = vsel %vm7307_vm7, %v2050_v3, -1e+30  ;;  %v2218_v34 = vmax.f32 %v2214_v4, %v5885_v25  ;;  %v5898_v3 = vsel %vm7313_vm11, %v2058_v6, -1e+30  ;;  %vm7335_vm3 = vcmp.lt.s32.totalorder %v7334_v14, %v4080_v5 }
 0x30c   :  { %v2212_v53 = vmax.f32 %v2208_v0, %v5862_v60  ;;  %v2209_v43 = vmax.f32 %v2205_v52, %v5857_v58  ;;  %v2072_v61 = vpop.xlane.xlu1 %2071  ;;  %v7310_v0 = vld [vmem:[#allocation29_spill] sm:$0xff]  ;;  %7314 = vst [vmem:[#allocation27_spill] sm:$0xff] %v5898_v3  ;;  %v5921_v18 = vsel %vm7322_vm15, %v2066_v41, -1e+30  ;;  %v5939_v41 = vsel %vm7331_vm1, %v2068_v22, -1e+30 }
 0x30d   :  { %vm7311_vm9 = vcmp.lt.s32.totalorder %v7310_v0, %v4080_v5  ;;  %7323 = vst [vmem:[#allocation20_spill] sm:$0xff] %v5921_v18  ;;  %v7324_v0 = vld [vmem:[#allocation38_spill] sm:$0xff]  ;;  %vm7338_vm4 = vcmp.lt.s32.totalorder %v7337_v19, %v4080_v5 }
 0x30e   :  { %v5890_v35 = vsel %vm7311_vm9, %v2052_v54, -1e+30  ;;  %v2213_v52 = vmax.f32 %v2209_v43, %v5875_v30  ;;  %v2216_v10 = vmax.f32 %v2212_v53, %v5880_v24  ;;  %v2074_v40 = vpop.xlane.xlu0 %2073  ;;  %v5908_v54 = vsel %vm154_vm6, %v2064_v20, -1e+30  ;;  %v7318_v43 = vld [vmem:[#allocation34_spill] sm:$0xff] }
 0x30f   :  { %vm7319_vm14 = vcmp.lt.s32.totalorder %v7318_v43, %v4080_v5  ;;  %v2223_v53 = vmax.f32 %v2219_v32, %v5908_v54  ;;  %vm7325_vm6 = vcmp.lt.s32.totalorder %v7324_v0, %v4080_v5  ;;  %v7327_v43 = vld [vmem:[#allocation39_spill] sm:$0xff] }
 0x310   :  { %v5913_v4 = vsel %vm7319_vm14, %v2062_v51, -1e+30  ;;  %v2220_v6 = vmax.f32 %v2216_v10, %v5898_v3  ;;  %v2076_v9 = vpop.xlane.xlu1 %2075  ;;  %v2217_v23 = vmax.f32 %v2213_v52, %v5890_v35  ;;  %v5926_v20 = vsel %vm7325_vm6, %v2070_v46, -1e+30 }
 0x311   :  { %7320 = vst [vmem:[#allocation18_spill] sm:$0xff] %v5913_v4  ;;  %7326 = vst [vmem:[#allocation26_spill] sm:$0xff] %v5926_v20  ;;  %vm7328_vm0 = vcmp.lt.s32.totalorder %v7327_v43, %v4080_v5  ;;  %v2222_v32 = vmax.f32 %v2218_v34, %v5913_v4  ;;  %v5957_v22 = vsel %vm7338_vm4, %v2076_v9, -1e+30  ;;  %v5968_v5 = vld [vmem:[#allocation2] sm:$0x1] }
 0x312   :  { %v5931_v51 = vsel %vm7328_vm0, %v2072_v61, -1e+30  ;;  %v2224_v10 = vmax.f32 %v2220_v6, %v5921_v18  ;;  %v2221_v52 = vmax.f32 %v2217_v23, %v5903_v26  ;;  %v2078_v62 = vpop.xlane.xlu0 %2077  ;;  %v5952_v23 = vsel %vm7335_vm3, %v2074_v40, -1e+30  ;;  %7339 = vst [vmem:[#allocation24_spill] sm:$0xff] %v5957_v22 }
 0x313   :  { %7329 = vst [vmem:[#allocation17_spill] sm:$0xff] %v5931_v51  ;;  %v5944_v46 = vsel %vm161_vm13, %v2078_v62, -1e+30  ;;  %v2226_v61 = vmax.f32 %v2222_v32, %v5926_v20  ;;  %v2227_v43 = vmax.f32 %v2223_v53, %v5931_v51  ;;  %7336 = vst [vmem:[#allocation21_spill] sm:$0xff] %v5952_v23 }
 0x314   :  { %7333 = vst [vmem:[#allocation19_spill] sm:$0xff] %v5944_v46  ;;  %v2225_v34 = vmax.f32 %v2221_v52, %v5939_v41  ;;  %v2080_v6 = vpop.xlane.xlu1 %2079  ;;  %v2228_v53 = vmax.f32 %v2224_v10, %v5952_v23 }
 0x315   :  { %v5962_v62 = vsel %vm162_vm10, %v2080_v6, -1e+30  ;;  %v2230_v52 = vmax.f32 %v2226_v61, %v5944_v46  ;;  %vm2351_vm10 = vcmask 7168  }
 0x316   :  { %v2229_v32 = vmax.f32 %v2225_v34, %v5957_v22  ;;  %v2231_v14 = vmax.f32 %v2227_v43, %v5962_v62 }
 0x318   :  { %v2232_v40 = vmax.f32 %v2228_v53, %v2229_v32  ;;  %v2233_v47 = vmax.f32 %v2230_v52, %v2231_v14 }
 0x31a   :  { %v2234_v56 = vmax.f32 %v2232_v40, %v2233_v47 }
 0x31c   :  { %v2235_v63 = vrot.slane %v2234_v56, 4 }
 0x31e   :  { %v2236_v19 = vmax.f32 %v2234_v56, %v2235_v63 }
 0x320   :  { %v2237_v9 = vrot.slane %v2236_v19, 2 }
 0x322   :  { %v2238_v15 = vmax.f32 %v2236_v19, %v2237_v9 }
 0x324   :  { %v2239_v39 = vrot.slane %v2238_v15, 1 }
 0x326   :  { %v2240_v7 = vmax.f32 %v2238_v15, %v2239_v39 }
 0x328   :  { %3598 = vpush %v2240_v7 }
 0x359   :  { %s3599_s6 = spop %3598 }
 0x35a   :  { %v2242_v10 = vstv %s3599_s6 }
 0x35b   :  { %v5971_v34 = vmax.f32 %v5968_v5, %v2242_v10 }
 0x35d   :  { %2908 = vst.msk [vmem:[#allocation2] sm:$0x1] %vm54_vm2, %v5971_v34  ;;  %v5979_v56 = vrot.slane %v5971_v34, %v4788_v37 }
 0x35f   :  { %v2253_v39 = vsub.f32 %v5818_v29, %v5979_v56  ;;  %v2254_v15 = vsub.f32 %v5841_v13, %v5979_v56  ;;  %v2255_v63 = vsub.f32 %v5777_v31, %v5979_v56  ;;  %v2256_v47 = vsub.f32 %v5794_v12, %v5979_v56 }
 0x360   :  { %v2257_v7 = vsub.f32 %v5823_v42, %v5979_v56  ;;  %v2258_v0 = vsub.f32 %v5846_v17, %v5979_v56  ;;  %v2259_v52 = vsub.f32 %v5782_v55, %v5979_v56  ;;  %v2260_v40 = vsub.f32 %v5789_v27, %v5979_v56 }
 0x361   :  { %v2285_v43 = vmul.f32 1.442695, %v2253_v39  ;;  %v2287_v6 = vmul.f32 1.442695, %v2254_v15  ;;  %v2289_v53 = vmul.f32 1.442695, %v2255_v63  ;;  %v2261_v9 = vsub.f32 %v5828_v28, %v5979_v56 }
 0x362   :  { %v2291_v32 = vmul.f32 1.442695, %v2256_v47  ;;  %v2293_v14 = vmul.f32 1.442695, %v2257_v7  ;;  %v2295_v19 = vmul.f32 1.442695, %v2258_v0  ;;  %v2262_v39 = vsub.f32 %v5857_v58, %v5979_v56 }
 0x363   :  { %3849 = vpow2.f32 %v2285_v43  ;;  %v2297_v10 = vmul.f32 1.442695, %v2259_v52  ;;  %v2299_v15 = vmul.f32 1.442695, %v2260_v40  ;;  %v2263_v63 = vsub.f32 %v5801_v1, %v5979_v56 }
 0x364   :  { %3851 = vpow2.f32 %v2287_v6  ;;  %v2301_v47 = vmul.f32 1.442695, %v2261_v9  ;;  %v2264_v6 = vsub.f32 %v5806_v57, %v5979_v56  ;;  %v2303_v0 = vmul.f32 1.442695, %v2262_v39 }
 0x365   :  { %3853 = vpow2.f32 %v2289_v53  ;;  %v2265_v40 = vsub.f32 %v5862_v60, %v5979_v56  ;;  %v2266_v39 = vsub.f32 %v5875_v30, %v5979_v56  ;;  %v2267_v45 = vsub.f32 %v5836_v8, %v5979_v56 }
 0x366   :  { %3855 = vpow2.f32 %v2291_v32 }
 0x367   :  { %3857 = vpow2.f32 %v2293_v14  ;;  %v2309_v49 = vmul.f32 1.442695, %v2265_v40  ;;  %v2311_v30 = vmul.f32 1.442695, %v2266_v39 }
 0x368   :  { %3859 = vpow2.f32 %v2295_v19  ;;  %v2305_v19 = vmul.f32 1.442695, %v2263_v63 }
 0x369   :  { %3861 = vpow2.f32 %v2297_v10 }
 0x36a   :  { %3863 = vpow2.f32 %v2299_v15  ;;  %v2307_v15 = vmul.f32 1.442695, %v2264_v6 }
 0x36b   :  { %3865 = vpow2.f32 %v2301_v47 }
 0x36c   :  { %3867 = vpow2.f32 %v2303_v0 }
 0x36d   :  { %v3850_v7 = vpop.eup %3849  ;;  %3869 = vpow2.f32 %v2305_v19 }
 0x36e   :  { %v6003_v43 = vpop.eup %3851  ;;  %2441 = vperm.xlu1 %3611, %v3850_v7   ;;  %v2352_v53 = vsel %vm2351_vm10, %v3850_v7, 0.0  ;;  %3871 = vpow2.f32 %v2307_v15 }
 0x36f   :  { %v3854_v32 = vpop.eup %3853  ;;  %v2353_v52 = vsel %vm2351_vm10, %v6003_v43, 0.0  ;;  %3873 = vpow2.f32 %v2309_v49 }
 0x370   :  { %v3856_v14 = vpop.eup %3855  ;;  %v2354_v9 = vadd.f32 %v2353_v52, %v2352_v53  ;;  %v2355_v10 = vsel %vm2351_vm10, %v3854_v32, 0.0  ;;  %v2268_v52 = vsub.f32 %v5813_v16, %v5979_v56  ;;  %3875 = vpow2.f32 %v2311_v30 }
 0x371   :  { %v3858_v61 = vpop.eup %3857  ;;  %v2357_v37 = vsel %vm2351_vm10, %v3856_v14, 0.0 }
 0x372   :  { %2451 = vperm.xlu1 %3611, %v3854_v32   ;;  %v2356_v7 = vadd.f32 %v2355_v10, %v2354_v9  ;;  %v3860_v11 = vpop.eup %3859  ;;  %v2359_v47 = vsel %vm2351_vm10, %v3858_v61, 0.0  ;;  %v2269_v9 = vsub.f32 %v5880_v24, %v5979_v56  ;;  %v2313_v10 = vmul.f32 1.442695, %v2267_v45 }
 0x373   :  { %v3862_v53 = vpop.eup %3861  ;;  %v2361_v0 = vsel %vm2351_vm10, %v3860_v11, 0.0  ;;  %v2315_v16 = vmul.f32 1.442695, %v2268_v52 }
 0x374   :  { %v2358_v63 = vadd.f32 %v2357_v37, %v2356_v7  ;;  %v3864_v32 = vpop.eup %3863  ;;  %v2363_v37 = vsel %vm2351_vm10, %v3862_v53, 0.0  ;;  %v2270_v7 = vsub.f32 %v5890_v35, %v5979_v56  ;;  %3877 = vpow2.f32 %v2313_v10 }
 0x375   :  { %v3866_v19 = vpop.eup %3865  ;;  %v2365_v39 = vsel %vm2351_vm10, %v3864_v32, 0.0  ;;  %3879 = vpow2.f32 %v2315_v16 }
 0x376   :  { %2456 = vperm.xlu1 %3611, %v3856_v14   ;;  %v2360_v6 = vadd.f32 %v2359_v47, %v2358_v63  ;;  %v3868_v15 = vpop.eup %3867  ;;  %v2271_v63 = vsub.f32 %v5885_v25, %v5979_v56  ;;  %v2317_v47 = vmul.f32 1.442695, %v2269_v9  ;;  %v2367_v49 = vsel %vm2351_vm10, %v3866_v19, 0.0 }
 0x377   :  { %v2319_v52 = vmul.f32 1.442695, %v2270_v7  ;;  %v2274_v7 = vsub.f32 %v5903_v26, %v5979_v56 }
 0x378   :  { %v2362_v40 = vadd.f32 %v2361_v0, %v2360_v6  ;;  %v6031_v6 = vpop.eup %3869  ;;  %v2272_v0 = vsub.f32 %v5867_v36, %v5979_v56  ;;  %v2321_v9 = vmul.f32 1.442695, %v2271_v63  ;;  %3881 = vpow2.f32 %v2317_v47 }
 0x379   :  { %3883 = vpow2.f32 %v2319_v52  ;;  %v2275_v63 = vsub.f32 %v5913_v4, %v5979_v56  ;;  %v2327_v52 = vmul.f32 1.442695, %v2274_v7  ;;  %v2278_v7 = vsub.f32 %v5939_v41, %v5979_v56 }
 0x37a   :  { %2461 = vperm.xlu1 %3611, %v3858_v61   ;;  %v2364_v14 = vadd.f32 %v2363_v37, %v2362_v40  ;;  %v2369_v61 = vsel %vm2351_vm10, %v3868_v15, 0.0  ;;  %v3872_v40 = vpop.eup %3871  ;;  %v2273_v37 = vsub.f32 %v5898_v3, %v5979_v56  ;;  %v2323_v16 = vmul.f32 1.442695, %v2272_v0 }
 0x37b   :  { %3885 = vpow2.f32 %v2321_v9  ;;  %v2276_v0 = vsub.f32 %v5908_v54, %v5979_v56  ;;  %v2329_v9 = vmul.f32 1.442695, %v2275_v63  ;;  %v2279_v63 = vsub.f32 %v5926_v20, %v5979_v56 }
 0x37c   :  { %v2366_v45 = vadd.f32 %v2365_v39, %v2364_v14  ;;  %v2371_v14 = vsel %vm2351_vm10, %v6031_v6, 0.0  ;;  %v6040_v39 = vpop.eup %3873  ;;  %v2325_v47 = vmul.f32 1.442695, %v2273_v37  ;;  %3887 = vpow2.f32 %v2323_v16 }
 0x37d   :  { %v2277_v37 = vsub.f32 %v5921_v18, %v5979_v56  ;;  %v2331_v16 = vmul.f32 1.442695, %v2276_v0  ;;  %v2280_v0 = vsub.f32 %v5931_v51, %v5979_v56 }
 0x37e   :  { %2466 = vperm.xlu1 %3611, %v3860_v11   ;;  %v2368_v30 = vadd.f32 %v2367_v49, %v2366_v45  ;;  %v2373_v45 = vsel %vm2351_vm10, %v3872_v40, 0.0  ;;  %v3876_v49 = vpop.eup %3875  ;;  %3889 = vpow2.f32 %v2325_v47 }
 0x37f   :  { %v6049_v3 = vpop.eup %3877  ;;  %3891 = vpow2.f32 %v2327_v52  ;;  %v2333_v47 = vmul.f32 1.442695, %v2277_v37  ;;  %v2335_v52 = vmul.f32 1.442695, %v2278_v7  ;;  %v2281_v37 = vsub.f32 %v5952_v23, %v5979_v56 }
 0x380   :  { %v2370_v10 = vadd.f32 %v2369_v61, %v2368_v30  ;;  %v2375_v61 = vsel %vm2351_vm10, %v6040_v39, 0.0  ;;  %3893 = vpow2.f32 %v2329_v9  ;;  %v2337_v9 = vmul.f32 1.442695, %v2279_v63 }
 0x381   :  { %3895 = vpow2.f32 %v2331_v16  ;;  %v2282_v7 = vsub.f32 %v5957_v22, %v5979_v56  ;;  %v2339_v16 = vmul.f32 1.442695, %v2280_v0  ;;  %v2283_v63 = vsub.f32 %v5944_v46, %v5979_v56 }
 0x382   :  { %2471 = vperm.xlu1 %3611, %v3862_v53   ;;  %v2372_v11 = vadd.f32 %v2371_v14, %v2370_v10  ;;  %v2377_v10 = vsel %vm2351_vm10, %v3876_v49, 0.0  ;;  %v3880_v14 = vpop.eup %3879  ;;  %3897 = vpow2.f32 %v2333_v47  ;;  %v2341_v47 = vmul.f32 1.442695, %v2281_v37 }
 0x383   :  { %v6058_v4 = vpop.eup %3881  ;;  %3899 = vpow2.f32 %v2335_v52  ;;  %v2284_v22 = vsub.f32 %v5962_v62, %v5979_v56  ;;  %v2343_v0 = vmul.f32 1.442695, %v2282_v7 }
 0x384   :  { %v2374_v30 = vadd.f32 %v2373_v45, %v2372_v11  ;;  %v2379_v45 = vsel %vm2351_vm10, %v6049_v3, 0.0  ;;  %3901 = vpow2.f32 %v2337_v9 }
 0x385   :  { %3903 = vpow2.f32 %v2339_v16 }
 0x386   :  { %2476 = vperm.xlu1 %3611, %v3864_v32   ;;  %v2376_v53 = vadd.f32 %v2375_v61, %v2374_v30  ;;  %v2381_v30 = vsel %vm2351_vm10, %v3880_v14, 0.0  ;;  %v3884_v61 = vpop.eup %3883  ;;  %3905 = vpow2.f32 %v2341_v47 }
 0x387   :  { %v6067_v18 = vpop.eup %3885  ;;  %3907 = vpow2.f32 %v2343_v0 }
 0x388   :  { %v2378_v11 = vadd.f32 %v2377_v10, %v2376_v53  ;;  %v2383_v10 = vsel %vm2351_vm10, %v6058_v4, 0.0 }
 0x38a   :  { %2481 = vperm.xlu1 %3611, %v3866_v19   ;;  %v2380_v32 = vadd.f32 %v2379_v45, %v2378_v11  ;;  %v2385_v11 = vsel %vm2351_vm10, %v3884_v61, 0.0  ;;  %v3888_v45 = vpop.eup %3887 }
 0x38b   :  { %v6076_v20 = vpop.eup %3889 }
 0x38c   :  { %v2382_v53 = vadd.f32 %v2381_v30, %v2380_v32  ;;  %v2387_v30 = vsel %vm2351_vm10, %v6067_v18, 0.0 }
 0x38e   :  { %2486 = vperm.xlu1 %3611, %v3868_v15   ;;  %v2384_v19 = vadd.f32 %v2383_v10, %v2382_v53  ;;  %v2389_v53 = vsel %vm2351_vm10, %v3888_v45, 0.0  ;;  %v3892_v10 = vpop.eup %3891 }
 0x38f   :  { %v3894_v23 = vpop.eup %3893  ;;  %v2393_v52 = vsel %vm2351_vm10, %v3892_v10, 0.0 }
 0x390   :  { %v2386_v32 = vadd.f32 %v2385_v11, %v2384_v19  ;;  %v2391_v11 = vsel %vm2351_vm10, %v6076_v20, 0.0  ;;  %v2395_v37 = vsel %vm2351_vm10, %v3894_v23, 0.0 }
 0x392   :  { %2496 = vperm.xlu1 %3611, %v3872_v40   ;;  %v2388_v15 = vadd.f32 %v2387_v30, %v2386_v32  ;;  %v3896_v32 = vpop.eup %3895  ;;  %v2345_v30 = vmul.f32 1.442695, %v2283_v63 }
 0x393   :  { %v3898_v9 = vpop.eup %3897  ;;  %v2397_v51 = vsel %vm2351_vm10, %v3896_v32, 0.0 }
 0x394   :  { %v2390_v19 = vadd.f32 %v2389_v53, %v2388_v15  ;;  %v2347_v15 = vmul.f32 1.442695, %v2284_v22  ;;  %v3900_v56 = vpop.eup %3899  ;;  %3909 = vpow2.f32 %v2345_v30 }
 0x395   :  { %v3902_v16 = vpop.eup %3901  ;;  %v2401_v47 = vsel %vm2351_vm10, %v3900_v56, 0.0 }
 0x396   :  { %2506 = vperm.xlu1 %3611, %v3876_v49   ;;  %v2392_v40 = vadd.f32 %v2391_v11, %v2390_v19  ;;  %v2399_v49 = vsel %vm2351_vm10, %v3898_v9, 0.0  ;;  %3911 = vpow2.f32 %v2347_v15  ;;  %v3904_v19 = vpop.eup %3903  ;;  %v2403_v22 = vsel %vm2351_vm10, %v3902_v16, 0.0 }
 0x397   :  { %v3906_v0 = vpop.eup %3905 }
 0x398   :  { %v2394_v46 = vadd.f32 %v2393_v52, %v2392_v40  ;;  %v3908_v40 = vpop.eup %3907 }
 0x39a   :  { %2516 = vperm.xlu1 %3611, %v3880_v14   ;;  %v2396_v53 = vadd.f32 %v2395_v37, %v2394_v46  ;;  %v2405_v14 = vsel %vm2351_vm10, %v3904_v19, 0.0 }
 0x39c   :  { %v2398_v7 = vadd.f32 %v2397_v51, %v2396_v53  ;;  %v2407_v51 = vsel %vm2351_vm10, %v3906_v0, 0.0 }
 0x39e   :  { %2526 = vperm.xlu1 %3611, %v3884_v61   ;;  %v2400_v63 = vadd.f32 %v2399_v49, %v2398_v7  ;;  %v3910_v30 = vpop.eup %3909  ;;  %v2409_v61 = vsel %vm2351_vm10, %v3908_v40, 0.0 }
 0x39f   :  { %v2411_v7 = vsel %vm2351_vm10, %v3910_v30, 0.0 }
 0x3a0   :  { %v2402_v11 = vadd.f32 %v2401_v47, %v2400_v63  ;;  %v3912_v15 = vpop.eup %3911 }
 0x3a2   :  { %2536 = vperm.xlu1 %3611, %v3888_v45   ;;  %v2404_v46 = vadd.f32 %v2403_v22, %v2402_v11  ;;  %v2413_v45 = vsel %vm2351_vm10, %v3912_v15, 0.0  ;;  %v2943_v11 = vld [vmem:[%s6817_s7 + $0x10] sm:$0xff]  ;;  %v2944_v22 = vld [vmem:[%s6817_s7 + $0x18] sm:$0xff] }
 0x3a4   :  { %v2406_v52 = vadd.f32 %v2405_v14, %v2404_v46 }
 0x3a6   :  { %2546 = vperm.xlu1 %3611, %v3892_v10   ;;  %v2408_v37 = vadd.f32 %v2407_v51, %v2406_v52  ;;  %v7341_v10 = vsub.f32 %v5968_v5, %v5971_v34  ;;  %v2957_v34 = vld [vmem:[%s6817_s7 + $0x80] sm:$0xff] }
 0x3a7   :  { %v2349_v51 = vld [vmem:[#allocation3] sm:$0x1] }
 0x3a8   :  { %v2410_v53 = vadd.f32 %v2409_v61, %v2408_v37  ;;  %v7348_v61 = vld [vmem:[#allocation46_spill] sm:$0xff] }
 0x3aa   :  { %2556 = vperm.xlu1 %3611, %v3896_v32   ;;  %v2412_v49 = vadd.f32 %v2411_v7, %v2410_v53  ;;  %v2245_v32 = vmul.f32 1.442695, %v7341_v10 }
 0x3ac   :  { %v2414_v63 = vadd.f32 %v2413_v45, %v2412_v49  ;;  %3913 = vpow2.f32 %v2245_v32 }
 0x3ae   :  { %2415 = vadd.xlane.f32.xlu0 %v2414_v63  ;;  %2566 = vperm.xlu1 %3611, %v3900_v56   ;;  %v2941_v56 = vld [vmem:[%s6817_s7] sm:$0xff] }
 0x3af   :  { %v7352_v63 = vld [vmem:[#allocation51_spill] sm:$0xff] }
 0x3b0   :  { %v7353_v10 = vmax.f32 %v7352_v63, 0.0 }
 0x3b2   :  { %2576 = vperm.xlu1 %3611, %v3904_v19  }
 0x3b6   :  { %2586 = vperm.xlu1 %3611, %v3908_v40  }
 0x3ba   :  { %2596 = vperm.xlu1 %3611, %v3912_v15   ;;  %v7349_v15 = vmax.f32 %v7348_v61, 0.0  ;;  %v7369_v61 = vmax.f32 %v5613_v50, 0.0  ;;  %v7378_v50 = vld [vmem:[#allocation48_spill] sm:$0xff] }
 0x3c4   :  { %2446 = vperm.xlu0 %3612, %v6003_v43   ;;  %v3914_v43 = vpop.eup %3913 }
 0x3c8   :  { %2491 = vperm.xlu0 %3612, %v6031_v6  }
 0x3cc   :  { %2501 = vperm.xlu0 %3612, %v6040_v39   ;;  %v7342_v39 = vlaneseq }
 0x3ce   :  { %vm6109_vm13 = vcmp.lt.s32.totalorder %v7342_v39, 512 }
 0x3d0   :  { %2511 = vperm.xlu0 %3612, %v6049_v3  }
 0x3d4   :  { %2521 = vperm.xlu0 %3612, %v6058_v4   ;;  %v7601_v4 = vld [vmem:[#allocation26_spill] sm:$0xff] }
 0x3d8   :  { %2531 = vperm.xlu0 %3612, %v6067_v18   ;;  %v7345_v18 = vmov 0.0  }
 0x3d9   :  { %61 = vst.msk [vmem:[#allocation4] sm:$0xf] %vm6109_vm13, %v7345_v18  ;;  %v7354_v18 = vld [vmem:[#allocation50_spill] sm:$0xff] }
 0x3dc   :  { %2541 = vperm.xlu0 %3612, %v6076_v20  }
 0x3e0   :  { %2551 = vperm.xlu0 %3612, %v3894_v23  }
 0x3e4   :  { %2561 = vperm.xlu0 %3612, %v3898_v9   ;;  %v2958_v9 = vld [vmem:[%s6817_s7 + $0x88] sm:$0xff] }
 0x3e8   :  { %2571 = vperm.xlu0 %3612, %v3902_v16   ;;  %v3374_v16 = vpack.c.bf16 %v2958_v9, %v2957_v34  ;;  %v7355_v34 = vmax.f32 %v7354_v18, 0.0  ;;  %v7374_v18 = vld [vmem:[#allocation165_spill] sm:$0xff] }
 0x3ea   :  { %3375 = vmatprep.subr.bf16.mxu1 %v3374_v16 }
 0x3ec   :  { %2581 = vperm.xlu0 %3612, %v3906_v0   ;;  %v3380_v0 = vpack.c.bf16 %v2944_v22, %v2943_v11  ;;  %v7363_v22 = vmax.f32 %v5585_v21, 0.0  ;;  %v7372_v21 = vld [vmem:[#allocation57_spill] sm:$0xff] }
 0x3ed   :  { %v2442_v6 = vpop.permute.xlu1 %2441 }
 0x3ee   :  { %v2600_v53 = vmul.f32 %v2442_v6, %v7349_v15 }
 0x3f0   :  { %2591 = vperm.xlu0 %3612, %v3910_v30  }
 0x3f1   :  { %v2452_v3 = vpop.permute.xlu1 %2451 }
 0x3f2   :  { %v2607_v32 = vmul.f32 %v2452_v3, %v7353_v10  ;;  %v2608_v9 = vmul.f32 %v2452_v3, %v7355_v34  ;;  %v7375_v34 = vmax.f32 %v7374_v18, 0.0 }
 0x3f4   :  { %2431 = vperm.xlu0 %3612, %v3914_v43  }
 0x3f5   :  { %v2457_v20 = vpop.permute.xlu1 %2456 }
 0x3f9   :  { %v2462_v23 = vpop.permute.xlu1 %2461 }
 0x3fa   :  { %v2618_v15 = vmul.f32 %v2462_v23, %v7369_v61 }
 0x3fd   :  { %v2467_v5 = vpop.permute.xlu1 %2466 }
 0x401   :  { %v2472_v46 = vpop.permute.xlu1 %2471 }
 0x405   :  { %v6145_v14 = vpop.permute.xlu1 %2476 }
 0x409   :  { %v6149_v40 = vpop.permute.xlu1 %2481 }
 0x40d   :  { %v6152_v52 = vpop.permute.xlu1 %2486 }
 0x412   :  { %2113 = vxpose.xlu0.b32.start [1/16] (narrow) %v5818_v29, 8  ;;  %v2942_v29 = vld [vmem:[%s6817_s7 + $0x8] sm:$0xff] }
 0x413   :  { %v3376_v47 = vpack.c.bf16 %v2942_v29, %v2941_v56  ;;  %v7356_v56 = vmax.f32 %v5601_v48, 0.0  ;;  %v7357_v29 = vmax.f32 %v5581_v44, 0.0 }
 0x415   :  { %3377 = vmatpush3.bf16.msra.mxu1 %v3376_v47  ;;  %v2609_v16 = vmul.f32 %v2452_v3, %v7356_v56  ;;  %v7360_v47 = vld [vmem:[#allocation53_spill] sm:$0xff]  ;;  %v2621_v56 = vmul.f32 %v2467_v5, %v7375_v34 }
 0x416   :  { %2114 = vxpose.xlu0.b32.cont [2/16] (narrow) %v5841_v13, 8  ;;  %v2960_v13 = vld [vmem:[%s6817_s7 + $0x98] sm:$0xff] }
 0x41a   :  { %2115 = vxpose.xlu0.b32.cont [3/16] (narrow) %v5777_v31, 8  ;;  %v2959_v31 = vld [vmem:[%s6817_s7 + $0x90] sm:$0xff] }
 0x41b   :  { %v3378_v19 = vpack.c.bf16 %v2960_v13, %v2959_v31 }
 0x41d   :  { %3379 = vmatprep.subr.bf16.mxu1 %v3378_v19  ;;  %v7361_v19 = vmax.f32 %v7360_v47, 0.0 }
 0x41e   :  { %2116 = vxpose.xlu0.b32.cont [4/16] (narrow) %v5794_v12, 8  ;;  %3381 = vmatpush3.bf16.msra.mxu1 %v3380_v0  ;;  %v6156_v12 = vpop.permute.xlu1 %2496  ;;  %v2614_v0 = vmul.f32 %v2457_v20, %v7363_v22 }
 0x422   :  { %2117 = vxpose.xlu0.b32.cont [5/16] (narrow) %v5823_v42, 8 }
 0x426   :  { %2118 = vxpose.xlu0.b32.cont [6/16] (narrow) %v5846_v17, 8  ;;  %v7346_v17 = vld [vmem:[#allocation47_spill] sm:$0xff] }
 0x427   :  { %v7347_v37 = vmax.f32 %v7346_v17, 0.0 }
 0x42a   :  { %2119 = vxpose.xlu0.b32.cont [7/16] (narrow) %v5782_v55, 8  ;;  %v2599_v55 = vmul.f32 %v2442_v6, %v7347_v37 }
 0x42e   :  { %2120 = vxpose.xlu0.b32.cont [8/16] (narrow) %v5789_v27, 8  ;;  %v6163_v27 = vpop.permute.xlu1 %2506 }
 0x432   :  { %2121 = vxpose.xlu0.b32.cont [9/16] (narrow) %v5828_v28, 8  ;;  %v6166_v28 = vmul.f32 %v3914_v43, %v2349_v51  ;;  %v7358_v43 = vld [vmem:[#allocation52_spill] sm:$0xff]  ;;  %v6205_v47 = vpop.permute.xlu1 %2516 }
 0x433   :  { %v7359_v31 = vmax.f32 %v7358_v43, 0.0 }
 0x435   :  { %v2611_v13 = vmul.f32 %v2457_v20, %v7359_v31 }
 0x436   :  { %2122 = vxpose.xlu0.b32.cont [10/16] (narrow) %v5857_v58, 8  ;;  %v7350_v58 = vmax.f32 %v5561_v38, 0.0 }
 0x438   :  { %v2601_v49 = vmul.f32 %v2442_v6, %v7350_v58 }
 0x43a   :  { %2123 = vxpose.xlu0.b32.cont [11/16] (narrow) %v5801_v1, 8  ;;  %v7351_v1 = vmax.f32 %v5498_v2, 0.0  ;;  %v2612_v2 = vmul.f32 %v2457_v20, %v7361_v19 }
 0x43b   :  { %v2416_v42 = vpop.xlane.xlu0 %2415 }
 0x43c   :  { %v2417_v30 = vrot.slane %v2416_v42, 4  ;;  %v2602_v45 = vmul.f32 %v2442_v6, %v7351_v1  ;;  %v7362_v6 = vmax.f32 %v5605_v33, 0.0  ;;  %v7370_v33 = vld [vmem:[#allocation56_spill] sm:$0xff] }
 0x43d   :  { %v7371_v1 = vmax.f32 %v7370_v33, 0.0 }
 0x43e   :  { %v2418_v7 = vadd.f32 %v2417_v30, %v2416_v42  ;;  %2124 = vxpose.xlu0.b32.cont [12/16] (narrow) %v5806_v57, 8  ;;  %v2610_v57 = vmul.f32 %v2452_v3, %v7357_v29  ;;  %v2613_v11 = vmul.f32 %v2457_v20, %v7362_v6  ;;  %v7364_v42 = vld [vmem:[#allocation55_spill] sm:$0xff]  ;;  %v7366_v30 = vld [vmem:[#allocation54_spill] sm:$0xff]  ;;  %v7368_v3 = vmax.f32 %v5629_v59, 0.0  ;;  %v7376_v29 = vld [vmem:[#allocation164_spill] sm:$0xff] }
 0x43f   :  { %v7365_v51 = vmax.f32 %v7364_v42, 0.0  ;;  %v7367_v17 = vmax.f32 %v7366_v30, 0.0  ;;  %v2619_v63 = vmul.f32 %v2467_v5, %v7371_v1  ;;  %v7373_v20 = vmax.f32 %v7372_v21, 0.0  ;;  %v7382_v6 = vld [vmem:[#allocation163_spill] sm:$0xff]  ;;  %v7388_v1 = vld [vmem:[#allocation58_spill] sm:$0xff] }
 0x440   :  { %v2419_v38 = vrot.slane %v2418_v7, 2  ;;  %v2617_v37 = vmul.f32 %v2462_v23, %v7368_v3  ;;  %v7377_v43 = vmax.f32 %v7376_v29, 0.0  ;;  %v7383_v22 = vmax.f32 %v7382_v6, 0.0  ;;  %v7386_v3 = vld [vmem:[#allocation59_spill] sm:$0xff] }
 0x441   :  { %v2615_v48 = vmul.f32 %v2462_v23, %v7365_v51  ;;  %v2616_v44 = vmul.f32 %v2462_v23, %v7367_v17  ;;  %v2620_v10 = vmul.f32 %v2467_v5, %v7373_v20  ;;  %v7379_v23 = vmax.f32 %v7378_v50, 0.0  ;;  %v7384_v51 = vld [vmem:[#allocation154_spill] sm:$0xff]  ;;  %v7390_v20 = vld [vmem:[#allocation61_spill] sm:$0xff]  ;;  %v7393_v6 = vld [vmem:[#allocation63_spill] sm:$0xff] }
 0x442   :  { %2125 = vxpose.xlu0.b32.cont [13/16] (narrow) %v5862_v60, 8  ;;  %v2420_v58 = vadd.f32 %v2419_v38, %v2418_v7  ;;  %v2622_v31 = vmul.f32 %v2467_v5, %v7377_v43  ;;  %v7380_v60 = vld [vmem:[#allocation49_spill] sm:$0xff]  ;;  %v7385_v30 = vmax.f32 %v7384_v51, 0.0  ;;  %v7387_v61 = vmax.f32 %v7386_v3, 0.0 }
 0x443   :  { %v2447_v59 = vpop.permute.xlu0 %2446  ;;  %v7381_v7 = vmax.f32 %v7380_v60, 0.0  ;;  %v7389_v5 = vmax.f32 %v7388_v1, 0.0  ;;  %v7391_v18 = vmax.f32 %v7390_v20, 0.0 }
 0x444   :  { %v2603_v19 = vmul.f32 %v2447_v59, %v7379_v23  ;;  %v2605_v42 = vmul.f32 %v2447_v59, %v7383_v22  ;;  %v2606_v17 = vmul.f32 %v2447_v59, %v7385_v30  ;;  %v2623_v33 = vmul.f32 %v2472_v46, %v7387_v61  ;;  %v7397_v61 = vld [vmem:[#allocation62_spill] sm:$0xff] }
 0x445   :  { %v2604_v38 = vmul.f32 %v2447_v59, %v7381_v7  ;;  %v2624_v21 = vmul.f32 %v2472_v46, %v7389_v5  ;;  %v2625_v34 = vmul.f32 %v2472_v46, %v7391_v18  ;;  %v2421_v29 = vrot.slane %v2420_v58, 1  ;;  %v7392_v7 = vld [vmem:[#allocation23_spill] sm:$0xff]  ;;  %v7395_v59 = vld [vmem:[#allocation60_spill] sm:$0xff] }
 0x446   :  { %v2727_v43 = vadd.f32 %v2603_v19, %v2599_v55  ;;  %v2801_v23 = vadd.f32 %v2605_v42, %v2601_v49  ;;  %v2838_v60 = vadd.f32 %v2606_v17, %v2602_v45  ;;  %2126 = vxpose.xlu0.b32.cont [14/16] (narrow) %v7392_v7, 8  ;;  %v7394_v22 = vmax.f32 %v7393_v6, 0.0  ;;  %v2961_v55 = vld [vmem:[%s6817_s7 + $0xa0] sm:$0xff]  ;;  %v7399_v42 = vld [vmem:[#allocation64_spill] sm:$0xff]  ;;  %v6256_v6 = vpop.permute.xlu1 %2526 }
 0x447   :  { %v2764_v50 = vadd.f32 %v2604_v38, %v2600_v53  ;;  %v7396_v30 = vmax.f32 %v7395_v59, 0.0  ;;  %v7398_v1 = vmax.f32 %v7397_v61, 0.0  ;;  %v6230_v20 = vpop.permute.xlu0 %2491  ;;  %v2422_v18 = vadd.f32 %v2421_v29, %v2420_v58  ;;  %v2945_v38 = vld [vmem:[%s6817_s7 + $0x20] sm:$0xff]  ;;  %v2946_v58 = vld [vmem:[%s6817_s7 + $0x28] sm:$0xff] }
 0x448   :  { %v2626_v51 = vmul.f32 %v2472_v46, %v7394_v22  ;;  %v2728_v53 = vadd.f32 %v2727_v43, %v2607_v32  ;;  %v2802_v45 = vadd.f32 %v2801_v23, %v2609_v16  ;;  %v2839_v19 = vadd.f32 %v2838_v60, %v2610_v57  ;;  %v2962_v46 = vld [vmem:[%s6817_s7 + $0xa8] sm:$0xff]  ;;  %v7401_v32 = vld [vmem:[#allocation65_spill] sm:$0xff]  ;;  %v7405_v23 = vld [vmem:[#allocation66_spill] sm:$0xff] }
 0x449   :  { %v2627_v3 = vmul.f32 %v6145_v14, %v7396_v30  ;;  %v2628_v5 = vmul.f32 %v6145_v14, %v7398_v1  ;;  %v2765_v49 = vadd.f32 %v2764_v50, %v2608_v9  ;;  %v7400_v17 = vmax.f32 %v7399_v42, 0.0  ;;  %v7403_v57 = vld [vmem:[#allocation67_spill] sm:$0xff]  ;;  %3600 = vpush %v2422_v18  ;;  %v7407_v1 = vld [vmem:[#allocation69_spill] sm:$0xff] }
 0x44a   :  { %v7402_v9 = vmax.f32 %v7401_v32, 0.0  ;;  %v7404_v43 = vmax.f32 %v7403_v57, 0.0  ;;  %v7406_v60 = vmax.f32 %v7405_v23, 0.0  ;;  %v2729_v22 = vadd.f32 %v2728_v53, %v2611_v13  ;;  %2127 = vxpose.xlu0.b32.cont [15/16] (narrow) %v5836_v8, 8  ;;  %v7413_v53 = vld [vmem:[#allocation70_spill] sm:$0xff] }
 0x44b   :  { %v2629_v29 = vmul.f32 %v6145_v14, %v7400_v17  ;;  %v2766_v59 = vadd.f32 %v2765_v49, %v2612_v2  ;;  %v2803_v30 = vadd.f32 %v2802_v45, %v2613_v11  ;;  %v2840_v61 = vadd.f32 %v2839_v19, %v2614_v0  ;;  %v7409_v17 = vld [vmem:[#allocation71_spill] sm:$0xff]  ;;  %v6265_v57 = vpop.permute.xlu0 %2501  ;;  %v7411_v11 = vld [vmem:[#allocation68_spill] sm:$0xff] }
 0x44c   :  { %v2630_v16 = vmul.f32 %v6145_v14, %v7402_v9  ;;  %v2631_v50 = vmul.f32 %v6149_v40, %v7404_v43  ;;  %v2632_v7 = vmul.f32 %v6149_v40, %v7406_v60  ;;  %v7408_v42 = vmax.f32 %v7407_v1, 0.0  ;;  %v7415_v19 = vld [vmem:[#allocation72_spill] sm:$0xff] }
 0x44d   :  { %v7410_v32 = vmax.f32 %v7409_v17, 0.0  ;;  %v3382_v43 = vpack.c.bf16 %v2962_v46, %v2961_v55  ;;  %v3384_v18 = vpack.c.bf16 %v2946_v58, %v2945_v38  ;;  %v2730_v23 = vadd.f32 %v2729_v22, %v2615_v48  ;;  %v7419_v46 = vld [vmem:[#allocation22_spill] sm:$0xff]  ;;  %v7420_v38 = vld [vmem:[#allocation76_spill] sm:$0xff] }
 0x44e   :  { %v2633_v14 = vmul.f32 %v6149_v40, %v7408_v42  ;;  %v2767_v60 = vadd.f32 %v2766_v59, %v2616_v44  ;;  %v2804_v13 = vadd.f32 %v2803_v30, %v2617_v37  ;;  %v2841_v2 = vadd.f32 %v2840_v61, %v2618_v15  ;;  %v7417_v42 = vld [vmem:[#allocation73_spill] sm:$0xff]  ;;  %2128 = vxpose.xlu0.b32.end [16/16] (narrow) %v7419_v46, 8  ;;  %v7422_v59 = vld [vmem:[#allocation78_spill] sm:$0xff] }
 0x44f   :  { %v2634_v9 = vmul.f32 %v6149_v40, %v7410_v32  ;;  %v7412_v0 = vmax.f32 %v7411_v11, 0.0  ;;  %v7414_v49 = vmax.f32 %v7413_v53, 0.0  ;;  %v7416_v1 = vmax.f32 %v7415_v19, 0.0  ;;  %3383 = vmatprep.subr.bf16.mxu1 %v3382_v43  ;;  %v7424_v32 = vld [vmem:[#allocation80_spill] sm:$0xff]  ;;  %v7430_v19 = vld [vmem:[#allocation86_spill] sm:$0xff]  ;;  %v7434_v46 = vld [vmem:[#allocation89_spill] sm:$0xff] }
 0x450   :  { %v7418_v17 = vmax.f32 %v7417_v42, 0.0  ;;  %v2731_v48 = vadd.f32 %v2730_v23, %v2619_v63  ;;  %v2768_v44 = vadd.f32 %v2767_v60, %v2620_v10  ;;  %v2805_v37 = vadd.f32 %v2804_v13, %v2621_v56  ;;  %v6292_v10 = vpop.permute.xlu0 %2511  ;;  %3385 = vmatpush3.bf16.msra.mxu1 %v3384_v18  ;;  %v6294_v56 = vpop.permute.xlu1 %2536 }
 0x451   :  { %v2635_v8 = vmul.f32 %v6152_v52, %v7412_v0  ;;  %v2636_v45 = vmul.f32 %v6152_v52, %v7414_v49  ;;  %v2637_v40 = vmul.f32 %v6152_v52, %v7416_v1  ;;  %v2842_v15 = vadd.f32 %v2841_v2, %v2622_v31  ;;  %v7428_v2 = vld [vmem:[#allocation84_spill] sm:$0xff] }
 0x452   :  { %v2638_v55 = vmul.f32 %v6152_v52, %v7418_v17  ;;  %v7421_v58 = vmax.f32 %v7420_v38, 0.0  ;;  %v7423_v30 = vmax.f32 %v7422_v59, 0.0  ;;  %v7425_v11 = vmax.f32 %v7424_v32, 0.0  ;;  %v7426_v52 = vld [vmem:[#allocation81_spill] sm:$0xff]  ;;  %v7440_v32 = vld [vmem:[#allocation96_spill] sm:$0xff] }
 0x453   :  { %v7427_v43 = vmax.f32 %v7426_v52, 0.0  ;;  %v2732_v31 = vadd.f32 %v2731_v48, %v2623_v33  ;;  %v2769_v23 = vadd.f32 %v2768_v44, %v2624_v21  ;;  %v2806_v60 = vadd.f32 %v2805_v37, %v2625_v34  ;;  %v7436_v37 = vld [vmem:[#allocation92_spill] sm:$0xff] }
 0x454   :  { %v2643_v22 = vmul.f32 %v6156_v12, %v7421_v58  ;;  %v2644_v61 = vmul.f32 %v6156_v12, %v7423_v30  ;;  %v2645_v0 = vmul.f32 %v6156_v12, %v7425_v11  ;;  %v2843_v13 = vadd.f32 %v2842_v15, %v2626_v51  ;;  %v7438_v58 = vld [vmem:[#allocation94_spill] sm:$0xff] }
 0x455   :  { %v2646_v63 = vmul.f32 %v6156_v12, %v7427_v43  ;;  %v7429_v53 = vmax.f32 %v7428_v2, 0.0  ;;  %v7431_v1 = vmax.f32 %v7430_v19, 0.0  ;;  %v7432_v12 = vld [vmem:[#allocation88_spill] sm:$0xff]  ;;  %v7435_v33 = vmax.f32 %v7434_v46, 0.0  ;;  %v7444_v2 = vld [vmem:[#allocation75_spill] sm:$0xff] }
 0x456   :  { %v7433_v17 = vmax.f32 %v7432_v12, 0.0  ;;  %v2733_v34 = vadd.f32 %v2732_v31, %v2627_v3  ;;  %v2770_v51 = vadd.f32 %v2769_v23, %v2628_v5  ;;  %v2807_v48 = vadd.f32 %v2806_v60, %v2629_v29  ;;  %v6336_v29 = vpop.permute.xlu0 %2521  ;;  %v2963_v60 = vld [vmem:[%s6817_s7 + $0xb0] sm:$0xff] }
 0x457   :  { %v6299_v49 = vmul.f32 %v6163_v27, %v7429_v53  ;;  %v6304_v42 = vmul.f32 %v6163_v27, %v7431_v1  ;;  %v6314_v21 = vmul.f32 %v6163_v27, %v7435_v33  ;;  %v2844_v44 = vadd.f32 %v2843_v13, %v2630_v16  ;;  %v2964_v13 = vld [vmem:[%s6817_s7 + $0xb8] sm:$0xff]  ;;  %v6356_v33 = vpop.permute.xlu1 %2546 }
 0x458   :  { %v6309_v18 = vmul.f32 %v6163_v27, %v7433_v17  ;;  %v7437_v15 = vmax.f32 %v7436_v37, 0.0  ;;  %v7439_v59 = vmax.f32 %v7438_v58, 0.0  ;;  %v7441_v11 = vmax.f32 %v7440_v32, 0.0  ;;  %v7442_v27 = vld [vmem:[#allocation97_spill] sm:$0xff]  ;;  %v7452_v37 = vld [vmem:[#allocation100_spill] sm:$0xff] }
 0x459   :  { %v7443_v3 = vmax.f32 %v7442_v27, 0.0  ;;  %v2734_v16 = vadd.f32 %v2733_v34, %v2631_v50  ;;  %v2771_v43 = vadd.f32 %v2770_v51, %v2632_v7  ;;  %v2808_v31 = vadd.f32 %v2807_v48, %v2633_v14  ;;  %v7448_v50 = vld [vmem:[#allocation77_spill] sm:$0xff]  ;;  %v7456_v27 = vld [vmem:[#allocation104_spill] sm:$0xff] }
 0x45a   :  { %v6319_v38 = vmul.f32 %v6205_v47, %v7437_v15  ;;  %v6324_v30 = vmul.f32 %v6205_v47, %v7439_v59  ;;  %v6329_v52 = vmul.f32 %v6205_v47, %v7441_v11  ;;  %v2845_v23 = vadd.f32 %v2844_v44, %v2634_v9  ;;  %v7450_v9 = vld [vmem:[#allocation79_spill] sm:$0xff]  ;;  %v7454_v59 = vld [vmem:[#allocation102_spill] sm:$0xff] }
 0x45b   :  { %v6334_v5 = vmul.f32 %v6205_v47, %v7443_v3  ;;  %v7445_v53 = vmax.f32 %v7444_v2, 0.0  ;;  %v7446_v47 = vld [vmem:[#allocation74_spill] sm:$0xff]  ;;  %v7449_v7 = vmax.f32 %v7448_v50, 0.0  ;;  %v7451_v17 = vmax.f32 %v7450_v9, 0.0  ;;  %v6373_v2 = vpop.permute.xlu0 %2531 }
 0x45c   :  { %v7447_v1 = vmax.f32 %v7446_v47, 0.0  ;;  %v2735_v34 = vadd.f32 %v2734_v16, %v2635_v8  ;;  %v2772_v51 = vadd.f32 %v2771_v43, %v2636_v45  ;;  %v2809_v48 = vadd.f32 %v2808_v31, %v2637_v40  ;;  %v2947_v43 = vld [vmem:[%s6817_s7 + $0x30] sm:$0xff]  ;;  %v2948_v31 = vld [vmem:[%s6817_s7 + $0x38] sm:$0xff] }
 0x45d   :  { %v2639_v19 = vmul.f32 %v6230_v20, %v7445_v53  ;;  %v2641_v14 = vmul.f32 %v6230_v20, %v7449_v7  ;;  %v2642_v46 = vmul.f32 %v6230_v20, %v7451_v17  ;;  %v2846_v44 = vadd.f32 %v2845_v23, %v2638_v55  ;;  %v7458_v23 = vld [vmem:[#allocation83_spill] sm:$0xff] }
 0x45e   :  { %v2640_v12 = vmul.f32 %v6230_v20, %v7447_v1  ;;  %v7453_v15 = vmax.f32 %v7452_v37, 0.0  ;;  %v7455_v32 = vmax.f32 %v7454_v59, 0.0  ;;  %v7457_v3 = vmax.f32 %v7456_v27, 0.0  ;;  %v7460_v1 = vld [vmem:[#allocation82_spill] sm:$0xff]  ;;  %v7464_v7 = vld [vmem:[#allocation87_spill] sm:$0xff] }
 0x45f   :  { %v3386_v8 = vpack.c.bf16 %v2964_v13, %v2963_v60  ;;  %v2736_v45 = vadd.f32 %v2735_v34, %v2639_v19  ;;  %v2810_v55 = vadd.f32 %v2809_v48, %v2641_v14  ;;  %v2847_v16 = vadd.f32 %v2846_v44, %v2642_v46  ;;  %v7462_v13 = vld [vmem:[#allocation85_spill] sm:$0xff]  ;;  %v7470_v27 = vld [vmem:[#allocation110_spill] sm:$0xff] }
 0x460   :  { %v6361_v58 = vmul.f32 %v6256_v6, %v7453_v15  ;;  %v6366_v11 = vmul.f32 %v6256_v6, %v7455_v32  ;;  %v6371_v20 = vmul.f32 %v6256_v6, %v7457_v3  ;;  %v2773_v40 = vadd.f32 %v2772_v51, %v2640_v12  ;;  %v7466_v48 = vld [vmem:[#allocation105_spill] sm:$0xff]  ;;  %v7468_v15 = vld [vmem:[#allocation108_spill] sm:$0xff] }
 0x461   :  { %v7459_v53 = vmax.f32 %v7458_v23, 0.0  ;;  %v7461_v50 = vmax.f32 %v7460_v1, 0.0  ;;  %v7463_v19 = vmax.f32 %v7462_v13, 0.0  ;;  %v7465_v14 = vmax.f32 %v7464_v7, 0.0  ;;  %3387 = vmatprep.subr.bf16.mxu1 %v3386_v8  ;;  %v7478_v7 = vld [vmem:[#allocation95_spill] sm:$0xff] }
 0x462   :  { %v2737_v17 = vadd.f32 %v2736_v45, %v2643_v22  ;;  %v2774_v46 = vadd.f32 %v2773_v40, %v2644_v61  ;;  %v2811_v34 = vadd.f32 %v2810_v55, %v2645_v0  ;;  %v2848_v51 = vadd.f32 %v2847_v16, %v2646_v63  ;;  %v2557_v61 = vpop.permute.xlu1 %2556  ;;  %v7472_v40 = vld [vmem:[#allocation91_spill] sm:$0xff]  ;;  %v7474_v16 = vld [vmem:[#allocation90_spill] sm:$0xff] }
 0x463   :  { %v2647_v47 = vmul.f32 %v6265_v57, %v7459_v53  ;;  %v2648_v60 = vmul.f32 %v6265_v57, %v7461_v50  ;;  %v2649_v12 = vmul.f32 %v6265_v57, %v7463_v19  ;;  %v2650_v9 = vmul.f32 %v6265_v57, %v7465_v14  ;;  %v6406_v57 = vpop.permute.xlu0 %2541  ;;  %v7476_v50 = vld [vmem:[#allocation93_spill] sm:$0xff] }
 0x464   :  { %v7467_v44 = vmax.f32 %v7466_v48, 0.0  ;;  %v7469_v59 = vmax.f32 %v7468_v15, 0.0  ;;  %v7471_v3 = vmax.f32 %v7470_v27, 0.0  ;;  %v3388_v22 = vpack.c.bf16 %v2948_v31, %v2947_v43 }
 0x465   :  { %v2738_v0 = vadd.f32 %v2737_v17, %v2647_v47  ;;  %v2775_v63 = vadd.f32 %v2774_v46, %v2648_v60  ;;  %v2812_v8 = vadd.f32 %v2811_v34, %v2649_v12  ;;  %v2849_v45 = vadd.f32 %v2848_v51, %v2650_v9  ;;  %v7480_v9 = vld [vmem:[#allocation112_spill] sm:$0xff]  ;;  %v7482_v34 = vld [vmem:[#allocation113_spill] sm:$0xff] }
 0x466   :  { %v2670_v37 = vmul.f32 %v6256_v6, %v7467_v44  ;;  %v6399_v32 = vmul.f32 %v6294_v56, %v7469_v59  ;;  %v6404_v23 = vmul.f32 %v6294_v56, %v7471_v3  ;;  %v7473_v6 = vmax.f32 %v7472_v40, 0.0  ;;  %3389 = vmatpush3.bf16.msra.mxu1 %v3388_v22  ;;  %v7484_v44 = vld [vmem:[#allocation116_spill] sm:$0xff] }
 0x467   :  { %v7475_v53 = vmax.f32 %v7474_v16, 0.0  ;;  %v7477_v13 = vmax.f32 %v7476_v50, 0.0  ;;  %v7479_v14 = vmax.f32 %v7478_v7, 0.0  ;;  %v2739_v31 = vadd.f32 %v2738_v0, %v6299_v49  ;;  %v7486_v49 = vld [vmem:[#allocation118_spill] sm:$0xff]  ;;  %v7488_v0 = vld [vmem:[#allocation99_spill] sm:$0xff] }
 0x468   :  { %v2655_v55 = vmul.f32 %v6292_v10, %v7473_v6  ;;  %v2776_v47 = vadd.f32 %v2775_v63, %v6304_v42  ;;  %v2813_v60 = vadd.f32 %v2812_v8, %v6309_v18  ;;  %v2850_v12 = vadd.f32 %v2849_v45, %v6314_v21  ;;  %v6440_v18 = vpop.permute.xlu0 %2551  ;;  %v7490_v8 = vld [vmem:[#allocation98_spill] sm:$0xff]  ;;  %v7492_v6 = vld [vmem:[#allocation101_spill] sm:$0xff]  ;;  %v7494_v50 = vld [vmem:[#allocation103_spill] sm:$0xff] }
 0x469   :  { %v2656_v1 = vmul.f32 %v6292_v10, %v7475_v53  ;;  %v2657_v19 = vmul.f32 %v6292_v10, %v7477_v13  ;;  %v2658_v43 = vmul.f32 %v6292_v10, %v7479_v14  ;;  %v7481_v17 = vmax.f32 %v7480_v9, 0.0 }
 0x46a   :  { %v7483_v51 = vmax.f32 %v7482_v34, 0.0  ;;  %v7485_v15 = vmax.f32 %v7484_v44, 0.0  ;;  %v7487_v59 = vmax.f32 %v7486_v49, 0.0  ;;  %v2740_v21 = vadd.f32 %v2739_v31, %v2655_v55  ;;  %v2567_v55 = vpop.permute.xlu1 %2566  ;;  %v7496_v31 = vld [vmem:[#allocation120_spill] sm:$0xff]  ;;  %v7502_v44 = vld [vmem:[#allocation126_spill] sm:$0xff] }
 0x46b   :  { %v2677_v46 = vmul.f32 %v6294_v56, %v7481_v17  ;;  %v2777_v27 = vadd.f32 %v2776_v47, %v2656_v1  ;;  %v2814_v3 = vadd.f32 %v2813_v60, %v2657_v19  ;;  %v2851_v22 = vadd.f32 %v2850_v12, %v2658_v43  ;;  %v7498_v12 = vld [vmem:[#allocation121_spill] sm:$0xff]  ;;  %v7500_v34 = vld [vmem:[#allocation124_spill] sm:$0xff] }
 0x46c   :  { %v2678_v48 = vmul.f32 %v6294_v56, %v7483_v51  ;;  %v6433_v10 = vmul.f32 %v6356_v33, %v7485_v15  ;;  %v6438_v42 = vmul.f32 %v6356_v33, %v7487_v59  ;;  %v7489_v63 = vmax.f32 %v7488_v0, 0.0 }
 0x46d   :  { %v7491_v45 = vmax.f32 %v7490_v8, 0.0  ;;  %v7493_v16 = vmax.f32 %v7492_v6, 0.0  ;;  %v7495_v13 = vmax.f32 %v7494_v50, 0.0  ;;  %v2741_v1 = vadd.f32 %v2740_v21, %v6319_v38  ;;  %v6475_v21 = vpop.permute.xlu0 %2561 }
 0x46e   :  { %v2663_v56 = vmul.f32 %v6336_v29, %v7489_v63  ;;  %v2778_v19 = vadd.f32 %v2777_v27, %v6324_v30  ;;  %v2815_v14 = vadd.f32 %v2814_v3, %v6329_v52  ;;  %v2852_v43 = vadd.f32 %v2851_v22, %v6334_v5  ;;  %v2965_v30 = vld [vmem:[%s6817_s7 + $0xc0] sm:$0xff]  ;;  %v2950_v3 = vld [vmem:[%s6817_s7 + $0x48] sm:$0xff] }
 0x46f   :  { %v2664_v40 = vmul.f32 %v6336_v29, %v7491_v45  ;;  %v2665_v53 = vmul.f32 %v6336_v29, %v7493_v16  ;;  %v2666_v7 = vmul.f32 %v6336_v29, %v7495_v13  ;;  %v7497_v47 = vmax.f32 %v7496_v31, 0.0  ;;  %v2949_v27 = vld [vmem:[%s6817_s7 + $0x40] sm:$0xff] }
 0x470   :  { %v7499_v9 = vmax.f32 %v7498_v12, 0.0  ;;  %v7501_v51 = vmax.f32 %v7500_v34, 0.0  ;;  %v7503_v38 = vmax.f32 %v7502_v44, 0.0  ;;  %v2742_v52 = vadd.f32 %v2741_v1, %v2663_v56  ;;  %v7504_v22 = vld [vmem:[#allocation107_spill] sm:$0xff]  ;;  %v7506_v56 = vld [vmem:[#allocation106_spill] sm:$0xff]  ;;  %v7514_v12 = vld [vmem:[#allocation129_spill] sm:$0xff] }
 0x471   :  { %v2685_v60 = vmul.f32 %v6356_v33, %v7497_v47  ;;  %v2779_v5 = vadd.f32 %v2778_v19, %v2664_v40  ;;  %v2816_v49 = vadd.f32 %v2815_v14, %v2665_v53  ;;  %v2853_v59 = vadd.f32 %v2852_v43, %v2666_v7  ;;  %v7508_v40 = vld [vmem:[#allocation109_spill] sm:$0xff]  ;;  %v7510_v53 = vld [vmem:[#allocation111_spill] sm:$0xff]  ;;  %v7512_v43 = vld [vmem:[#allocation128_spill] sm:$0xff] }
 0x472   :  { %v2686_v17 = vmul.f32 %v6356_v33, %v7499_v9  ;;  %v6466_v29 = vmul.f32 %v2557_v61, %v7501_v51  ;;  %v6470_v15 = vmul.f32 %v2557_v61, %v7503_v38  ;;  %v2966_v33 = vld [vmem:[%s6817_s7 + $0xc8] sm:$0xff]  ;;  %v7505_v0 = vmax.f32 %v7504_v22, 0.0  ;;  %v2577_v38 = vpop.permute.xlu1 %2576 }
 0x473   :  { %v7507_v8 = vmax.f32 %v7506_v56, 0.0  ;;  %v7509_v6 = vmax.f32 %v7508_v40, 0.0  ;;  %v7511_v50 = vmax.f32 %v7510_v53, 0.0  ;;  %v2743_v7 = vadd.f32 %v2742_v52, %v6361_v58  ;;  %v7518_v52 = vld [vmem:[#allocation114_spill] sm:$0xff]  ;;  %v2572_v40 = vpop.permute.xlu0 %2571 }
 0x474   :  { %v2671_v63 = vmul.f32 %v6373_v2, %v7505_v0  ;;  %v2780_v1 = vadd.f32 %v2779_v5, %v6366_v11  ;;  %v2817_v19 = vadd.f32 %v2816_v49, %v6371_v20  ;;  %v2854_v14 = vadd.f32 %v2853_v59, %v2670_v37  ;;  %v7520_v5 = vld [vmem:[#allocation117_spill] sm:$0xff] }
 0x475   :  { %v2672_v45 = vmul.f32 %v6373_v2, %v7507_v8  ;;  %v2673_v16 = vmul.f32 %v6373_v2, %v7509_v6  ;;  %v2674_v13 = vmul.f32 %v6373_v2, %v7511_v50  ;;  %v7513_v31 = vmax.f32 %v7512_v43, 0.0  ;;  %v7516_v8 = vld [vmem:[#allocation115_spill] sm:$0xff]  ;;  %v7524_v6 = vld [vmem:[#allocation132_spill] sm:$0xff]  ;;  %v7526_v50 = vld [vmem:[#allocation134_spill] sm:$0xff] }
 0x476   :  { %v7515_v9 = vmax.f32 %v7514_v12, 0.0  ;;  %v3390_v51 = vpack.c.bf16 %v2966_v33, %v2965_v30  ;;  %v3392_v44 = vpack.c.bf16 %v2950_v3, %v2949_v27  ;;  %v2744_v22 = vadd.f32 %v2743_v7, %v2671_v63  ;;  %v7530_v43 = vld [vmem:[#allocation137_spill] sm:$0xff] }
 0x477   :  { %v2693_v47 = vmul.f32 %v2557_v61, %v7513_v31  ;;  %v2781_v0 = vadd.f32 %v2780_v1, %v2672_v45  ;;  %v2818_v56 = vadd.f32 %v2817_v19, %v2673_v16  ;;  %v2855_v2 = vadd.f32 %v2854_v14, %v2674_v13  ;;  %v7528_v1 = vld [vmem:[#allocation136_spill] sm:$0xff] }
 0x478   :  { %v2694_v34 = vmul.f32 %v2557_v61, %v7515_v9  ;;  %v7517_v58 = vmax.f32 %v7516_v8, 0.0  ;;  %v7519_v20 = vmax.f32 %v7518_v52, 0.0  ;;  %v7521_v49 = vmax.f32 %v7520_v5, 0.0  ;;  %v7522_v61 = vld [vmem:[#allocation119_spill] sm:$0xff]  ;;  %3391 = vmatprep.subr.bf16.mxu1 %v3390_v51 }
 0x479   :  { %v7523_v30 = vmax.f32 %v7522_v61, 0.0  ;;  %v2745_v27 = vadd.f32 %v2744_v22, %v6399_v32  ;;  %v2782_v3 = vadd.f32 %v2781_v0, %v6404_v23  ;;  %v2819_v63 = vadd.f32 %v2818_v56, %v2677_v46  ;;  %3393 = vmatpush3.bf16.msra.mxu1 %v3392_v44  ;;  %v7532_v46 = vld [vmem:[#allocation123_spill] sm:$0xff]  ;;  %v7534_v44 = vld [vmem:[#allocation122_spill] sm:$0xff]  ;;  %v7536_v56 = vld [vmem:[#allocation125_spill] sm:$0xff] }
 0x47a   :  { %v2679_v11 = vmul.f32 %v6406_v57, %v7517_v58  ;;  %v2680_v37 = vmul.f32 %v6406_v57, %v7519_v20  ;;  %v2681_v59 = vmul.f32 %v6406_v57, %v7521_v49  ;;  %v2856_v45 = vadd.f32 %v2855_v2, %v2678_v48  ;;  %v7538_v58 = vld [vmem:[#allocation127_spill] sm:$0xff]  ;;  %s3601_s23 = spop %3600 }
 0x47b   :  { %v2682_v33 = vmul.f32 %v6406_v57, %v7523_v30  ;;  %v7525_v16 = vmax.f32 %v7524_v6, 0.0  ;;  %v7527_v13 = vmax.f32 %v7526_v50, 0.0  ;;  %v7529_v19 = vmax.f32 %v7528_v1, 0.0  ;;  %v2582_v1 = vpop.permute.xlu0 %2581 }
 0x47c   :  { %v7531_v57 = vmax.f32 %v7530_v43, 0.0  ;;  %v2746_v12 = vadd.f32 %v2745_v27, %v2679_v11  ;;  %v2783_v32 = vadd.f32 %v2782_v3, %v2680_v37  ;;  %v2820_v9 = vadd.f32 %v2819_v63, %v2681_v59  ;;  %v2587_v11 = vpop.permute.xlu1 %2586  ;;  %v7540_v59 = vld [vmem:[#allocation140_spill] sm:$0xff] }
 0x47d   :  { %v2699_v53 = vmul.f32 %v2567_v55, %v7525_v16  ;;  %v2700_v7 = vmul.f32 %v2567_v55, %v7527_v13  ;;  %v2701_v14 = vmul.f32 %v2567_v55, %v7529_v19  ;;  %v2857_v23 = vadd.f32 %v2856_v45, %v2682_v33  ;;  %v7542_v33 = vld [vmem:[#allocation142_spill] sm:$0xff]  ;;  %v7544_v63 = vld [vmem:[#allocation144_spill] sm:$0xff]  ;;  %v7546_v16 = vld [vmem:[#allocation145_spill] sm:$0xff] }
 0x47e   :  { %v2702_v31 = vmul.f32 %v2567_v55, %v7531_v57  ;;  %v7533_v48 = vmax.f32 %v7532_v46, 0.0  ;;  %v7535_v22 = vmax.f32 %v7534_v44, 0.0  ;;  %v7537_v2 = vmax.f32 %v7536_v56, 0.0  ;;  %v2968_v19 = vld [vmem:[%s6817_s7 + $0xd8] sm:$0xff]  ;;  %v2951_v43 = vld [vmem:[%s6817_s7 + $0x50] sm:$0xff]  ;;  %v7548_v57 = vld [vmem:[#allocation131_spill] sm:$0xff] }
 0x47f   :  { %v7539_v52 = vmax.f32 %v7538_v58, 0.0  ;;  %v2747_v20 = vadd.f32 %v2746_v12, %v6433_v10  ;;  %v2784_v37 = vadd.f32 %v2783_v32, %v6438_v42  ;;  %v2821_v5 = vadd.f32 %v2820_v9, %v2685_v60  ;;  %v2967_v10 = vld [vmem:[%s6817_s7 + $0xd0] sm:$0xff]  ;;  %v7550_v9 = vld [vmem:[#allocation130_spill] sm:$0xff] }
 0x480   :  { %v2687_v51 = vmul.f32 %v6440_v18, %v7533_v48  ;;  %v2688_v0 = vmul.f32 %v6440_v18, %v7535_v22  ;;  %v2689_v8 = vmul.f32 %v6440_v18, %v7537_v2  ;;  %v2858_v49 = vadd.f32 %v2857_v23, %v2686_v17  ;;  %v7552_v48 = vld [vmem:[#allocation133_spill] sm:$0xff]  ;;  %v7554_v22 = vld [vmem:[#allocation135_spill] sm:$0xff] }
 0x481   :  { %v2690_v55 = vmul.f32 %v6440_v18, %v7539_v52  ;;  %v7541_v61 = vmax.f32 %v7540_v59, 0.0  ;;  %v7543_v27 = vmax.f32 %v7542_v33, 0.0  ;;  %v7545_v45 = vmax.f32 %v7544_v63, 0.0 }
 0x482   :  { %v7547_v50 = vmax.f32 %v7546_v16, 0.0  ;;  %v2748_v18 = vadd.f32 %v2747_v20, %v2687_v51  ;;  %v2785_v42 = vadd.f32 %v2784_v37, %v2688_v0  ;;  %v2822_v60 = vadd.f32 %v2821_v5, %v2689_v8  ;;  %v7558_v5 = vld [vmem:[#allocation150_spill] sm:$0xff] }
 0x483   :  { %v2707_v30 = vmul.f32 %v2577_v38, %v7541_v61  ;;  %v2708_v3 = vmul.f32 %v2577_v38, %v7543_v27  ;;  %v2709_v6 = vmul.f32 %v2577_v38, %v7545_v45  ;;  %v2859_v17 = vadd.f32 %v2858_v49, %v2690_v55  ;;  %v7556_v55 = vld [vmem:[#allocation148_spill] sm:$0xff]  ;;  %v2597_v27 = vpop.permute.xlu1 %2596 }
 0x484   :  { %v2710_v13 = vmul.f32 %v2577_v38, %v7547_v50  ;;  %v2952_v38 = vld [vmem:[%s6817_s7 + $0x58] sm:$0xff]  ;;  %v7549_v12 = vmax.f32 %v7548_v57, 0.0  ;;  %v7551_v23 = vmax.f32 %v7550_v9, 0.0  ;;  %v7553_v51 = vmax.f32 %v7552_v48, 0.0 }
 0x485   :  { %v7555_v0 = vmax.f32 %v7554_v22, 0.0  ;;  %v2749_v2 = vadd.f32 %v2748_v18, %v6466_v29  ;;  %v2786_v8 = vadd.f32 %v2785_v42, %v6470_v15  ;;  %v2823_v58 = vadd.f32 %v2822_v60, %v2693_v47  ;;  %v7562_v18 = vld [vmem:[#allocation138_spill] sm:$0xff] }
 0x486   :  { %v2695_v32 = vmul.f32 %v6475_v21, %v7549_v12  ;;  %v2696_v46 = vmul.f32 %v6475_v21, %v7551_v23  ;;  %v2697_v44 = vmul.f32 %v6475_v21, %v7553_v51  ;;  %v2860_v52 = vadd.f32 %v2859_v17, %v2694_v34  ;;  %v7564_v34 = vld [vmem:[#allocation141_spill] sm:$0xff]  ;;  %v7566_v17 = vld [vmem:[#allocation143_spill] sm:$0xff]  ;;  %v7568_v23 = vld [vmem:[#allocation152_spill] sm:$0xff] }
 0x487   :  { %v2698_v56 = vmul.f32 %v6475_v21, %v7555_v0  ;;  %v7557_v20 = vmax.f32 %v7556_v55, 0.0  ;;  %v7559_v49 = vmax.f32 %v7558_v5, 0.0  ;;  %v3394_v61 = vpack.c.bf16 %v2968_v19, %v2967_v10  ;;  %v7560_v21 = vld [vmem:[#allocation139_spill] sm:$0xff]  ;;  %v7570_v51 = vld [vmem:[#allocation153_spill] sm:$0xff] }
 0x488   :  { %v3396_v33 = vpack.c.bf16 %v2952_v38, %v2951_v43  ;;  %v2750_v63 = vadd.f32 %v2749_v2, %v2695_v32  ;;  %v2787_v45 = vadd.f32 %v2786_v8, %v2696_v46  ;;  %v2824_v16 = vadd.f32 %v2823_v58, %v2697_v44  ;;  %v2592_v32 = vpop.permute.xlu0 %2591  ;;  %v7572_v0 = vld [vmem:[#allocation157_spill] sm:$0xff]  ;;  %v7574_v8 = vld [vmem:[#allocation147_spill] sm:$0xff] }
 0x489   :  { %v2715_v37 = vmul.f32 %v2587_v11, %v7557_v20  ;;  %v2716_v59 = vmul.f32 %v2587_v11, %v7559_v49  ;;  %v2861_v50 = vadd.f32 %v2860_v52, %v2698_v56  ;;  %v7561_v57 = vmax.f32 %v7560_v21, 0.0  ;;  %3395 = vmatprep.subr.bf16.mxu1 %v3394_v61  ;;  %v7578_v5 = vld [vmem:[#allocation149_spill] sm:$0xff] }
 0x48a   :  { %v7563_v15 = vmax.f32 %v7562_v18, 0.0  ;;  %v7565_v42 = vmax.f32 %v7564_v34, 0.0  ;;  %v7567_v12 = vmax.f32 %v7566_v17, 0.0  ;;  %v2751_v10 = vadd.f32 %v2750_v63, %v2699_v53  ;;  %3397 = vmatpush3.bf16.msra.mxu1 %v3396_v33  ;;  %v7580_v33 = vld [vmem:[#allocation151_spill] sm:$0xff] }
 0x48b   :  { %v2703_v29 = vmul.f32 %v2572_v40, %v7561_v57  ;;  %v2788_v19 = vadd.f32 %v2787_v45, %v2700_v7  ;;  %v2825_v43 = vadd.f32 %v2824_v16, %v2701_v14  ;;  %v2862_v38 = vadd.f32 %v2861_v50, %v2702_v31  ;;  %v7576_v14 = vld [vmem:[#allocation146_spill] sm:$0xff] }
 0x48c   :  { %v2704_v47 = vmul.f32 %v2572_v40, %v7563_v15  ;;  %v2705_v60 = vmul.f32 %v2572_v40, %v7565_v42  ;;  %v2706_v9 = vmul.f32 %v2572_v40, %v7567_v12  ;;  %v7569_v46 = vmax.f32 %v7568_v23, 0.0  ;;  %v7586_v42 = vld [vmem:[#allocation158_spill] sm:$0xff]  ;;  %v7588_v12 = vld [vmem:[#allocation160_spill] sm:$0xff] }
 0x48d   :  { %v7571_v44 = vmax.f32 %v7570_v51, 0.0  ;;  %v7573_v56 = vmax.f32 %v7572_v0, 0.0  ;;  %v7575_v58 = vmax.f32 %v7574_v8, 0.0  ;;  %v2752_v40 = vadd.f32 %v2751_v10, %v2703_v29  ;;  %v7584_v29 = vld [vmem:[#allocation155_spill] sm:$0xff]  ;;  %v2971_v23 = vld [vmem:[%s6817_s7 + $0xf0] sm:$0xff] }
 0x48e   :  { %v2717_v48 = vmul.f32 %v2587_v11, %v7569_v46  ;;  %v2789_v55 = vadd.f32 %v2788_v19, %v2704_v47  ;;  %v2826_v53 = vadd.f32 %v2825_v43, %v2705_v60  ;;  %v2863_v7 = vadd.f32 %v2862_v38, %v2706_v9  ;;  %v2972_v46 = vld [vmem:[%s6817_s7 + $0xf8] sm:$0xff]  ;;  %v2955_v8 = vld [vmem:[%s6817_s7 + $0x70] sm:$0xff] }
 0x48f   :  { %v2718_v22 = vmul.f32 %v2587_v11, %v7571_v44  ;;  %v2723_v2 = vmul.f32 %v2597_v27, %v7573_v56  ;;  %v2711_v52 = vmul.f32 %v2582_v1, %v7575_v58  ;;  %v7577_v31 = vmax.f32 %v7576_v14, 0.0  ;;  %v7582_v11 = vld [vmem:[#allocation156_spill] sm:$0xff]  ;;  %v2956_v58 = vld [vmem:[%s6817_s7 + $0x78] sm:$0xff] }
 0x490   :  { %v7579_v49 = vmax.f32 %v7578_v5, 0.0  ;;  %v7581_v63 = vmax.f32 %v7580_v33, 0.0  ;;  %v7583_v16 = vmax.f32 %v7582_v11, 0.0  ;;  %v2753_v21 = vadd.f32 %v2752_v40, %v2707_v30  ;;  %v2970_v30 = vld [vmem:[%s6817_s7 + $0xe8] sm:$0xff] }
 0x491   :  { %v2712_v20 = vmul.f32 %v2582_v1, %v7577_v31  ;;  %v2790_v57 = vadd.f32 %v2789_v55, %v2708_v3  ;;  %v2827_v18 = vadd.f32 %v2826_v53, %v2709_v6  ;;  %v2864_v15 = vadd.f32 %v2863_v7, %v2710_v13  ;;  %v2953_v3 = vld [vmem:[%s6817_s7 + $0x60] sm:$0xff] }
 0x492   :  { %v2713_v61 = vmul.f32 %v2582_v1, %v7579_v49  ;;  %v2714_v45 = vmul.f32 %v2582_v1, %v7581_v63  ;;  %v2719_v50 = vmul.f32 %v2592_v32, %v7583_v16  ;;  %v7585_v47 = vmax.f32 %v7584_v29, 0.0  ;;  %v2969_v1 = vld [vmem:[%s6817_s7 + $0xe0] sm:$0xff] }
 0x493   :  { %v7587_v60 = vmax.f32 %v7586_v42, 0.0  ;;  %v7589_v9 = vmax.f32 %v7588_v12, 0.0  ;;  %v2424_v19 = vstv %s3601_s23  ;;  %v2754_v6 = vadd.f32 %v2753_v21, %v2711_v52  ;;  %v7590_v7 = vld [vmem:[#allocation159_spill] sm:$0xff]  ;;  %v7594_v49 = vld [vmem:[#allocation162_spill] sm:$0xff] }
 0x494   :  { %v2720_v34 = vmul.f32 %v2592_v32, %v7585_v47  ;;  %v2791_v13 = vadd.f32 %v2790_v57, %v2712_v20  ;;  %v2828_v43 = vadd.f32 %v2827_v18, %v2713_v61  ;;  %v2865_v38 = vadd.f32 %v2864_v15, %v2714_v45  ;;  %v7592_v20 = vld [vmem:[#allocation161_spill] sm:$0xff] }
 0x495   :  { %v2721_v17 = vmul.f32 %v2592_v32, %v7587_v60  ;;  %v2722_v10 = vmul.f32 %v2592_v32, %v7589_v9  ;;  %v2954_v32 = vld [vmem:[%s6817_s7 + $0x68] sm:$0xff]  ;;  %v2425_v51 = vadd.f32 %v2424_v19, %v6166_v28  ;;  %v3398_v44 = vpack.c.bf16 %v2970_v30, %v2969_v1 }
 0x496   :  { %v3400_v0 = vpack.c.bf16 %v2954_v32, %v2953_v3  ;;  %v3402_v56 = vpack.c.bf16 %v2972_v46, %v2971_v23  ;;  %v2755_v52 = vadd.f32 %v2754_v6, %v2715_v37  ;;  %v2792_v40 = vadd.f32 %v2791_v13, %v2716_v59  ;;  %v7596_v23 = vld [vmem:[#allocation16_spill] sm:$0xff] }
 0x497   :  { %v2829_v55 = vadd.f32 %v2828_v43, %v2717_v48  ;;  %v2866_v53 = vadd.f32 %v2865_v38, %v2718_v22  ;;  %v7591_v14 = vmax.f32 %v7590_v7, 0.0  ;;  %v7593_v28 = vmax.f32 %v7592_v20, 0.0  ;;  %2427 = vst.msk [vmem:[#allocation3] sm:$0x1] %vm54_vm2, %v2425_v51  ;;  %3399 = vmatprep.subr.bf16.mxu1 %v3398_v44  ;;  %v7597_v7 = vld [vmem:[#allocation45_spill] sm:$0xff] }
 0x498   :  { %v7595_v61 = vmax.f32 %v7594_v49, 0.0  ;;  %v3404_v63 = vpack.c.bf16 %v2956_v58, %v2955_v8  ;;  %v2756_v45 = vadd.f32 %v2755_v52, %v2719_v50  ;;  %v2793_v11 = vadd.f32 %v2792_v40, %v2720_v34  ;;  %3401 = vmatpush3.bf16.msra.mxu1 %v3400_v0  ;;  %v2432_v8 = vpop.permute.xlu0 %2431 }
 0x499   :  { %v2724_v31 = vmul.f32 %v2597_v27, %v7591_v14  ;;  %v2725_v5 = vmul.f32 %v2597_v27, %v7593_v28  ;;  %v2830_v16 = vadd.f32 %v2829_v55, %v2721_v17  ;;  %v2867_v37 = vadd.f32 %v2866_v53, %v2722_v10  ;;  %3403 = vmatprep.subr.bf16.mxu1 %v3402_v56  ;;  %v2915_v28 = vld [vmem:[#allocation2] sm:$0x1] }
 0x49a   :  { %v2726_v33 = vmul.f32 %v2597_v27, %v7595_v61  ;;  %v2757_v59 = vadd.f32 %v2756_v45, %v2723_v2  ;;  %v3997_v27 = vmov 1966171168   ;;  %v2437_v14 = vrot.slane %v2432_v8, %v7597_v7  ;;  %v3000_v8 = vld [vmem:[%s6817_s7 + $0x1d8] sm:$0xff] }
 0x49b   :  { %v2794_v48 = vadd.f32 %v2793_v11, %v2724_v31  ;;  %v2831_v22 = vadd.f32 %v2830_v16, %v2725_v5  ;;  %v2181_v47 = vunpack.c.l.s4 %v3997_v27  ;;  %v2428_v31 = vld [vmem:[#allocation4] sm:$0xf]  ;;  %v7599_v16 = vld [vmem:[#allocation18_spill] sm:$0xff]  ;;  %vm2200_vm2 = vcmp.lt.s32.totalorder %v7342_v39, 256 }
 0x49c   :  { %v2868_v21 = vadd.f32 %v2867_v37, %v2726_v33  ;;  %v2758_v57 = vrot.slane %v2757_v59, 4  ;;  %3405 = vmatpush3.bf16.msra.mxu1 %v3404_v63  ;;  %v2438_v49 = vmul.f32 %v2437_v14, %v2428_v31  ;;  %v2989_v33 = vld [vmem:[%s6817_s7 + $0x180] sm:$0xff]  ;;  %v2990_v63 = vld [vmem:[%s6817_s7 + $0x188] sm:$0xff] }
 0x49d   :  { %v2795_v18 = vrot.slane %v2794_v48, 4  ;;  %v2832_v15 = vrot.slane %v2831_v22, 4  ;;  %v2182_v19 = vunpack.c.0.s8 %v2181_v47  ;;  %v3406_v45 = vpack.c.bf16 %v2990_v63, %v2989_v33  ;;  %v7598_v11 = vld [vmem:[#allocation27_spill] sm:$0xff]  ;;  %v7600_v37 = vld [vmem:[#allocation20_spill] sm:$0xff] }
 0x49e   :  { %v2869_v29 = vrot.slane %v2868_v21, 4  ;;  %v2759_v42 = vadd.f32 %v2758_v57, %v2757_v59  ;;  %v2912_v34 = vld [vmem:[#allocation3] sm:$0x1]  ;;  %v2975_v47 = vld [vmem:[%s6817_s7 + $0x110] sm:$0xff]  ;;  %v3002_v14 = vld [vmem:[%s6817_s7 + $0x1e8] sm:$0xff] }
 0x49f   :  { %v2796_v60 = vadd.f32 %v2795_v18, %v2794_v48  ;;  %v2833_v12 = vadd.f32 %v2832_v15, %v2831_v22  ;;  %3915 = vrcp.f32 %v2912_v34  ;;  %v6642_v46 = vsub.s32 %v2182_v19, %v7596_v23  ;;  %3407 = vmatprep.subr.bf16.mxu1 %v3406_v45  ;;  %v2974_v48 = vld [vmem:[%s6817_s7 + $0x108] sm:$0xff]  ;;  %v2995_v19 = vld [vmem:[%s6817_s7 + $0x1b0] sm:$0xff] }
 0x4a0   :  { %v2870_v50 = vadd.f32 %v2869_v29, %v2868_v21  ;;  %v2760_v17 = vrot.slane %v2759_v42, 2  ;;  %v2992_v21 = vld [vmem:[%s6817_s7 + $0x198] sm:$0xff]  ;;  %v7606_v18 = vld [vmem:[#allocation44_spill] sm:$0xff] }
 0x4a1   :  { %v2797_v9 = vrot.slane %v2796_v60, 2  ;;  %v2834_v10 = vrot.slane %v2833_v12, 2  ;;  %v2994_v34 = vld [vmem:[%s6817_s7 + $0x1a8] sm:$0xff]  ;;  %v2987_v45 = vld [vmem:[%s6817_s7 + $0x170] sm:$0xff] }
 0x4a2   :  { %v2871_v2 = vrot.slane %v2870_v50, 2  ;;  %v2761_v1 = vadd.f32 %v2760_v17, %v2759_v42  ;;  %v2976_v42 = vld [vmem:[%s6817_s7 + $0x118] sm:$0xff] }
 0x4a3   :  { %v2798_v30 = vadd.f32 %v2797_v9, %v2796_v60  ;;  %v2835_v3 = vadd.f32 %v2834_v10, %v2833_v12  ;;  %v7607_v60 = vsub.s32 3, %v7596_v23  ;;  %v3412_v17 = vpack.c.bf16 %v2976_v42, %v2975_v47  ;;  %v2977_v10 = vld [vmem:[%s6817_s7 + $0x120] sm:$0xff] }
 0x4a4   :  { %v2872_v6 = vadd.f32 %v2871_v2, %v2870_v50  ;;  %v2762_v13 = vrot.slane %v2761_v1, 1  ;;  %v2993_v50 = vld [vmem:[%s6817_s7 + $0x1a0] sm:$0xff]  ;;  %v2978_v2 = vld [vmem:[%s6817_s7 + $0x128] sm:$0xff] }
 0x4a5   :  { %v2799_v43 = vrot.slane %v2798_v30, 1  ;;  %v2836_v38 = vrot.slane %v2835_v3, 1  ;;  %v3414_v9 = vpack.c.bf16 %v2994_v34, %v2993_v50 }
 0x4a6   :  { %v2873_v32 = vrot.slane %v2872_v6, 1  ;;  %v2763_v51 = vadd.f32 %v2762_v13, %v2761_v1  ;;  %v2996_v1 = vld [vmem:[%s6817_s7 + $0x1b8] sm:$0xff] }
 0x4a7   :  { %v2800_v44 = vadd.f32 %v2799_v43, %v2798_v30  ;;  %v2837_v0 = vadd.f32 %v2836_v38, %v2835_v3  ;;  %v3416_v30 = vpack.c.bf16 %v2978_v2, %v2977_v10  ;;  %v3418_v3 = vpack.c.bf16 %v2996_v1, %v2995_v19  ;;  %v2980_v13 = vld [vmem:[%s6817_s7 + $0x138] sm:$0xff]  ;;  %v2997_v43 = vld [vmem:[%s6817_s7 + $0x1c0] sm:$0xff]  ;;  %v2998_v38 = vld [vmem:[%s6817_s7 + $0x1c8] sm:$0xff] }
 0x4a8   :  { %v2874_v56 = vadd.f32 %v2873_v32, %v2872_v6  ;;  %v2979_v6 = vld [vmem:[%s6817_s7 + $0x130] sm:$0xff] }
 0x4a9   :  { %v2879_v58 = vcombine.low %v2763_v51, %v2800_v44  ;;  %v3916_v40 = vpop.eup %3915  ;;  %v3420_v32 = vpack.c.bf16 %v2980_v13, %v2979_v6  ;;  %v3422_v51 = vpack.c.bf16 %v2998_v38, %v2997_v43  ;;  %v2981_v44 = vld [vmem:[%s6817_s7 + $0x140] sm:$0xff] }
 0x4aa   :  { %v2880_v52 = vcombine.low %v2837_v0, %v2874_v56  ;;  %2930 = vperm.xlu1 %3611, %v3916_v40   ;;  %v2982_v0 = vld [vmem:[%s6817_s7 + $0x148] sm:$0xff]  ;;  %v2999_v56 = vld [vmem:[%s6817_s7 + $0x1d0] sm:$0xff] }
 0x4ab   :  { %v2887_v55 = vrot.slane %v2879_v58, %v6642_v46  ;;  %v3424_v58 = vpack.c.bf16 %v2982_v0, %v2981_v44  ;;  %v2983_v40 = vld [vmem:[%s6817_s7 + $0x150] sm:$0xff] }
 0x4ac   :  { %v2894_v53 = vrot.slane %v2880_v52, %v6642_v46  ;;  %v3426_v52 = vpack.c.bf16 %v3000_v8, %v2999_v56 }
 0x4ae   :  { %v2895_v20 = vcombine.low %v2887_v55, %v2894_v53  ;;  %2918 = vperm.xlu1 %3611, %v2915_v28   ;;  %v2984_v55 = vld [vmem:[%s6817_s7 + $0x158] sm:$0xff]  ;;  %v3001_v53 = vld [vmem:[%s6817_s7 + $0x1e0] sm:$0xff] }
 0x4af   :  { %v3428_v31 = vpack.c.bf16 %v2984_v55, %v2983_v40  ;;  %v2985_v28 = vld [vmem:[%s6817_s7 + $0x160] sm:$0xff] }
 0x4b0   :  { %v2902_v5 = vrot.slane %v2895_v20, %v6642_v46  ;;  %v3430_v20 = vpack.c.bf16 %v3002_v14, %v3001_v53 }
 0x4b2   :  { %v2904_v61 = vadd.f32 %v2902_v5, %v2438_v49  ;;  %v2986_v5 = vld [vmem:[%s6817_s7 + $0x168] sm:$0xff]  ;;  %v3003_v49 = vld [vmem:[%s6817_s7 + $0x1f0] sm:$0xff] }
 0x4b3   :  { %v3432_v33 = vpack.c.bf16 %v2986_v5, %v2985_v28 }
 0x4b4   :  { %2907 = vst.msk [vmem:[#allocation4] sm:$0xf] %vm6109_vm13, %v2904_v61  ;;  %v3004_v61 = vld [vmem:[%s6817_s7 + $0x1f8] sm:$0xff] }
 0x4b5   :  { %v3434_v63 = vpack.c.bf16 %v3004_v61, %v3003_v49 }
 0x4d7   :  { %2145 = vxpose.xlu1.b32.start [1/16] (narrow) %v5880_v24, 8  ;;  %v7602_v24 = vld [vmem:[#allocation17_spill] sm:$0xff] }
 0x4db   :  { %2146 = vxpose.xlu1.b32.cont [2/16] (narrow) %v5890_v35, 8  ;;  %v7603_v35 = vld [vmem:[#allocation21_spill] sm:$0xff] }
 0x4df   :  { %2147 = vxpose.xlu1.b32.cont [3/16] (narrow) %v5885_v25, 8  ;;  %v7604_v25 = vld [vmem:[#allocation24_spill] sm:$0xff] }
 0x4e3   :  { %2148 = vxpose.xlu1.b32.cont [4/16] (narrow) %v5867_v36, 8  ;;  %v7605_v36 = vld [vmem:[#allocation19_spill] sm:$0xff] }
 0x4e7   :  { %2149 = vxpose.xlu1.b32.cont [5/16] (narrow) %v7598_v11, 8  ;;  %v2988_v11 = vld [vmem:[%s6817_s7 + $0x178] sm:$0xff] }
 0x4eb   :  { %2150 = vxpose.xlu1.b32.cont [6/16] (narrow) %v5903_v26, 8 }
 0x4ef   :  { %2151 = vxpose.xlu1.b32.cont [7/16] (narrow) %v7599_v16, 8  ;;  %v3436_v16 = vpack.c.bf16 %v2988_v11, %v2987_v45 }
 0x4f3   :  { %2152 = vxpose.xlu1.b32.cont [8/16] (narrow) %v5908_v54, 8  ;;  %v2939_v54 = vld [vmem:[#allocation4] sm:$0xf] }
 0x4f7   :  { %2153 = vxpose.xlu1.b32.cont [9/16] (narrow) %v7600_v37, 8  ;;  %v7608_v37 = vsub.s32 2, %v7596_v23 }
 0x4fb   :  { %2154 = vxpose.xlu1.b32.cont [10/16] (narrow) %v5939_v41, 8  ;;  %v2973_v41 = vld [vmem:[%s6817_s7 + $0x100] sm:$0xff] }
 0x4fc   :  { %v3408_v29 = vpack.c.bf16 %v2974_v48, %v2973_v41 }
 0x4ff   :  { %2155 = vxpose.xlu1.b32.cont [11/16] (narrow) %v7601_v4, 8 }
 0x503   :  { %2156 = vxpose.xlu1.b32.cont [12/16] (narrow) %v7602_v24, 8 }
 0x507   :  { %2157 = vxpose.xlu1.b32.cont [13/16] (narrow) %v7603_v35, 8  ;;  %v2129_v35 = vpop.trf.xlu0 }
 0x50b   :  { %2158 = vxpose.xlu1.b32.cont [14/16] (narrow) %v7604_v25, 8 }
 0x50f   :  { %2159 = vxpose.xlu1.b32.cont [15/16] (narrow) %v7605_v36, 8 }
 0x513   :  { %2160 = vxpose.xlu1.b32.end [16/16] (narrow) %v5962_v62, 8  ;;  %v2991_v62 = vld [vmem:[%s6817_s7 + $0x190] sm:$0xff]  ;;  %s3998_s7 = smov [#allocation11]  }
 0x514   :  { %v3410_v27 = vpack.c.bf16 %v2992_v21, %v2991_v62  ;;  %s3185_s23 = sshll.u32 %s3998_s7, 4  ;;  %s3186_s23 = int_to_ptr.vmem [resolvable:$true] %s3185_s23 }
 0x515   :  { %s3941_s3 = scalar_lea.vmem %s3186_s23, 32  ;;  %p3946_p9 = scmp.lt.s32.totalorder %s3186_s23, %s3186_s23 }
 0x516   :  { %p3942_p8 = scmp.ne.s32.totalorder %s3186_s23, %s3941_s3  ;;  %p3947_p10 = scmp.lt.s32.totalorder %s3941_s3, %s3941_s3 }
 0x518   :  { %p3948_p11 = por %p3947_p10, %p3946_p9 }
 0x51a   :  { %p3949_p12 = pnand %p3948_p11, %p3942_p8 }
 0x529   :  { %v2931_v26 = vpop.permute.xlu1 %2930 }
 0x52a   :  { %v6673_v59 = vrot.slane %v2931_v26, %v7597_v7 }
 0x52c   :  { %v6682_v22 = vmul.f32 %v2939_v54, %v6673_v59 }
 0x52d   :  { %v2919_v24 = vpop.permute.xlu1 %2918 }
 0x52e   :  { %v3010_v57 = vrot.slane %v6682_v22, %v7597_v7  ;;  %v3014_v15 = vrot.slane %v6682_v22, %v7606_v18  ;;  %v3022_v12 = vrot.slane %v6682_v22, %v7607_v60  ;;  %v3018_v4 = vrot.slane %v6682_v22, %v7608_v37 }
 0x52f   :  { %v2924_v41 = vrot.slane %v2919_v24, %v7597_v7 }
 0x530   :  { %3091 = vmatprep.mubr.f32.mxu1 %v3014_v15 }
 0x531   :  { %3092 = vmatmul.mubr.f32.vlgmr.msra.gmra.mrb[116].mxu1 %v3010_v57 }
 0x532   :  { %3409 = vmatpush3.bf16.msra.mxu1 %v3408_v29  ;;  %3161 = vmatprep.mubr.f32.mxu1 %v3022_v12 }
 0x533   :  { %3411 = vmatprep.subr.bf16.mxu1 %v3410_v27 }
 0x536   :  { %3413 = vmatpush3.bf16.msra.mxu1 %v3412_v17 }
 0x537   :  { %3415 = vmatprep.subr.bf16.mxu1 %v3414_v9 }
 0x53a   :  { %3417 = vmatpush3.bf16.msra.mxu1 %v3416_v30 }
 0x53b   :  { %3419 = vmatprep.subr.bf16.mxu1 %v3418_v3 }
 0x53e   :  { %3421 = vmatpush3.bf16.msra.mxu1 %v3420_v32 }
 0x53f   :  { %3423 = vmatprep.subr.bf16.mxu1 %v3422_v51 }
 0x542   :  { %3425 = vmatpush3.bf16.msra.mxu1 %v3424_v58 }
 0x543   :  { %3427 = vmatprep.subr.bf16.mxu1 %v3426_v52 }
 0x546   :  { %3429 = vmatpush3.bf16.msra.mxu1 %v3428_v31 }
 0x547   :  { %3431 = vmatprep.subr.bf16.mxu1 %v3430_v20 }
 0x54a   :  { %3433 = vmatpush3.bf16.msra.mxu1 %v3432_v33 }
 0x54b   :  { %3435 = vmatprep.subr.bf16.mxu1 %v3434_v63 }
 0x54e   :  { %3437 = vmatpush3.bf16.msra.mxu1 %v3436_v16 }
 0x551   :  { %3162 = vmatmul.mubr.f32.vlgmr.msra.gmra.mrb[118].mxu1 %v3018_v4 }
 0x557   :  { %v2161_v25 = vpop.trf.xlu1 }
 0x558   :  { %v2179_v36 = vcombine.low %v2129_v35, %v2161_v25 }
 0x55a   :  { %v2186_v26 = vrot.slane %v2179_v36, %v6642_v46 }
 0x55c   :  { %v2193_v54 = vrot.slane %v2186_v26, %v6642_v46 }
 0x55e   :  { %2202 = vst.msk [vmem:[#allocation11] sm:$0x3] %vm2200_vm2, %v2193_v54 }
 0x565   :  { %v2914_v48 = vld [vmem:[#allocation11] sm:$0x3] }
 0x566   :  { %v2925_v62 = vsub.f32 %v2914_v48, %v2924_v41 }
 0x568   :  { %v2926_v21 = vmul.f32 1.442695, %v2925_v62 }
 0x56a   :  { %3917 = vpow2.f32 %v2926_v21 }
 0x574   :  { %v3918_v23 = vpop.eup %3917 }
 0x575   :  { %v2937_v22 = vmul.f32 %v3918_v23, %v6673_v59 }
 0x577   :  { %2938 = vst.msk [vmem:[#allocation11] sm:$0x3] %vm2200_vm2, %v2937_v22 }
 0x578   :  { %3952 = shalt.err (!%p3949_p12)
}
 0x579   :  { %s3953_s24 = scalar_lea.hbm %s6820_s10, 32 }
 0x57a   :  { %p3954_p13 = scmp.ne.s32.totalorder %s6820_s10, %s3953_s24  ;;  %p3957_p0 = scmp.lt.u32.totalorder %s3953_s24, %s6820_s10 }
 0x57c   :  { %p3959_p1 = pnand %p3957_p0, %p3954_p13 }
 0x57e   :  { %3962 = shalt.err (!%p3959_p1)
}
 0x57f   :  { %3188 = dma.vmem_to_hbm [thread:$0]  %s3186_s23, 32, %s6820_s10, [#allocation12]   ;;  %v3005_v59 = vld [vmem:[%s6818_s8] sm:$0x1]  ;;  %vm3167_vm5 = vcmask 8192  }
 0x580   :  { %s3999_s30 = smov [#allocation10]  }
 0x581   :  { %s3175_s11 = sshll.u32 %s3999_s30, 4  ;;  %s3176_s11 = int_to_ptr.vmem [resolvable:$true] %s3175_s11 }
 0x582   :  { %s3963_s12 = scalar_lea.vmem %s3176_s11, 16  ;;  %s3967_s10 = scalar_lea.vmem %s3176_s11, 32 }
 0x583   :  { %p3964_p2 = scmp.ne.s32.totalorder %s3176_s11, %s3963_s12  ;;  %p3968_p3 = scmp.lt.s32.totalorder %s3176_s11, %s3176_s11 }
 0x584   :  { %p3969_p4 = scmp.lt.s32.totalorder %s3967_s10, %s3963_s12 }
 0x586   :  { %p3970_p5 = por %p3969_p4, %p3968_p3 }
 0x588   :  { %p3971_p6 = pnand %p3970_p5, %p3964_p2 }
 0x604   :  { %v3336_v39 = vpop.f32.mrb[116].mxu1 }
 0x605   :  { %v3337_v46 = vpop.f32.mrb[117].mxu1 }
 0x606   :  { %v3338_v7 = vadd.f32 %v3337_v46, %v3336_v39 }
 0x608   :  { %v3094_v15 = vadd.f32 %v3338_v7, %v3005_v59 }
 0x624   :  { %v3371_v57 = vpop.f32.mrb[118].mxu1 }
 0x625   :  { %v3372_v18 = vpop.f32.mrb[119].mxu1 }
 0x626   :  { %v3373_v29 = vadd.f32 %v3372_v18, %v3371_v57 }
 0x628   :  { %v3164_v27 = vadd.f32 %v3373_v29, %v3094_v15 }
 0x62a   :  { %3168 = vst.msk [vmem:[#allocation10] sm:$0x1] %vm3167_vm5, %v3164_v27 }
 0x62b   :  { %3974 = shalt.err (!%p3971_p6)
}
 0x62c   :  { %s3975_s14 = scalar_lea.hbm %s6819_s9, 16 }
 0x62d   :  { %p3976_p7 = scmp.ne.s32.totalorder %s6819_s9, %s3975_s14  ;;  %p3979_p8 = scmp.lt.u32.totalorder %s3975_s14, %s6819_s9 }
 0x62f   :  { %p3981_p9 = pnand %p3979_p8, %p3976_p7 }
 0x631   :  { %3984 = shalt.err (!%p3981_p9)
}
 0x632   :  { %3178 = dma.vmem_to_hbm [thread:$0]  %s3176_s11, 16, %s6819_s9, [#allocation9]  }
 0x633   :  { %3987 = dma.done.wait [#allocation9], 16  }
 0x634   :  { %3988 = vsyncadd [#allocation9], 4294967280 }
 0x635   :  { %3989 = dma.done.wait [#allocation12], 32  }
 0x636   :  { %3990 = vsyncadd [#allocation12], 4294967264 }
 0x637   :  { %3195 = vsyncpa [#allocation8], 1 }
 0x638   :  { %3196 = vsyncpa [#allocation9], 1 }
 0x639   :  { %3197 = vsyncpa [#allocation12], 1 }

</bundles_post_ra>
